<compile_context>
chip_gen: v5e
topology: v5e:2x2
jax: 0.10.0
libtpu: 0.0.40
codegen_flags: <defaults>
</compile_context>

<pallas_src>
import jax
import jax.numpy as jnp
from jax.experimental import pallas as pl
from jax.experimental.pallas import tpu as pltpu

IMG_SIZE = 28
IN_DIM = IMG_SIZE * IMG_SIZE   # 784
K_PAD = 1024                   # fc1 contraction dim padded to MXU-clean 1024
H1 = 1024
H2 = 512
OUT_DIM = 10
OUT_PAD = 128                  # lane-dense padded fc3 width


def mlp_kernel(x_ref, w1_ref, b1_ref, w2_ref, b2_ref, w3_ref, b3_ref, o_ref):
    # fc1 + relu : cast x to bf16 in-kernel (VPU), f32 accumulation on the MXU
    x_bf16 = x_ref[...].astype(jnp.bfloat16)
    h1 = jnp.dot(x_bf16, w1_ref[...], preferred_element_type=jnp.float32)
    h1 = jnp.maximum(h1 + b1_ref[...], 0.0)
    # fc2 + relu
    h2 = jnp.dot(h1.astype(jnp.bfloat16), w2_ref[...],
                 preferred_element_type=jnp.float32)
    h2 = jnp.maximum(h2 + b2_ref[...], 0.0)
    # fc3 (zero-padded to 128 output lanes; no activation)
    out = jnp.dot(h2.astype(jnp.bfloat16), w3_ref[...],
                  preferred_element_type=jnp.float32)
    o_ref[...] = (out + b3_ref[...]).astype(o_ref.dtype)


def _round_up(x, m):
    return ((x + m - 1) // m) * m


def _choose_tile_b(B):
    # Small-batch / inference path: just round up to the bf16 sublane pack (16)
    # instead of padding all the way to 128 -> far less redundant MXU/DMA work.
    if B < 128:
        return _round_up(max(B, 1), 16)
    # Large batches: big MXU-aligned tiles (amortize ~0.35us/step overhead),
    # but keep at least 2 grid steps so the "parallel" axis can split across
    # both v7x TensorCores.
    tile = min(1024, _round_up(B, 128))
    tile = min(tile, _round_up(pl.cdiv(B, 2), 128))
    return max(tile, 128)


def _const_spec(shape):
    """Constant-index block (weights/biases): single pipeline buffer."""
    index_map = lambda i: (0, 0)
    try:
        return pl.BlockSpec(shape, index_map, pipeline_mode=pl.Buffered(1))
    except (TypeError, AttributeError):
        return pl.BlockSpec(shape, index_map)


def net_forward(x, params, *, tile_b=None):
    """x: [..., 28, 28] or [B, 784] float32. Returns [B, 10] float32."""
    x2d = x.reshape(-1, IN_DIM)
    B = x2d.shape[0]
    # w*: bf16 (in, out) with w1 rows padded to K_PAD; b*: f32 (1, out);
    # fc3 zero-padded to OUT_PAD output columns.
    w1, b1, w2, b2, w3, b3 = params

    if tile_b is None:
        tile_b = _choose_tile_b(B)

    n_steps = pl.cdiv(B, tile_b)
    Bp = n_steps * tile_b
    # One fused pad: batch rows to the tile multiple, columns 784 -> 1024.
    if Bp != B or K_PAD != IN_DIM:
        x2d = jnp.pad(x2d, ((0, Bp - B), (0, K_PAD - IN_DIM)))

    cost = pl.CostEstimate(
        flops=2 * Bp * (K_PAD * H1 + H1 * H2 + H2 * OUT_PAD),
        transcendentals=0,
        bytes_accessed=(
            (w1.size + w2.size + w3.size) * 2      # bf16 weights (resident)
            + (b1.size + b2.size + b3.size) * 4    # f32 biases
            + Bp * K_PAD * 4                       # f32 activations in
            + Bp * OUT_PAD * 4                     # f32 logits out
        ),
    )

    # Working-set-sized scoped VMEM limit (covers v5e's 16 MiB default at big
    # tiles, stays under v7x's 64 MiB physical). Weights counted x2 in case the
    # Buffered(1) request falls back to double-buffering.
    vmem_bytes = (
        2 * tile_b * K_PAD * 4          # x tile, double-buffered f32
        + 2 * tile_b * OUT_PAD * 4      # out tile, double-buffered f32
        + tile_b * (H1 + H2) * 4        # f32 h1/h2 temporaries
        + 2 * (K_PAD * H1 + H1 * H2 + H2 * OUT_PAD) * 2   # bf16 weights
        + 2 * (H1 + H2 + OUT_PAD) * 4   # biases
        + (4 << 20)                     # headroom
    )
    vmem_limit = int(min(max(vmem_bytes, 32 << 20), 60 << 20))

    out = pl.pallas_call(
        mlp_kernel,
        out_shape=jax.ShapeDtypeStruct((Bp, OUT_PAD), jnp.float32),
        grid_spec=pltpu.PrefetchScalarGridSpec(
            num_scalar_prefetch=0,
            grid=(n_steps,),
            in_specs=[
                pl.BlockSpec((tile_b, K_PAD), lambda i: (i, 0)),
                _const_spec((K_PAD, H1)),
                _const_spec((1, H1)),
                _const_spec((H1, H2)),
                _const_spec((1, H2)),
                _const_spec((H2, OUT_PAD)),
                _const_spec((1, OUT_PAD)),
            ],
            out_specs=pl.BlockSpec((tile_b, OUT_PAD), lambda i: (i, 0)),
        ),
        compiler_params=pltpu.CompilerParams(
            dimension_semantics=("parallel",),
            vmem_limit_bytes=vmem_limit,
        ),
        cost_estimate=cost,
    )(x2d, w1, b1, w2, b2, w3, b3)

    return out[:B, :OUT_DIM]


def init_params(key):
    """Mirrors nn.Linear's uniform(-1/sqrt(fan_in), 1/sqrt(fan_in)) init.

    Weights are stored (in, out) so the kernel computes x @ W + b, cast to bf16
    for the MXU; biases stay f32.  w1 is zero-padded 784 -> 1024 rows (matches
    the zero-padded x columns), fc3 is zero-padded 10 -> 128 output columns.
    """
    def linear(k, fan_in, fan_out):
        kw, kb = jax.random.split(k)
        bound = 1.0 / jnp.sqrt(fan_in)
        w = jax.random.uniform(kw, (fan_in, fan_out), jnp.float32, -bound, bound)
        b = jax.random.uniform(kb, (1, fan_out), jnp.float32, -bound, bound)
        return w, b

    k1, k2, k3 = jax.random.split(key, 3)
    w1, b1 = linear(k1, IN_DIM, H1)
    w2, b2 = linear(k2, H1, H2)
    w3, b3 = linear(k3, H2, OUT_DIM)

    # MXU-clean contraction dim: zero-pad fc1 rows 784 -> 1024.
    w1 = jnp.pad(w1, ((0, K_PAD - IN_DIM), (0, 0)))
    # lane-dense fc3: zero-pad 10 -> 128 output columns (sliced off in wrapper)
    w3 = jnp.pad(w3, ((0, 0), (0, OUT_PAD - OUT_DIM)))
    b3 = jnp.pad(b3, ((0, 0), (0, OUT_PAD - OUT_DIM)))

    return (w1.astype(jnp.bfloat16), b1,
            w2.astype(jnp.bfloat16), b2,
            w3.astype(jnp.bfloat16), b3)


def reference_forward(x, params):
    """Pure-JAX reference with the same bf16-operand / f32-accumulate math."""
    w1, b1, w2, b2, w3, b3 = params
    x2d = x.reshape(-1, IN_DIM)
    x2d = jnp.pad(x2d, ((0, 0), (0, K_PAD - IN_DIM))).astype(jnp.bfloat16)
    h = jnp.maximum(jnp.dot(x2d, w1, preferred_element_type=jnp.float32) + b1, 0.0)
    h = jnp.maximum(
        jnp.dot(h.astype(jnp.bfloat16), w2, preferred_element_type=jnp.float32) + b2,
        0.0)
    out = jnp.dot(h.astype(jnp.bfloat16), w3, preferred_element_type=jnp.float32) + b3
    return out[:, :OUT_DIM]


if __name__ == "__main__":
    key = jax.random.PRNGKey(0)
    kx, kp = jax.random.split(key)

    batch = 8
    x = jax.random.normal(kx, (batch, IMG_SIZE, IMG_SIZE), dtype=jnp.float32)
    params = init_params(kp)

    out = net_forward(x, params)
    out = jax.block_until_ready(out)

    ref = reference_forward(x, params)
    assert out.shape == (batch, OUT_DIM)
    assert jnp.allclose(out, ref, atol=2e-2, rtol=2e-2), (
        float(jnp.max(jnp.abs(out - ref))))

    print("KERNEL_OK")
</pallas_src>

<mosaic_0001>
module attributes {stable_mosaic.version = 11 : i64} {
  func.func @mlp_kernel(%arg0: i32, %arg1: memref<16x1024xf32, #tpu.memory_space<vmem>>, %arg2: memref<1024x1024xbf16, #tpu.memory_space<vmem>>, %arg3: memref<1x1024xf32, #tpu.memory_space<vmem>>, %arg4: memref<1024x512xbf16, #tpu.memory_space<vmem>>, %arg5: memref<1x512xf32, #tpu.memory_space<vmem>>, %arg6: memref<512x128xbf16, #tpu.memory_space<vmem>>, %arg7: memref<1x128xf32, #tpu.memory_space<vmem>>, %arg8: memref<16x128xf32, #tpu.memory_space<vmem>>) attributes {dimension_semantics = [#tpu.dimension_semantics<parallel>], iteration_bounds = array<i64: 1>, scalar_prefetch = 0 : i64, scratch_operands = 0 : i64, tpu.core_type = #tpu.core_type<tc>, window_params = [{transform_indices = @transform_0, window_bounds = array<i64: 16, 1024>}, {pipeline_mode = #tpu.pipeline_mode<synchronous>, transform_indices = @transform_1, window_bounds = array<i64: 1024, 1024>}, {pipeline_mode = #tpu.pipeline_mode<synchronous>, transform_indices = @transform_2, window_bounds = array<i64: 1, 1024>}, {pipeline_mode = #tpu.pipeline_mode<synchronous>, transform_indices = @transform_3, window_bounds = array<i64: 1024, 512>}, {pipeline_mode = #tpu.pipeline_mode<synchronous>, transform_indices = @transform_4, window_bounds = array<i64: 1, 512>}, {pipeline_mode = #tpu.pipeline_mode<synchronous>, transform_indices = @transform_5, window_bounds = array<i64: 512, 128>}, {pipeline_mode = #tpu.pipeline_mode<synchronous>, transform_indices = @transform_6, window_bounds = array<i64: 1, 128>}, {transform_indices = @transform_7, window_bounds = array<i64: 16, 128>}]} {
    %c0 = arith.constant 0 : index
    %c0_0 = arith.constant 0 : index
    %0 = vector.load %arg1[%c0, %c0_0] : memref<16x1024xf32, #tpu.memory_space<vmem>>, vector<16x1024xf32>
    %1 = arith.truncf %0 : vector<16x1024xf32> to vector<16x1024xbf16>
    %c0_1 = arith.constant 0 : index
    %c0_2 = arith.constant 0 : index
    %2 = vector.load %arg2[%c0_1, %c0_2] : memref<1024x1024xbf16, #tpu.memory_space<vmem>>, vector<1024x1024xbf16>
    %cst = arith.constant dense<0.000000e+00> : vector<16x1024xf32>
    %3 = tpu.matmul %1, %2, %cst {dimension_numbers = #tpu.dot_dimension_numbers<[1], [0], [0], [1], [0, 0, 1, 1], [], []>} : vector<16x1024xbf16>, vector<1024x1024xbf16>, vector<16x1024xf32> -> vector<16x1024xf32>
    %c0_3 = arith.constant 0 : index
    %c0_4 = arith.constant 0 : index
    %4 = vector.load %arg3[%c0_3, %c0_4] : memref<1x1024xf32, #tpu.memory_space<vmem>>, vector<1x1024xf32>
    %5 = vector.broadcast %4 : vector<1x1024xf32> to vector<16x1024xf32>
    %6 = arith.addf %3, %5 : vector<16x1024xf32>
    %cst_5 = arith.constant 0.000000e+00 : f32
    %7 = vector.broadcast %cst_5 : f32 to vector<16x1024xf32>
    %8 = arith.maximumf %6, %7 : vector<16x1024xf32>
    %9 = arith.truncf %8 : vector<16x1024xf32> to vector<16x1024xbf16>
    %c0_6 = arith.constant 0 : index
    %c0_7 = arith.constant 0 : index
    %10 = vector.load %arg4[%c0_6, %c0_7] : memref<1024x512xbf16, #tpu.memory_space<vmem>>, vector<1024x512xbf16>
    %cst_8 = arith.constant dense<0.000000e+00> : vector<16x512xf32>
    %11 = tpu.matmul %9, %10, %cst_8 {dimension_numbers = #tpu.dot_dimension_numbers<[1], [0], [0], [1], [0, 0, 1, 1], [], []>} : vector<16x1024xbf16>, vector<1024x512xbf16>, vector<16x512xf32> -> vector<16x512xf32>
    %c0_9 = arith.constant 0 : index
    %c0_10 = arith.constant 0 : index
    %12 = vector.load %arg5[%c0_9, %c0_10] : memref<1x512xf32, #tpu.memory_space<vmem>>, vector<1x512xf32>
    %13 = vector.broadcast %12 : vector<1x512xf32> to vector<16x512xf32>
    %14 = arith.addf %11, %13 : vector<16x512xf32>
    %cst_11 = arith.constant 0.000000e+00 : f32
    %15 = vector.broadcast %cst_11 : f32 to vector<16x512xf32>
    %16 = arith.maximumf %14, %15 : vector<16x512xf32>
    %17 = arith.truncf %16 : vector<16x512xf32> to vector<16x512xbf16>
    %c0_12 = arith.constant 0 : index
    %c0_13 = arith.constant 0 : index
    %18 = vector.load %arg6[%c0_12, %c0_13] : memref<512x128xbf16, #tpu.memory_space<vmem>>, vector<512x128xbf16>
    %cst_14 = arith.constant dense<0.000000e+00> : vector<16x128xf32>
    %19 = tpu.matmul %17, %18, %cst_14 {dimension_numbers = #tpu.dot_dimension_numbers<[1], [0], [0], [1], [0, 0, 1, 1], [], []>} : vector<16x512xbf16>, vector<512x128xbf16>, vector<16x128xf32> -> vector<16x128xf32>
    %c0_15 = arith.constant 0 : index
    %c0_16 = arith.constant 0 : index
    %20 = vector.load %arg7[%c0_15, %c0_16] : memref<1x128xf32, #tpu.memory_space<vmem>>, vector<1x128xf32>
    %21 = vector.broadcast %20 : vector<1x128xf32> to vector<16x128xf32>
    %22 = arith.addf %19, %21 : vector<16x128xf32>
    %c0_17 = arith.constant 0 : index
    %c0_18 = arith.constant 0 : index
    %23 = vector.load %arg8[%c0_17, %c0_18] : memref<16x128xf32, #tpu.memory_space<vmem>>, vector<16x128xf32>
    tpu.vector_store %arg8[%c0_17, %c0_18], %22 {strides = array<i32>} : memref<16x128xf32, #tpu.memory_space<vmem>>, vector<16x128xf32>,
    return
  }
  func.func @transform_0(%arg0: i32) -> (i32, i32) {
    %c0_i32 = arith.constant 0 : i32
    %c0_i32_0 = arith.constant 0 : i32
    return %arg0, %c0_i32 : i32, i32
  }
  func.func @transform_1(%arg0: i32) -> (i32, i32) {
    %c0_i32 = arith.constant 0 : i32
    %c0_i32_0 = arith.constant 0 : i32
    %c0_i32_1 = arith.constant 0 : i32
    return %c0_i32, %c0_i32_0 : i32, i32
  }
  func.func @transform_2(%arg0: i32) -> (i32, i32) {
    %c0_i32 = arith.constant 0 : i32
    %c0_i32_0 = arith.constant 0 : i32
    %c0_i32_1 = arith.constant 0 : i32
    return %c0_i32, %c0_i32_0 : i32, i32
  }
  func.func @transform_3(%arg0: i32) -> (i32, i32) {
    %c0_i32 = arith.constant 0 : i32
    %c0_i32_0 = arith.constant 0 : i32
    %c0_i32_1 = arith.constant 0 : i32
    return %c0_i32, %c0_i32_0 : i32, i32
  }
  func.func @transform_4(%arg0: i32) -> (i32, i32) {
    %c0_i32 = arith.constant 0 : i32
    %c0_i32_0 = arith.constant 0 : i32
    %c0_i32_1 = arith.constant 0 : i32
    return %c0_i32, %c0_i32_0 : i32, i32
  }
  func.func @transform_5(%arg0: i32) -> (i32, i32) {
    %c0_i32 = arith.constant 0 : i32
    %c0_i32_0 = arith.constant 0 : i32
    %c0_i32_1 = arith.constant 0 : i32
    return %c0_i32, %c0_i32_0 : i32, i32
  }
  func.func @transform_6(%arg0: i32) -> (i32, i32) {
    %c0_i32 = arith.constant 0 : i32
    %c0_i32_0 = arith.constant 0 : i32
    %c0_i32_1 = arith.constant 0 : i32
    return %c0_i32, %c0_i32_0 : i32, i32
  }
  func.func @transform_7(%arg0: i32) -> (i32, i32) {
    %c0_i32 = arith.constant 0 : i32
    %c0_i32_0 = arith.constant 0 : i32
    return %arg0, %c0_i32 : i32, i32
  }
}

</mosaic_0001>

<bundles_post_ra>
// kernel: tpu_custom_call.1
= control target key start
LH: loop header
LB: loop body
LE: loop exit
PB: predicated region body
PF: predicated region fallthrough
CT: control target
= control target key end

     0   :  { %12 = vsyncpa [#allocation3], 0  ;;  %s11196_s0 = inlined_call_operand.hbm [shape: f32[16,1024], index: 0, kind: input, shape index: {}]   ;;  %s11197_s1 = inlined_call_operand.hbm [shape: bf16[1024,1024], index: 1, kind: input, shape index: {}]   ;;  %s11198_s2 = inlined_call_operand.hbm [shape: f32[1,1024], index: 2, kind: input, shape index: {}]   ;;  %s11199_s3 = inlined_call_operand.hbm [shape: bf16[1024,512], index: 3, kind: input, shape index: {}]   ;;  %s11200_s4 = inlined_call_operand.hbm [shape: f32[1,512], index: 4, kind: input, shape index: {}]   ;;  %s11201_s5 = inlined_call_operand.hbm [shape: bf16[512,128], index: 5, kind: input, shape index: {}]   ;;  %s11202_s6 = inlined_call_operand.hbm [shape: f32[1,128], index: 6, kind: input, shape index: {}]   ;;  %s11203_s7 = inlined_call_operand.hbm [shape: f32[16,128], index: 7, kind: output, shape index: {}]  }
   0x1   :  { %13 = vsyncpa [#allocation6], 0 }
   0x2   :  { %14 = vsyncpa [#allocation9], 0 }
   0x3   :  { %15 = vsyncpa [#allocation12], 0  ;;  %s34_s26 = sshll.u32 %s11197_s1, 4  ;;  %s35_s26 = int_to_ptr.hbm [resolvable:$true] %s34_s26 }
   0x4   :  { %16 = vsyncpa [#allocation4], 0  ;;  %s10733_s27 = smov [#allocation5]   ;;  %s58_s8 = sshll.u32 %s11199_s3, 4  ;;  %s59_s8 = int_to_ptr.hbm [resolvable:$true] %s58_s8 }
   0x5   :  { %s36_s28 = sshll.u32 %s10733_s27, 4  ;;  %s10734_s9 = smov 512   ;;  %s37_s28 = int_to_ptr.vmem [resolvable:$true] %s36_s28 }
   0x6   :  { %s10735_s10 = smov 32   ;;  %s10736_s11 = smov [#allocation8]  }
   0x7   :  { %42 = dma.hbm_to_vmem [thread:$0]  %s35_s26, 65536, %s37_s28, [#allocation6], %s10734_s9, %s10734_s9, %s10735_s10  }
   0x8   :  { %s60_s12 = sshll.u32 %s10736_s11, 4  ;;  %s10737_s13 = smov 256   ;;  %s61_s12 = int_to_ptr.vmem [resolvable:$true] %s60_s12 }
   0x9   :  { %s10738_s14 = smov 16   ;;  %s82_s16 = sshll.u32 %s11201_s5, 4  ;;  %s83_s16 = int_to_ptr.hbm [resolvable:$true] %s82_s16 }
   0xa   :  { %66 = dma.hbm_to_vmem [thread:$0]  %s59_s8, 32768, %s61_s12, [#allocation9], %s10737_s13, %s10737_s13, %s10738_s14  }
   0xb   :  { %s10739_s17 = smov [#allocation11]   ;;  %s21_s20 = sshll.u32 %s11196_s0, 4  ;;  %s22_s20 = int_to_ptr.hbm [resolvable:$true] %s21_s20 }
   0xc   :  { %s84_s18 = sshll.u32 %s10739_s17, 4  ;;  %s10740_s21 = smov 64   ;;  %s85_s18 = int_to_ptr.vmem [resolvable:$true] %s84_s18 }
   0xd   :  { %s10741_s22 = smov 4   ;;  %s10742_s23 = smov [#allocation2]  }
   0xe   :  { %90 = dma.hbm_to_vmem [thread:$0]  %s83_s16, 4096, %s85_s18, [#allocation12], %s10740_s21, %s10740_s21, %s10741_s22  }
   0xf   :  { %s23_s24 = sshll.u32 %s10742_s23, 4  ;;  %s48_s27 = sshll.u32 %s11198_s2, 4  ;;  %s24_s24 = int_to_ptr.vmem [resolvable:$true] %s23_s24  ;;  %s49_s27 = int_to_ptr.hbm [resolvable:$true] %s48_s27 }
  0x10   :  { %s10743_s5 = smov 1024   ;;  %s10744_s28 = smov [#allocation7]  }
  0x11   :  { %29 = dma.hbm_to_vmem [thread:$0]  %s22_s20, 2048, %s24_s24, [#allocation3], %s10743_s5, %s10743_s5, %s10740_s21  }
  0x12   :  { %s50_s29 = sshll.u32 %s10744_s28, 4  ;;  %s72_s0 = sshll.u32 %s11200_s4, 4  ;;  %s51_s29 = int_to_ptr.vmem [resolvable:$true] %s50_s29  ;;  %s73_s0 = int_to_ptr.hbm [resolvable:$true] %s72_s0 }
  0x13   :  { %53 = dma.hbm_to_vmem [thread:$0]  %s49_s27, 128, %s51_s29, [#allocation6]  }
  0x14   :  { %s96_s11 = sshll.u32 %s11202_s6, 4  ;;  %s10745_s12 = smov [#allocation10]   ;;  %s97_s11 = int_to_ptr.hbm [resolvable:$true] %s96_s11 }
  0x15   :  { %s74_s13 = sshll.u32 %s10745_s12, 4  ;;  %s10746_s2 = smov [#allocation13]   ;;  %s75_s13 = int_to_ptr.vmem [resolvable:$true] %s74_s13 }
  0x16   :  { %77 = dma.hbm_to_vmem [thread:$0]  %s73_s0, 64, %s75_s13, [#allocation9]  }
  0x17   :  { %s98_s14 = sshll.u32 %s10746_s2, 4  ;;  %s99_s14 = int_to_ptr.vmem [resolvable:$true] %s98_s14 }
  0x18   :  { %101 = dma.hbm_to_vmem [thread:$0]  %s97_s11, 16, %s99_s14, [#allocation12]  }
  0x19   :  { %10723 = dma.done.wait [#allocation3], 2048  }
  0x1a   :  { %10724 = vsyncadd [#allocation3], 4294965248 }
  0x1b   :  { %10725 = dma.done.wait [#allocation6], 65664  }
  0x1c   :  { %10726 = vsyncadd [#allocation6], 4294901632 }
  0x1d   :  { %10727 = dma.done.wait [#allocation9], 32832  }
  0x1e   :  { %10728 = vsyncadd [#allocation9], 4294934464 }
  0x1f   :  { %10729 = dma.done.wait [#allocation12], 4112  }
  0x20   :  { %10730 = vsyncadd [#allocation12], 4294963184  ;;  %v6736_v0 = vld [vmem:[#allocation5 + $0x1c0] sm:$0xf]  ;;  %s10747_s4 = smov [#allocation14]   ;;  %s6494_s16 = sshll.u32 %s11203_s7, 4  ;;  %s6495_s16 = int_to_ptr.hbm [resolvable:$true] %s6494_s16 }
  0x21   :  { %v9770_v1 = vld [vmem:[#allocation5 + $0x1dc] sm:$0xf0]  ;;  %s6492_s6 = sshll.u32 %s10747_s4, 4  ;;  %s10748_s17 = smov 128   ;;  %s6493_s6 = int_to_ptr.vmem [resolvable:$true] %s6492_s6 }
  0x22   :  { %v6992_v2 = vld [vmem:[#allocation5 + $0x3c0] sm:$0xf]  ;;  %v6737_v3 = vor.u32 %v9770_v1, %v6736_v0  ;;  %s10749_s18 = smov 8  }
  0x23   :  { %v9834_v4 = vld [vmem:[#allocation5 + $0x3dc] sm:$0xf0] }
  0x24   :  { %v7248_v5 = vld [vmem:[#allocation5 + $0x5c0] sm:$0xf]  ;;  %v6993_v7 = vor.u32 %v9834_v4, %v6992_v2  ;;  %3244 = vmatpush.bf16.msra.mxu0 %v6737_v3 }
  0x25   :  { %v9898_v6 = vld [vmem:[#allocation5 + $0x5dc] sm:$0xf0] }
  0x26   :  { %v7249_v8 = vor.u32 %v9898_v6, %v7248_v5  ;;  %v7504_v9 = vld [vmem:[#allocation5 + $0x7c0] sm:$0xf]  ;;  %3258 = vmatpush.bf16.msra.mxu1 %v6993_v7 }
  0x27   :  { %v9962_v10 = vld [vmem:[#allocation5 + $0x7dc] sm:$0xf0] }
  0x28   :  { %v6704_v11 = vld [vmem:[#allocation5 + $0x180] sm:$0xf]  ;;  %v7505_v12 = vor.u32 %v9962_v10, %v7504_v9  ;;  %3272 = vmatpush.bf16.msra.mxu2 %v7249_v8 }
  0x29   :  { %v9762_v13 = vld [vmem:[#allocation5 + $0x19c] sm:$0xf0] }
  0x2a   :  { %v6960_v14 = vld [vmem:[#allocation5 + $0x380] sm:$0xf]  ;;  %v6705_v16 = vor.u32 %v9762_v13, %v6704_v11  ;;  %3286 = vmatpush.bf16.msra.mxu3 %v7505_v12 }
  0x2b   :  { %v9826_v15 = vld [vmem:[#allocation5 + $0x39c] sm:$0xf0] }
  0x2c   :  { %v6961_v17 = vor.u32 %v9826_v15, %v6960_v14  ;;  %v7216_v18 = vld [vmem:[#allocation5 + $0x580] sm:$0xf]  ;;  %3245 = vmatpush.bf16.msra.mxu0 %v6705_v16 }
  0x2d   :  { %v9890_v19 = vld [vmem:[#allocation5 + $0x59c] sm:$0xf0] }
  0x2e   :  { %v7472_v20 = vld [vmem:[#allocation5 + $0x780] sm:$0xf]  ;;  %v7217_v21 = vor.u32 %v9890_v19, %v7216_v18  ;;  %3259 = vmatpush.bf16.msra.mxu1 %v6961_v17 }
  0x2f   :  { %v9954_v22 = vld [vmem:[#allocation5 + $0x79c] sm:$0xf0] }
  0x30   :  { %v6672_v23 = vld [vmem:[#allocation5 + $0x140] sm:$0xf]  ;;  %v7473_v25 = vor.u32 %v9954_v22, %v7472_v20  ;;  %3273 = vmatpush.bf16.msra.mxu2 %v7217_v21 }
  0x31   :  { %v9754_v24 = vld [vmem:[#allocation5 + $0x15c] sm:$0xf0] }
  0x32   :  { %v6928_v26 = vld [vmem:[#allocation5 + $0x340] sm:$0xf]  ;;  %v6673_v29 = vor.u32 %v9754_v24, %v6672_v23  ;;  %3287 = vmatpush.bf16.msra.mxu3 %v7473_v25 }
  0x33   :  { %v9818_v27 = vld [vmem:[#allocation5 + $0x35c] sm:$0xf0] }
  0x34   :  { %v7184_v28 = vld [vmem:[#allocation5 + $0x540] sm:$0xf]  ;;  %v6929_v33 = vor.u32 %v9818_v27, %v6928_v26  ;;  %3246 = vmatpush.bf16.msra.mxu0 %v6673_v29 }
  0x35   :  { %v9882_v30 = vld [vmem:[#allocation5 + $0x55c] sm:$0xf0] }
  0x36   :  { %v7440_v31 = vld [vmem:[#allocation5 + $0x740] sm:$0xf]  ;;  %v7185_v34 = vor.u32 %v9882_v30, %v7184_v28  ;;  %3260 = vmatpush.bf16.msra.mxu1 %v6929_v33 }
  0x37   :  { %v9946_v32 = vld [vmem:[#allocation5 + $0x75c] sm:$0xf0] }
  0x38   :  { %v6640_v35 = vld [vmem:[#allocation5 + $0x100] sm:$0xf]  ;;  %v7441_v38 = vor.u32 %v9946_v32, %v7440_v31  ;;  %3274 = vmatpush.bf16.msra.mxu2 %v7185_v34 }
  0x39   :  { %v9746_v36 = vld [vmem:[#allocation5 + $0x11c] sm:$0xf0] }
  0x3a   :  { %v6896_v37 = vld [vmem:[#allocation5 + $0x300] sm:$0xf]  ;;  %v6641_v44 = vor.u32 %v9746_v36, %v6640_v35  ;;  %3288 = vmatpush.bf16.msra.mxu3 %v7441_v38 }
  0x3b   :  { %v9810_v39 = vld [vmem:[#allocation5 + $0x31c] sm:$0xf0] }
  0x3c   :  { %v7152_v40 = vld [vmem:[#allocation5 + $0x500] sm:$0xf]  ;;  %v6897_v45 = vor.u32 %v9810_v39, %v6896_v37  ;;  %3247 = vmatpush.bf16.msra.mxu0 %v6641_v44 }
  0x3d   :  { %v9874_v41 = vld [vmem:[#allocation5 + $0x51c] sm:$0xf0] }
  0x3e   :  { %v7408_v42 = vld [vmem:[#allocation5 + $0x700] sm:$0xf]  ;;  %v7153_v46 = vor.u32 %v9874_v41, %v7152_v40  ;;  %3261 = vmatpush.bf16.msra.mxu1 %v6897_v45 }
  0x3f   :  { %v9938_v43 = vld [vmem:[#allocation5 + $0x71c] sm:$0xf0] }
  0x40   :  { %v6608_v47 = vld [vmem:[#allocation5 + $0xc0] sm:$0xf]  ;;  %v7409_v50 = vor.u32 %v9938_v43, %v7408_v42  ;;  %3275 = vmatpush.bf16.msra.mxu2 %v7153_v46 }
  0x41   :  { %v9738_v48 = vld [vmem:[#allocation5 + $0xdc] sm:$0xf0] }
  0x42   :  { %v6864_v49 = vld [vmem:[#allocation5 + $0x2c0] sm:$0xf]  ;;  %v6609_v56 = vor.u32 %v9738_v48, %v6608_v47  ;;  %3289 = vmatpush.bf16.msra.mxu3 %v7409_v50 }
  0x43   :  { %v9802_v51 = vld [vmem:[#allocation5 + $0x2dc] sm:$0xf0] }
  0x44   :  { %v7120_v52 = vld [vmem:[#allocation5 + $0x4c0] sm:$0xf]  ;;  %v6865_v57 = vor.u32 %v9802_v51, %v6864_v49  ;;  %3248 = vmatpush.bf16.msra.mxu0 %v6609_v56 }
  0x45   :  { %v9866_v53 = vld [vmem:[#allocation5 + $0x4dc] sm:$0xf0] }
  0x46   :  { %v7376_v54 = vld [vmem:[#allocation5 + $0x6c0] sm:$0xf]  ;;  %v7121_v58 = vor.u32 %v9866_v53, %v7120_v52  ;;  %3262 = vmatpush.bf16.msra.mxu1 %v6865_v57 }
  0x47   :  { %v9930_v55 = vld [vmem:[#allocation5 + $0x6dc] sm:$0xf0] }
  0x48   :  { %v6576_v59 = vld [vmem:[#allocation5 + $0x80] sm:$0xf]  ;;  %v7377_v62 = vor.u32 %v9930_v55, %v7376_v54  ;;  %3276 = vmatpush.bf16.msra.mxu2 %v7121_v58  ;;  %v132_v54 = vld [vmem:[#allocation2 + $0x10] sm:$0xff] }
  0x49   :  { %v9730_v60 = vld [vmem:[#allocation5 + $0x9c] sm:$0xf0] }
  0x4a   :  { %v6832_v61 = vld [vmem:[#allocation5 + $0x280] sm:$0xf]  ;;  %v6577_v4 = vor.u32 %v9730_v60, %v6576_v59  ;;  %3290 = vmatpush.bf16.msra.mxu3 %v7377_v62  ;;  %v140_v59 = vld [vmem:[#allocation2 + $0x50] sm:$0xff] }
  0x4b   :  { %v9794_v63 = vld [vmem:[#allocation5 + $0x29c] sm:$0xf0] }
  0x4c   :  { %v7088_v0 = vld [vmem:[#allocation5 + $0x480] sm:$0xf]  ;;  %v6833_v5 = vor.u32 %v9794_v63, %v6832_v61  ;;  %3249 = vmatpush.bf16.msra.mxu0 %v6577_v4 }
  0x4d   :  { %v9858_v1 = vld [vmem:[#allocation5 + $0x49c] sm:$0xf0] }
  0x4e   :  { %v7344_v2 = vld [vmem:[#allocation5 + $0x680] sm:$0xf]  ;;  %v7089_v6 = vor.u32 %v9858_v1, %v7088_v0  ;;  %3263 = vmatpush.bf16.msra.mxu1 %v6833_v5  ;;  %v10813_v1 = vpack.c.bf16 %v140_v59, %v132_v54 }
  0x4f   :  { %v9922_v3 = vld [vmem:[#allocation5 + $0x69c] sm:$0xf0] }
  0x50   :  { %v6544_v7 = vld [vmem:[#allocation5 + $0x40] sm:$0xf]  ;;  %v7345_v10 = vor.u32 %v9922_v3, %v7344_v2  ;;  %3277 = vmatpush.bf16.msra.mxu2 %v7089_v6  ;;  %v131_v6 = vld [vmem:[#allocation2 + $0x8] sm:$0xff] }
  0x51   :  { %v9722_v8 = vld [vmem:[#allocation5 + $0x5c] sm:$0xf0] }
  0x52   :  { %v6800_v9 = vld [vmem:[#allocation5 + $0x240] sm:$0xf]  ;;  %v6545_v16 = vor.u32 %v9722_v8, %v6544_v7  ;;  %3291 = vmatpush.bf16.msra.mxu3 %v7345_v10  ;;  %v139_v7 = vld [vmem:[#allocation2 + $0x48] sm:$0xff]  ;;  %v133_v8 = vld [vmem:[#allocation2 + $0x18] sm:$0xff] }
  0x53   :  { %v9786_v11 = vld [vmem:[#allocation5 + $0x25c] sm:$0xf0]  ;;  %v10817_v10 = vpack.c.bf16 %v139_v7, %v131_v6 }
  0x54   :  { %v7056_v12 = vld [vmem:[#allocation5 + $0x440] sm:$0xf]  ;;  %v6801_v19 = vor.u32 %v9786_v11, %v6800_v9  ;;  %3250 = vmatpush.bf16.msra.mxu0 %v6545_v16  ;;  %v141_v11 = vld [vmem:[#allocation2 + $0x58] sm:$0xff] }
  0x55   :  { %v9850_v13 = vld [vmem:[#allocation5 + $0x45c] sm:$0xf0] }
  0x56   :  { %v7312_v14 = vld [vmem:[#allocation5 + $0x640] sm:$0xf]  ;;  %v7057_v20 = vor.u32 %v9850_v13, %v7056_v12  ;;  %3264 = vmatpush.bf16.msra.mxu1 %v6801_v19 }
  0x57   :  { %v9914_v15 = vld [vmem:[#allocation5 + $0x65c] sm:$0xf0] }
  0x58   :  { %v6512_v17 = vld [vmem:[#allocation5] sm:$0xf]  ;;  %v7313_v24 = vor.u32 %v9914_v15, %v7312_v14  ;;  %3278 = vmatpush.bf16.msra.mxu2 %v7057_v20 }
  0x59   :  { %v9714_v18 = vld [vmem:[#allocation5 + $0x1c] sm:$0xf0] }
  0x5a   :  { %v6768_v21 = vld [vmem:[#allocation5 + $0x200] sm:$0xf]  ;;  %v6513_v31 = vor.u32 %v9714_v18, %v6512_v17  ;;  %3292 = vmatpush.bf16.msra.mxu3 %v7313_v24  ;;  %v10819_v17 = vpack.c.bf16 %v141_v11, %v133_v8 }
  0x5b   :  { %v9778_v22 = vld [vmem:[#allocation5 + $0x21c] sm:$0xf0] }
  0x5c   :  { %v7024_v23 = vld [vmem:[#allocation5 + $0x400] sm:$0xf]  ;;  %v6769_v35 = vor.u32 %v9778_v22, %v6768_v21  ;;  %3251 = vmatpush.bf16.msra.mxu0 %v6513_v31 }
  0x5d   :  { %v9842_v25 = vld [vmem:[#allocation5 + $0x41c] sm:$0xf0] }
  0x5e   :  { %v7280_v26 = vld [vmem:[#allocation5 + $0x600] sm:$0xf]  ;;  %v7025_v36 = vor.u32 %v9842_v25, %v7024_v23  ;;  %3265 = vmatpush.bf16.msra.mxu1 %v6769_v35 }
  0x5f   :  { %v9906_v27 = vld [vmem:[#allocation5 + $0x61c] sm:$0xf0] }
  0x60   :  { %v7760_v28 = vld [vmem:[#allocation5 + $0x9c0] sm:$0xf]  ;;  %v7281_v39 = vor.u32 %v9906_v27, %v7280_v26  ;;  %3279 = vmatpush.bf16.msra.mxu2 %v7025_v36 }
  0x61   :  { %v10026_v29 = vld [vmem:[#allocation5 + $0x9dc] sm:$0xf0]  ;;  %3266 = vmatmul.bf16.vlgmr.msra.gmra.mxu1 %v10817_v10 }
  0x62   :  { %v8016_v30 = vld [vmem:[#allocation5 + $0xbc0] sm:$0xf]  ;;  %v7761_v40 = vor.u32 %v10026_v29, %v7760_v28  ;;  %3293 = vmatpush.bf16.msra.mxu3 %v7281_v39 }
  0x63   :  { %v10090_v32 = vld [vmem:[#allocation5 + $0xbdc] sm:$0xf0]  ;;  %3280 = vmatmul.bf16.vlgmr.msra.gmra.mxu2 %v10813_v1 }
  0x64   :  { %v8272_v33 = vld [vmem:[#allocation5 + $0xdc0] sm:$0xf]  ;;  %v8017_v43 = vor.u32 %v10090_v32, %v8016_v30  ;;  %3300 = vmatpush.bf16.msrb.mxu0 %v7761_v40 }
  0x65   :  { %v10154_v34 = vld [vmem:[#allocation5 + $0xddc] sm:$0xf0]  ;;  %3294 = vmatmul.bf16.vlgmr.msra.gmra.mxu3 %v10819_v17 }
  0x66   :  { %v8528_v37 = vld [vmem:[#allocation5 + $0xfc0] sm:$0xf]  ;;  %v8273_v44 = vor.u32 %v10154_v34, %v8272_v33  ;;  %3314 = vmatpush.bf16.msrb.mxu1 %v8017_v43 }
  0x67   :  { %v10218_v38 = vld [vmem:[#allocation5 + $0xfdc] sm:$0xf0] }
  0x68   :  { %v7728_v41 = vld [vmem:[#allocation5 + $0x980] sm:$0xf]  ;;  %v8529_v48 = vor.u32 %v10218_v38, %v8528_v37  ;;  %3328 = vmatpush.bf16.msrb.mxu2 %v8273_v44 }
  0x69   :  { %v10018_v42 = vld [vmem:[#allocation5 + $0x99c] sm:$0xf0] }
  0x6a   :  { %v7984_v45 = vld [vmem:[#allocation5 + $0xb80] sm:$0xf]  ;;  %v7729_v55 = vor.u32 %v10018_v42, %v7728_v41  ;;  %3342 = vmatpush.bf16.msrb.mxu3 %v8529_v48 }
  0x6b   :  { %v10082_v46 = vld [vmem:[#allocation5 + $0xb9c] sm:$0xf0] }
  0x6c   :  { %v8240_v47 = vld [vmem:[#allocation5 + $0xd80] sm:$0xf]  ;;  %v7985_v60 = vor.u32 %v10082_v46, %v7984_v45  ;;  %3301 = vmatpush.bf16.msrb.mxu0 %v7729_v55 }
  0x6d   :  { %v10146_v49 = vld [vmem:[#allocation5 + $0xd9c] sm:$0xf0] }
  0x6e   :  { %v8496_v50 = vld [vmem:[#allocation5 + $0xf80] sm:$0xf]  ;;  %v8241_v61 = vor.u32 %v10146_v49, %v8240_v47  ;;  %3315 = vmatpush.bf16.msrb.mxu1 %v7985_v60 }
  0x6f   :  { %v10210_v51 = vld [vmem:[#allocation5 + $0xf9c] sm:$0xf0] }
  0x70   :  { %v130_v52 = vld [vmem:[#allocation2] sm:$0xff]  ;;  %v8497_v2 = vor.u32 %v10210_v51, %v8496_v50  ;;  %3329 = vmatpush.bf16.msrb.mxu2 %v8241_v61 }
  0x71   :  { %v138_v53 = vld [vmem:[#allocation2 + $0x40] sm:$0xff] }
  0x72   :  { %v7696_v56 = vld [vmem:[#allocation5 + $0x940] sm:$0xf]  ;;  %v10811_v58 = vpack.c.bf16 %v138_v53, %v130_v52  ;;  %3343 = vmatpush.bf16.msrb.mxu3 %v8497_v2 }
  0x73   :  { %v10010_v57 = vld [vmem:[#allocation5 + $0x95c] sm:$0xf0] }
  0x74   :  { %v7952_v62 = vld [vmem:[#allocation5 + $0xb40] sm:$0xf]  ;;  %3252 = vmatmul.bf16.vlgmr.msra.gmra.mxu0 %v10811_v58  ;;  %v7697_v9 = vor.u32 %v10010_v57, %v7696_v56 }
  0x75   :  { %v10074_v63 = vld [vmem:[#allocation5 + $0xb5c] sm:$0xf0] }
  0x76   :  { %v8208_v0 = vld [vmem:[#allocation5 + $0xd40] sm:$0xf]  ;;  %v7953_v12 = vor.u32 %v10074_v63, %v7952_v62  ;;  %3302 = vmatpush.bf16.msrb.mxu0 %v7697_v9  ;;  %v9766_v9 = vld [vmem:[#allocation5 + $0x1c4] sm:$0xf] }
  0x77   :  { %v10138_v3 = vld [vmem:[#allocation5 + $0xd5c] sm:$0xf0] }
  0x78   :  { %v8464_v4 = vld [vmem:[#allocation5 + $0xf40] sm:$0xf]  ;;  %v8209_v13 = vor.u32 %v10138_v3, %v8208_v0  ;;  %3316 = vmatpush.bf16.msrb.mxu1 %v7953_v12  ;;  %v6738_v12 = vld [vmem:[#allocation5 + $0x1e0] sm:$0xf0] }
  0x79   :  { %v10202_v5 = vld [vmem:[#allocation5 + $0xf5c] sm:$0xf0] }
  0x7a   :  { %v7664_v14 = vld [vmem:[#allocation5 + $0x900] sm:$0xf]  ;;  %v8465_v18 = vor.u32 %v10202_v5, %v8464_v4  ;;  %3330 = vmatpush.bf16.msrb.mxu2 %v8209_v13  ;;  %v9830_v13 = vld [vmem:[#allocation5 + $0x3c4] sm:$0xf] }
  0x7b   :  { %v10002_v15 = vld [vmem:[#allocation5 + $0x91c] sm:$0xf0] }
  0x7c   :  { %v7920_v16 = vld [vmem:[#allocation5 + $0xb00] sm:$0xf]  ;;  %v7665_v24 = vor.u32 %v10002_v15, %v7664_v14  ;;  %3344 = vmatpush.bf16.msrb.mxu3 %v8465_v18  ;;  %v6994_v14 = vld [vmem:[#allocation5 + $0x3e0] sm:$0xf0] }
  0x7d   :  { %v10066_v19 = vld [vmem:[#allocation5 + $0xb1c] sm:$0xf0]  ;;  %v9894_v15 = vld [vmem:[#allocation5 + $0x5c4] sm:$0xf] }
  0x7e   :  { %v8176_v20 = vld [vmem:[#allocation5 + $0xd00] sm:$0xf]  ;;  %v7921_v25 = vor.u32 %v10066_v19, %v7920_v16  ;;  %3303 = vmatpush.bf16.msrb.mxu0 %v7665_v24  ;;  %v7250_v16 = vld [vmem:[#allocation5 + $0x5e0] sm:$0xf0] }
  0x7f   :  { %v10130_v21 = vld [vmem:[#allocation5 + $0xd1c] sm:$0xf0]  ;;  %v9958_v18 = vld [vmem:[#allocation5 + $0x7c4] sm:$0xf] }
  0x80   :  { %v8432_v22 = vld [vmem:[#allocation5 + $0xf00] sm:$0xf]  ;;  %v8177_v26 = vor.u32 %v10130_v21, %v8176_v20  ;;  %3317 = vmatpush.bf16.msrb.mxu1 %v7921_v25  ;;  %v7506_v20 = vld [vmem:[#allocation5 + $0x7e0] sm:$0xf0]  ;;  %v136_v25 = vld [vmem:[#allocation2 + $0x30] sm:$0xff] }
  0x81   :  { %v10194_v23 = vld [vmem:[#allocation5 + $0xf1c] sm:$0xf0] }
  0x82   :  { %v7632_v27 = vld [vmem:[#allocation5 + $0x8c0] sm:$0xf]  ;;  %v8433_v30 = vor.u32 %v10194_v23, %v8432_v22  ;;  %3331 = vmatpush.bf16.msrb.mxu2 %v8177_v26  ;;  %v144_v26 = vld [vmem:[#allocation2 + $0x70] sm:$0xff] }
  0x83   :  { %v9994_v28 = vld [vmem:[#allocation5 + $0x8dc] sm:$0xf0] }
  0x84   :  { %v7888_v29 = vld [vmem:[#allocation5 + $0xac0] sm:$0xf]  ;;  %v7633_v36 = vor.u32 %v9994_v28, %v7632_v27  ;;  %3345 = vmatpush.bf16.msrb.mxu3 %v8433_v30  ;;  %v135_v27 = vld [vmem:[#allocation2 + $0x28] sm:$0xff] }
  0x85   :  { %v10058_v31 = vld [vmem:[#allocation5 + $0xadc] sm:$0xf0]  ;;  %v143_v30 = vld [vmem:[#allocation2 + $0x68] sm:$0xff] }
  0x86   :  { %v8144_v32 = vld [vmem:[#allocation5 + $0xcc0] sm:$0xf]  ;;  %v7889_v37 = vor.u32 %v10058_v31, %v7888_v29  ;;  %3304 = vmatpush.bf16.msrb.mxu0 %v7633_v36  ;;  %v6741_v29 = vor.u32 %v9766_v9, %v6738_v12  ;;  %v137_v31 = vld [vmem:[#allocation2 + $0x38] sm:$0xff]  ;;  %v6706_v36 = vld [vmem:[#allocation5 + $0x1a0] sm:$0xf0] }
  0x87   :  { %v10122_v33 = vld [vmem:[#allocation5 + $0xcdc] sm:$0xf0]  ;;  %v7410_v9 = vld [vmem:[#allocation5 + $0x720] sm:$0xf0] }
  0x88   :  { %v8400_v34 = vld [vmem:[#allocation5 + $0xec0] sm:$0xf]  ;;  %v8145_v38 = vor.u32 %v10122_v33, %v8144_v32  ;;  %3318 = vmatpush.bf16.msrb.mxu1 %v7889_v37  ;;  %v145_v32 = vld [vmem:[#allocation2 + $0x78] sm:$0xff]  ;;  %v6997_v33 = vor.u32 %v9830_v13, %v6994_v14  ;;  %v9822_v37 = vld [vmem:[#allocation5 + $0x384] sm:$0xf] }
  0x89   :  { %v10186_v35 = vld [vmem:[#allocation5 + $0xedc] sm:$0xf0]  ;;  %v9734_v14 = vld [vmem:[#allocation5 + $0xc4] sm:$0xf] }
  0x8a   :  { %v7600_v39 = vld [vmem:[#allocation5 + $0x880] sm:$0xf]  ;;  %v8401_v42 = vor.u32 %v10186_v35, %v8400_v34  ;;  %3332 = vmatpush.bf16.msrb.mxu2 %v8145_v38  ;;  %v7253_v34 = vor.u32 %v9894_v15, %v7250_v16  ;;  %v9758_v35 = vld [vmem:[#allocation5 + $0x184] sm:$0xf]  ;;  %v7509_v38 = vor.u32 %v9958_v18, %v7506_v20 }
  0x8b   :  { %v9986_v40 = vld [vmem:[#allocation5 + $0x89c] sm:$0xf0]  ;;  %v6610_v15 = vld [vmem:[#allocation5 + $0xe0] sm:$0xf0] }
  0x8c   :  { %v7856_v41 = vld [vmem:[#allocation5 + $0xa80] sm:$0xf]  ;;  %v7601_v48 = vor.u32 %v9986_v40, %v7600_v39  ;;  %3346 = vmatpush.bf16.msrb.mxu3 %v8401_v42  ;;  %v6962_v40 = vld [vmem:[#allocation5 + $0x3a0] sm:$0xf0] }
  0x8d   :  { %v10050_v43 = vld [vmem:[#allocation5 + $0xa9c] sm:$0xf0]  ;;  %v7218_v42 = vld [vmem:[#allocation5 + $0x5a0] sm:$0xf0] }
  0x8e   :  { %v8112_v44 = vld [vmem:[#allocation5 + $0xc80] sm:$0xf]  ;;  %v7857_v50 = vor.u32 %v10050_v43, %v7856_v41  ;;  %3305 = vmatpush.bf16.msrb.mxu0 %v7601_v48  ;;  %v9886_v41 = vld [vmem:[#allocation5 + $0x584] sm:$0xf]  ;;  %v10825_v43 = vpack.c.bf16 %v144_v26, %v136_v25  ;;  %v6709_v48 = vor.u32 %v9758_v35, %v6706_v36 }
  0x8f   :  { %v10114_v45 = vld [vmem:[#allocation5 + $0xc9c] sm:$0xf0]  ;;  %v9798_v16 = vld [vmem:[#allocation5 + $0x2c4] sm:$0xf] }
  0x90   :  { %v8368_v46 = vld [vmem:[#allocation5 + $0xe80] sm:$0xf]  ;;  %v8113_v51 = vor.u32 %v10114_v45, %v8112_v44  ;;  %3319 = vmatpush.bf16.msrb.mxu1 %v7857_v50  ;;  %v10827_v44 = vpack.c.bf16 %v143_v30, %v135_v27  ;;  %v9950_v45 = vld [vmem:[#allocation5 + $0x784] sm:$0xf]  ;;  %v7221_v50 = vor.u32 %v9886_v41, %v7218_v42 }
  0x91   :  { %v10178_v47 = vld [vmem:[#allocation5 + $0xe9c] sm:$0xf0]  ;;  %v9862_v20 = vld [vmem:[#allocation5 + $0x4c4] sm:$0xf] }
  0x92   :  { %v7568_v49 = vld [vmem:[#allocation5 + $0x840] sm:$0xf]  ;;  %v8369_v55 = vor.u32 %v10178_v47, %v8368_v46  ;;  %3333 = vmatpush.bf16.msrb.mxu2 %v8113_v51  ;;  %v7474_v46 = vld [vmem:[#allocation5 + $0x7a0] sm:$0xf0]  ;;  %v10829_v47 = vpack.c.bf16 %v145_v32, %v137_v31 }
  0x93   :  { %v9978_v52 = vld [vmem:[#allocation5 + $0x85c] sm:$0xf0]  ;;  %v9750_v51 = vld [vmem:[#allocation5 + $0x144] sm:$0xf] }
  0x94   :  { %v7824_v53 = vld [vmem:[#allocation5 + $0xa40] sm:$0xf]  ;;  %v7569_v63 = vor.u32 %v9978_v52, %v7568_v49  ;;  %3347 = vmatpush.bf16.msrb.mxu3 %v8369_v55  ;;  %v6965_v49 = vor.u32 %v9822_v37, %v6962_v40  ;;  %v6674_v52 = vld [vmem:[#allocation5 + $0x160] sm:$0xf0] }
  0x95   :  { %v10042_v54 = vld [vmem:[#allocation5 + $0xa5c] sm:$0xf0]  ;;  %v6930_v55 = vld [vmem:[#allocation5 + $0x360] sm:$0xf0] }
  0x96   :  { %v8080_v56 = vld [vmem:[#allocation5 + $0xc40] sm:$0xf]  ;;  %v7825_v5 = vor.u32 %v10042_v54, %v7824_v53  ;;  %3306 = vmatpush.bf16.msrb.mxu0 %v7569_v63  ;;  %v9814_v53 = vld [vmem:[#allocation5 + $0x344] sm:$0xf]  ;;  %v7477_v54 = vor.u32 %v9950_v45, %v7474_v46 }
  0x97   :  { %v10106_v57 = vld [vmem:[#allocation5 + $0xc5c] sm:$0xf0]  ;;  %v9726_v27 = vld [vmem:[#allocation5 + $0x84] sm:$0xf] }
  0x98   :  { %v8336_v59 = vld [vmem:[#allocation5 + $0xe40] sm:$0xf]  ;;  %v8081_v6 = vor.u32 %v10106_v57, %v8080_v56  ;;  %3320 = vmatpush.bf16.msrb.mxu1 %v7825_v5  ;;  %v9878_v56 = vld [vmem:[#allocation5 + $0x544] sm:$0xf] }
  0x99   :  { %v10170_v60 = vld [vmem:[#allocation5 + $0xe5c] sm:$0xf0]  ;;  %v7186_v57 = vld [vmem:[#allocation5 + $0x560] sm:$0xf0] }
  0x9a   :  { %v7536_v61 = vld [vmem:[#allocation5 + $0x800] sm:$0xf]  ;;  %v8337_v11 = vor.u32 %v10170_v60, %v8336_v59  ;;  %3334 = vmatpush.bf16.msrb.mxu2 %v8081_v6  ;;  %v9942_v59 = vld [vmem:[#allocation5 + $0x744] sm:$0xf]  ;;  %v7189_v63 = vor.u32 %v9878_v56, %v7186_v57 }
  0x9b   :  { %v9970_v62 = vld [vmem:[#allocation5 + $0x81c] sm:$0xf0]  ;;  %v7442_v60 = vld [vmem:[#allocation5 + $0x760] sm:$0xf0] }
  0x9c   :  { %v7792_v0 = vld [vmem:[#allocation5 + $0xa00] sm:$0xf]  ;;  %v7537_v19 = vor.u32 %v9970_v62, %v7536_v61  ;;  %3348 = vmatpush.bf16.msrb.mxu3 %v8337_v11  ;;  %v6677_v61 = vor.u32 %v9750_v51, %v6674_v52  ;;  %v6933_v62 = vor.u32 %v9814_v53, %v6930_v55  ;;  %v6898_v5 = vld [vmem:[#allocation5 + $0x320] sm:$0xf0] }
  0x9d   :  { %v10034_v2 = vld [vmem:[#allocation5 + $0xa1c] sm:$0xf0]  ;;  %v9870_v6 = vld [vmem:[#allocation5 + $0x504] sm:$0xf] }
  0x9e   :  { %v8048_v3 = vld [vmem:[#allocation5 + $0xc00] sm:$0xf]  ;;  %v7793_v23 = vor.u32 %v10034_v2, %v7792_v0  ;;  %3307 = vmatpush.bf16.msrb.mxu0 %v7537_v19  ;;  %v9742_v0 = vld [vmem:[#allocation5 + $0x104] sm:$0xf] }
  0x9f   :  { %v10098_v4 = vld [vmem:[#allocation5 + $0xc1c] sm:$0xf0]  ;;  %v6642_v2 = vld [vmem:[#allocation5 + $0x120] sm:$0xf0] }
  0xa0   :  { %v8304_v7 = vld [vmem:[#allocation5 + $0xe00] sm:$0xf]  ;;  %v8049_v24 = vor.u32 %v10098_v4, %v8048_v3  ;;  %3321 = vmatpush.bf16.msrb.mxu1 %v7793_v23  ;;  %v9806_v3 = vld [vmem:[#allocation5 + $0x304] sm:$0xf]  ;;  %v7445_v4 = vor.u32 %v9942_v59, %v7442_v60  ;;  %v6645_v11 = vor.u32 %v9742_v0, %v6642_v2 }
  0xa1   :  { %v10162_v8 = vld [vmem:[#allocation5 + $0xe1c] sm:$0xf0]  ;;  %v6901_v12 = vor.u32 %v9806_v3, %v6898_v5  ;;  %v6866_v19 = vld [vmem:[#allocation5 + $0x2e0] sm:$0xf0] }
  0xa2   :  { %v134_v21 = vld [vmem:[#allocation2 + $0x20] sm:$0xff]  ;;  %v8305_v28 = vor.u32 %v10162_v8, %v8304_v7  ;;  %3335 = vmatpush.bf16.msrb.mxu2 %v8049_v24  ;;  %3356 = vmatpush.bf16.msra.mxu0 %v6741_v29  ;;  %v6613_v24 = vor.u32 %v9734_v14, %v6610_v15  ;;  %v6869_v25 = vor.u32 %v9798_v16, %v6866_v19 }
  0xa3   :  { %v142_v22 = vld [vmem:[#allocation2 + $0x60] sm:$0xff]  ;;  %3322 = vmatmul.bf16.vlgmr.msrb.gmra.mxu1 %v10827_v44 }
  0xa4   :  { %v10823_v39 = vpack.c.bf16 %v142_v22, %v134_v21  ;;  %3349 = vmatpush.bf16.msrb.mxu3 %v8305_v28  ;;  %3370 = vmatpush.bf16.msra.mxu1 %v6997_v33  ;;  %v7154_v7 = vld [vmem:[#allocation5 + $0x520] sm:$0xf0] }
  0xa5   :  { %3336 = vmatmul.bf16.vlgmr.msrb.gmra.mxu2 %v10825_v43  ;;  %v9934_v8 = vld [vmem:[#allocation5 + $0x704] sm:$0xf]  ;;  %v7157_v13 = vor.u32 %v9870_v6, %v7154_v7 }
  0xa6   :  { %3384 = vmatpush.bf16.msra.mxu2 %v7253_v34  ;;  %3308 = vmatmul.bf16.vlgmr.msrb.gmra.mxu0 %v10823_v39  ;;  %v7413_v18 = vor.u32 %v9934_v8, %v7410_v9  ;;  %v7122_v21 = vld [vmem:[#allocation5 + $0x4e0] sm:$0xf0] }
  0xa7   :  { %3350 = vmatmul.bf16.vlgmr.msrb.gmra.mxu3 %v10829_v47  ;;  %3357 = vmatpush.bf16.msra.mxu0 %v6709_v48  ;;  %v9926_v22 = vld [vmem:[#allocation5 + $0x6c4] sm:$0xf]  ;;  %v7125_v26 = vor.u32 %v9862_v20, %v7122_v21 }
  0xa8   :  { %3398 = vmatpush.bf16.msra.mxu3 %v7509_v38  ;;  %3371 = vmatpush.bf16.msra.mxu1 %v6965_v49  ;;  %v7378_v23 = vld [vmem:[#allocation5 + $0x6e0] sm:$0xf0] }
  0xa9   :  { %v6578_v28 = vld [vmem:[#allocation5 + $0xa0] sm:$0xf0]  ;;  %v7381_v30 = vor.u32 %v9926_v22, %v7378_v23 }
  0xaa   :  { %3385 = vmatpush.bf16.msra.mxu2 %v7221_v50  ;;  %v9790_v29 = vld [vmem:[#allocation5 + $0x284] sm:$0xf]  ;;  %v6581_v36 = vor.u32 %v9726_v27, %v6578_v28 }
  0xab   :  { %3358 = vmatpush.bf16.msra.mxu0 %v6677_v61  ;;  %v6834_v31 = vld [vmem:[#allocation5 + $0x2a0] sm:$0xf0] }
  0xac   :  { %3399 = vmatpush.bf16.msra.mxu3 %v7477_v54  ;;  %3372 = vmatpush.bf16.msra.mxu1 %v6933_v62  ;;  %v9854_v32 = vld [vmem:[#allocation5 + $0x484] sm:$0xf]  ;;  %v6837_v37 = vor.u32 %v9790_v29, %v6834_v31 }
  0xad   :  { %v7090_v33 = vld [vmem:[#allocation5 + $0x4a0] sm:$0xf0] }
  0xae   :  { %3386 = vmatpush.bf16.msra.mxu2 %v7189_v63  ;;  %v9918_v34 = vld [vmem:[#allocation5 + $0x684] sm:$0xf]  ;;  %v7093_v38 = vor.u32 %v9854_v32, %v7090_v33 }
  0xaf   :  { %3359 = vmatpush.bf16.msra.mxu0 %v6645_v11  ;;  %v7346_v35 = vld [vmem:[#allocation5 + $0x6a0] sm:$0xf0] }
  0xb0   :  { %3400 = vmatpush.bf16.msra.mxu3 %v7445_v4  ;;  %3373 = vmatpush.bf16.msra.mxu1 %v6901_v12  ;;  %v9718_v40 = vld [vmem:[#allocation5 + $0x44] sm:$0xf]  ;;  %v7349_v45 = vor.u32 %v9918_v34, %v7346_v35 }
  0xb1   :  { %v6546_v41 = vld [vmem:[#allocation5 + $0x60] sm:$0xf0] }
  0xb2   :  { %3387 = vmatpush.bf16.msra.mxu2 %v7157_v13  ;;  %v9782_v42 = vld [vmem:[#allocation5 + $0x244] sm:$0xf]  ;;  %v6549_v52 = vor.u32 %v9718_v40, %v6546_v41 }
  0xb3   :  { %3360 = vmatpush.bf16.msra.mxu0 %v6613_v24  ;;  %v6802_v46 = vld [vmem:[#allocation5 + $0x260] sm:$0xf0] }
  0xb4   :  { %3401 = vmatpush.bf16.msra.mxu3 %v7413_v18  ;;  %3374 = vmatpush.bf16.msra.mxu1 %v6869_v25  ;;  %v9846_v48 = vld [vmem:[#allocation5 + $0x444] sm:$0xf]  ;;  %v6805_v55 = vor.u32 %v9782_v42, %v6802_v46 }
  0xb5   :  { %v7058_v49 = vld [vmem:[#allocation5 + $0x460] sm:$0xf0] }
  0xb6   :  { %3388 = vmatpush.bf16.msra.mxu2 %v7125_v26  ;;  %v9910_v50 = vld [vmem:[#allocation5 + $0x644] sm:$0xf]  ;;  %v7061_v56 = vor.u32 %v9846_v48, %v7058_v49 }
  0xb7   :  { %v7314_v51 = vld [vmem:[#allocation5 + $0x660] sm:$0xf0]  ;;  %3361 = vmatpush.bf16.msra.mxu0 %v6581_v36 }
  0xb8   :  { %3402 = vmatpush.bf16.msra.mxu3 %v7381_v30  ;;  %v9710_v53 = vld [vmem:[#allocation5 + $0x4] sm:$0xf]  ;;  %3375 = vmatpush.bf16.msra.mxu1 %v6837_v37  ;;  %v7317_v61 = vor.u32 %v9910_v50, %v7314_v51 }
  0xb9   :  { %v6514_v54 = vld [vmem:[#allocation5 + $0x20] sm:$0xf0] }
  0xba   :  { %3389 = vmatpush.bf16.msra.mxu2 %v7093_v38  ;;  %v9774_v57 = vld [vmem:[#allocation5 + $0x204] sm:$0xf]  ;;  %v6517_v5 = vor.u32 %v9710_v53, %v6514_v54 }
  0xbb   :  { %v6770_v59 = vld [vmem:[#allocation5 + $0x220] sm:$0xf0]  ;;  %3362 = vmatpush.bf16.msra.mxu0 %v6549_v52 }
  0xbc   :  { %v9838_v60 = vld [vmem:[#allocation5 + $0x404] sm:$0xf]  ;;  %3403 = vmatpush.bf16.msra.mxu3 %v7349_v45  ;;  %3376 = vmatpush.bf16.msra.mxu1 %v6805_v55  ;;  %v6773_v9 = vor.u32 %v9774_v57, %v6770_v59 }
  0xbd   :  { %v7026_v62 = vld [vmem:[#allocation5 + $0x420] sm:$0xf0] }
  0xbe   :  { %v9902_v63 = vld [vmem:[#allocation5 + $0x604] sm:$0xf]  ;;  %3390 = vmatpush.bf16.msra.mxu2 %v7061_v56  ;;  %v7029_v11 = vor.u32 %v9838_v60, %v7026_v62 }
  0xbf   :  { %v7282_v0 = vld [vmem:[#allocation5 + $0x620] sm:$0xf0]  ;;  %3363 = vmatpush.bf16.msra.mxu0 %v6517_v5 }
  0xc0   :  { %v10022_v2 = vld [vmem:[#allocation5 + $0x9c4] sm:$0xf]  ;;  %3404 = vmatpush.bf16.msra.mxu3 %v7317_v61  ;;  %v7285_v14 = vor.u32 %v9902_v63, %v7282_v0  ;;  %3377 = vmatpush.bf16.msra.mxu1 %v6773_v9 }
  0xc1   :  { %v7762_v3 = vld [vmem:[#allocation5 + $0x9e0] sm:$0xf0] }
  0xc2   :  { %v10086_v4 = vld [vmem:[#allocation5 + $0xbc4] sm:$0xf]  ;;  %v7765_v15 = vor.u32 %v10022_v2, %v7762_v3  ;;  %3391 = vmatpush.bf16.msra.mxu2 %v7029_v11  ;;  %3364 = vmatmul.bf16.vlgmr.msra.gmra.mxu0 %v10811_v58 }
  0xc3   :  { %v8018_v6 = vld [vmem:[#allocation5 + $0xbe0] sm:$0xf0]  ;;  %3378 = vmatmul.bf16.vlgmr.msra.gmra.mxu1 %v10817_v10 }
  0xc4   :  { %v10150_v7 = vld [vmem:[#allocation5 + $0xdc4] sm:$0xf]  ;;  %v8021_v16 = vor.u32 %v10086_v4, %v8018_v6  ;;  %3405 = vmatpush.bf16.msra.mxu3 %v7285_v14  ;;  %3412 = vmatpush.bf16.msrb.mxu0 %v7765_v15 }
  0xc5   :  { %v8274_v8 = vld [vmem:[#allocation5 + $0xde0] sm:$0xf0]  ;;  %3392 = vmatmul.bf16.vlgmr.msra.gmra.mxu2 %v10813_v1 }
  0xc6   :  { %v10214_v12 = vld [vmem:[#allocation5 + $0xfc4] sm:$0xf]  ;;  %v8277_v18 = vor.u32 %v10150_v7, %v8274_v8  ;;  %3426 = vmatpush.bf16.msrb.mxu1 %v8021_v16 }
  0xc7   :  { %v8530_v13 = vld [vmem:[#allocation5 + $0xfe0] sm:$0xf0]  ;;  %3406 = vmatmul.bf16.vlgmr.msra.gmra.mxu3 %v10819_v17 }
  0xc8   :  { %v10014_v19 = vld [vmem:[#allocation5 + $0x984] sm:$0xf]  ;;  %v8533_v22 = vor.u32 %v10214_v12, %v8530_v13  ;;  %3440 = vmatpush.bf16.msrb.mxu2 %v8277_v18 }
  0xc9   :  { %v7730_v20 = vld [vmem:[#allocation5 + $0x9a0] sm:$0xf0] }
  0xca   :  { %v10078_v21 = vld [vmem:[#allocation5 + $0xb84] sm:$0xf]  ;;  %v7733_v28 = vor.u32 %v10014_v19, %v7730_v20  ;;  %3454 = vmatpush.bf16.msrb.mxu3 %v8533_v22 }
  0xcb   :  { %v7986_v23 = vld [vmem:[#allocation5 + $0xba0] sm:$0xf0] }
  0xcc   :  { %v10142_v24 = vld [vmem:[#allocation5 + $0xd84] sm:$0xf]  ;;  %v7989_v29 = vor.u32 %v10078_v21, %v7986_v23  ;;  %3413 = vmatpush.bf16.msrb.mxu0 %v7733_v28 }
  0xcd   :  { %v8242_v25 = vld [vmem:[#allocation5 + $0xda0] sm:$0xf0] }
  0xce   :  { %v10206_v26 = vld [vmem:[#allocation5 + $0xf84] sm:$0xf]  ;;  %v8245_v30 = vor.u32 %v10142_v24, %v8242_v25  ;;  %3427 = vmatpush.bf16.msrb.mxu1 %v7989_v29 }
  0xcf   :  { %v8498_v27 = vld [vmem:[#allocation5 + $0xfa0] sm:$0xf0] }
  0xd0   :  { %v10006_v31 = vld [vmem:[#allocation5 + $0x944] sm:$0xf]  ;;  %v8501_v34 = vor.u32 %v10206_v26, %v8498_v27  ;;  %3441 = vmatpush.bf16.msrb.mxu2 %v8245_v30 }
  0xd1   :  { %v7698_v32 = vld [vmem:[#allocation5 + $0x960] sm:$0xf0] }
  0xd2   :  { %v10070_v33 = vld [vmem:[#allocation5 + $0xb44] sm:$0xf]  ;;  %v7701_v41 = vor.u32 %v10006_v31, %v7698_v32  ;;  %3455 = vmatpush.bf16.msrb.mxu3 %v8501_v34 }
  0xd3   :  { %v7954_v35 = vld [vmem:[#allocation5 + $0xb60] sm:$0xf0] }
  0xd4   :  { %v10134_v36 = vld [vmem:[#allocation5 + $0xd44] sm:$0xf]  ;;  %v7957_v42 = vor.u32 %v10070_v33, %v7954_v35  ;;  %3414 = vmatpush.bf16.msrb.mxu0 %v7701_v41 }
  0xd5   :  { %v8210_v37 = vld [vmem:[#allocation5 + $0xd60] sm:$0xf0] }
  0xd6   :  { %v10198_v38 = vld [vmem:[#allocation5 + $0xf44] sm:$0xf]  ;;  %v8213_v45 = vor.u32 %v10134_v36, %v8210_v37  ;;  %3428 = vmatpush.bf16.msrb.mxu1 %v7957_v42 }
  0xd7   :  { %v8466_v40 = vld [vmem:[#allocation5 + $0xf60] sm:$0xf0] }
  0xd8   :  { %v9998_v46 = vld [vmem:[#allocation5 + $0x904] sm:$0xf]  ;;  %v8469_v50 = vor.u32 %v10198_v38, %v8466_v40  ;;  %3442 = vmatpush.bf16.msrb.mxu2 %v8213_v45 }
  0xd9   :  { %v7666_v48 = vld [vmem:[#allocation5 + $0x920] sm:$0xf0] }
  0xda   :  { %v10062_v49 = vld [vmem:[#allocation5 + $0xb04] sm:$0xf]  ;;  %v7669_v56 = vor.u32 %v9998_v46, %v7666_v48  ;;  %3456 = vmatpush.bf16.msrb.mxu3 %v8469_v50  ;;  %v6744_v48 = vld [vmem:[#allocation5 + $0x1c8] sm:$0xf] }
  0xdb   :  { %v7922_v51 = vld [vmem:[#allocation5 + $0xb20] sm:$0xf0]  ;;  %v7000_v50 = vld [vmem:[#allocation5 + $0x3c8] sm:$0xf] }
  0xdc   :  { %v10126_v52 = vld [vmem:[#allocation5 + $0xd04] sm:$0xf]  ;;  %v7925_v57 = vor.u32 %v10062_v49, %v7922_v51  ;;  %3415 = vmatpush.bf16.msrb.mxu0 %v7669_v56  ;;  %v9771_v49 = vld [vmem:[#allocation5 + $0x1e4] sm:$0xf0] }
  0xdd   :  { %v8178_v53 = vld [vmem:[#allocation5 + $0xd20] sm:$0xf0] }
  0xde   :  { %v10190_v54 = vld [vmem:[#allocation5 + $0xf04] sm:$0xf]  ;;  %v8181_v59 = vor.u32 %v10126_v52, %v8178_v53  ;;  %3429 = vmatpush.bf16.msrb.mxu1 %v7925_v57  ;;  %v9835_v52 = vld [vmem:[#allocation5 + $0x3e4] sm:$0xf0] }
  0xdf   :  { %v8434_v55 = vld [vmem:[#allocation5 + $0xf20] sm:$0xf0]  ;;  %v7256_v53 = vld [vmem:[#allocation5 + $0x5c8] sm:$0xf] }
  0xe0   :  { %v9990_v60 = vld [vmem:[#allocation5 + $0x8c4] sm:$0xf]  ;;  %v8437_v63 = vor.u32 %v10190_v54, %v8434_v55  ;;  %3443 = vmatpush.bf16.msrb.mxu2 %v8181_v59  ;;  %v9899_v54 = vld [vmem:[#allocation5 + $0x5e4] sm:$0xf0] }
  0xe1   :  { %v7634_v61 = vld [vmem:[#allocation5 + $0x8e0] sm:$0xf0]  ;;  %v7512_v57 = vld [vmem:[#allocation5 + $0x7c8] sm:$0xf] }
  0xe2   :  { %v10054_v62 = vld [vmem:[#allocation5 + $0xac4] sm:$0xf]  ;;  %v7637_v6 = vor.u32 %v9990_v60, %v7634_v61  ;;  %3457 = vmatpush.bf16.msrb.mxu3 %v8437_v63  ;;  %v9963_v59 = vld [vmem:[#allocation5 + $0x7e4] sm:$0xf0]  ;;  %v6745_v61 = vor.u32 %v9771_v49, %v6744_v48  ;;  %v7257_v63 = vor.u32 %v9899_v54, %v7256_v53 }
  0xe3   :  { %v7890_v0 = vld [vmem:[#allocation5 + $0xae0] sm:$0xf0]  ;;  %v7128_v48 = vld [vmem:[#allocation5 + $0x4c8] sm:$0xf] }
  0xe4   :  { %v10118_v2 = vld [vmem:[#allocation5 + $0xcc4] sm:$0xf]  ;;  %v7893_v7 = vor.u32 %v10054_v62, %v7890_v0  ;;  %3416 = vmatpush.bf16.msrb.mxu0 %v7637_v6  ;;  %v7001_v62 = vor.u32 %v9835_v52, %v7000_v50  ;;  %v6712_v0 = vld [vmem:[#allocation5 + $0x188] sm:$0xf] }
  0xe5   :  { %v8146_v3 = vld [vmem:[#allocation5 + $0xce0] sm:$0xf0]  ;;  %v7224_v6 = vld [vmem:[#allocation5 + $0x588] sm:$0xf] }
  0xe6   :  { %v10182_v4 = vld [vmem:[#allocation5 + $0xec4] sm:$0xf]  ;;  %v8149_v8 = vor.u32 %v10118_v2, %v8146_v3  ;;  %3430 = vmatpush.bf16.msrb.mxu1 %v7893_v7  ;;  %v9763_v2 = vld [vmem:[#allocation5 + $0x1a4] sm:$0xf0] }
  0xe7   :  { %v8402_v5 = vld [vmem:[#allocation5 + $0xee0] sm:$0xf0]  ;;  %v6968_v3 = vld [vmem:[#allocation5 + $0x388] sm:$0xf] }
  0xe8   :  { %v9982_v9 = vld [vmem:[#allocation5 + $0x884] sm:$0xf]  ;;  %v8405_v13 = vor.u32 %v10182_v4, %v8402_v5  ;;  %3444 = vmatpush.bf16.msrb.mxu2 %v8149_v8  ;;  %v7513_v4 = vor.u32 %v9963_v59, %v7512_v57  ;;  %v9827_v5 = vld [vmem:[#allocation5 + $0x3a4] sm:$0xf0] }
  0xe9   :  { %v7602_v11 = vld [vmem:[#allocation5 + $0x8a0] sm:$0xf0]  ;;  %v9891_v7 = vld [vmem:[#allocation5 + $0x5a4] sm:$0xf0] }
  0xea   :  { %v10046_v12 = vld [vmem:[#allocation5 + $0xa84] sm:$0xf]  ;;  %v7605_v20 = vor.u32 %v9982_v9, %v7602_v11  ;;  %3458 = vmatpush.bf16.msrb.mxu3 %v8405_v13  ;;  %v7480_v8 = vld [vmem:[#allocation5 + $0x788] sm:$0xf]  ;;  %v6713_v11 = vor.u32 %v9763_v2, %v6712_v0  ;;  %v7225_v13 = vor.u32 %v9891_v7, %v7224_v6 }
  0xeb   :  { %v7858_v14 = vld [vmem:[#allocation5 + $0xaa0] sm:$0xf0]  ;;  %v9955_v9 = vld [vmem:[#allocation5 + $0x7a4] sm:$0xf0] }
  0xec   :  { %v10110_v15 = vld [vmem:[#allocation5 + $0xc84] sm:$0xf]  ;;  %v7861_v21 = vor.u32 %v10046_v12, %v7858_v14  ;;  %3417 = vmatpush.bf16.msrb.mxu0 %v7605_v20  ;;  %v6969_v12 = vor.u32 %v9827_v5, %v6968_v3  ;;  %v6680_v14 = vld [vmem:[#allocation5 + $0x148] sm:$0xf] }
  0xed   :  { %v8114_v16 = vld [vmem:[#allocation5 + $0xca0] sm:$0xf0]  ;;  %v7192_v20 = vld [vmem:[#allocation5 + $0x548] sm:$0xf] }
  0xee   :  { %v10174_v18 = vld [vmem:[#allocation5 + $0xe84] sm:$0xf]  ;;  %v8117_v22 = vor.u32 %v10110_v15, %v8114_v16  ;;  %3431 = vmatpush.bf16.msrb.mxu1 %v7861_v21  ;;  %v9755_v15 = vld [vmem:[#allocation5 + $0x164] sm:$0xf0] }
  0xef   :  { %v8370_v19 = vld [vmem:[#allocation5 + $0xea0] sm:$0xf0]  ;;  %v6936_v16 = vld [vmem:[#allocation5 + $0x348] sm:$0xf] }
  0xf0   :  { %v9974_v23 = vld [vmem:[#allocation5 + $0x844] sm:$0xf]  ;;  %v8373_v26 = vor.u32 %v10174_v18, %v8370_v19  ;;  %3445 = vmatpush.bf16.msrb.mxu2 %v8117_v22  ;;  %v7481_v18 = vor.u32 %v9955_v9, %v7480_v8  ;;  %v9819_v19 = vld [vmem:[#allocation5 + $0x364] sm:$0xf0] }
  0xf1   :  { %v7570_v24 = vld [vmem:[#allocation5 + $0x860] sm:$0xf0]  ;;  %v9883_v21 = vld [vmem:[#allocation5 + $0x564] sm:$0xf0] }
  0xf2   :  { %v10038_v25 = vld [vmem:[#allocation5 + $0xa44] sm:$0xf]  ;;  %v7573_v32 = vor.u32 %v9974_v23, %v7570_v24  ;;  %3459 = vmatpush.bf16.msrb.mxu3 %v8373_v26  ;;  %v7448_v22 = vld [vmem:[#allocation5 + $0x748] sm:$0xf]  ;;  %v6681_v24 = vor.u32 %v9755_v15, %v6680_v14  ;;  %v7193_v26 = vor.u32 %v9883_v21, %v7192_v20 }
  0xf3   :  { %v7826_v27 = vld [vmem:[#allocation5 + $0xa60] sm:$0xf0]  ;;  %v9947_v23 = vld [vmem:[#allocation5 + $0x764] sm:$0xf0] }
  0xf4   :  { %v10102_v28 = vld [vmem:[#allocation5 + $0xc44] sm:$0xf]  ;;  %v7829_v35 = vor.u32 %v10038_v25, %v7826_v27  ;;  %3418 = vmatpush.bf16.msrb.mxu0 %v7573_v32  ;;  %v6937_v25 = vor.u32 %v9819_v19, %v6936_v16  ;;  %v6648_v27 = vld [vmem:[#allocation5 + $0x108] sm:$0xf] }
  0xf5   :  { %v8082_v29 = vld [vmem:[#allocation5 + $0xc60] sm:$0xf0]  ;;  %v7160_v32 = vld [vmem:[#allocation5 + $0x508] sm:$0xf] }
  0xf6   :  { %v10166_v30 = vld [vmem:[#allocation5 + $0xe44] sm:$0xf]  ;;  %v8085_v36 = vor.u32 %v10102_v28, %v8082_v29  ;;  %3432 = vmatpush.bf16.msrb.mxu1 %v7829_v35  ;;  %v9747_v28 = vld [vmem:[#allocation5 + $0x124] sm:$0xf0] }
  0xf7   :  { %v8338_v31 = vld [vmem:[#allocation5 + $0xe60] sm:$0xf0]  ;;  %v6904_v29 = vld [vmem:[#allocation5 + $0x308] sm:$0xf] }
  0xf8   :  { %v9966_v33 = vld [vmem:[#allocation5 + $0x804] sm:$0xf]  ;;  %v8341_v41 = vor.u32 %v10166_v30, %v8338_v31  ;;  %3446 = vmatpush.bf16.msrb.mxu2 %v8085_v36  ;;  %v7449_v30 = vor.u32 %v9947_v23, %v7448_v22  ;;  %v9811_v31 = vld [vmem:[#allocation5 + $0x324] sm:$0xf0]  ;;  %v6649_v36 = vor.u32 %v9747_v28, %v6648_v27 }
  0xf9   :  { %v7538_v34 = vld [vmem:[#allocation5 + $0x820] sm:$0xf0]  ;;  %v9939_v35 = vld [vmem:[#allocation5 + $0x724] sm:$0xf0] }
  0xfa   :  { %v10030_v37 = vld [vmem:[#allocation5 + $0xa04] sm:$0xf]  ;;  %v7541_v51 = vor.u32 %v9966_v33, %v7538_v34  ;;  %3460 = vmatpush.bf16.msrb.mxu3 %v8341_v41  ;;  %v9875_v33 = vld [vmem:[#allocation5 + $0x524] sm:$0xf0] }
  0xfb   :  { %v7794_v38 = vld [vmem:[#allocation5 + $0xa20] sm:$0xf0]  ;;  %v7416_v34 = vld [vmem:[#allocation5 + $0x708] sm:$0xf] }
  0xfc   :  { %v10094_v40 = vld [vmem:[#allocation5 + $0xc04] sm:$0xf]  ;;  %v7797_v55 = vor.u32 %v10030_v37, %v7794_v38  ;;  %3419 = vmatpush.bf16.msrb.mxu0 %v7541_v51  ;;  %v6905_v37 = vor.u32 %v9811_v31, %v6904_v29  ;;  %v7161_v38 = vor.u32 %v9875_v33, %v7160_v32  ;;  %v9739_v41 = vld [vmem:[#allocation5 + $0xe4] sm:$0xf0] }
  0xfd   :  { %v8050_v42 = vld [vmem:[#allocation5 + $0xc20] sm:$0xf0]  ;;  %v9867_v49 = vld [vmem:[#allocation5 + $0x4e4] sm:$0xf0] }
  0xfe   :  { %v10158_v45 = vld [vmem:[#allocation5 + $0xe04] sm:$0xf]  ;;  %v8053_v56 = vor.u32 %v10094_v40, %v8050_v42  ;;  %3433 = vmatpush.bf16.msrb.mxu1 %v7797_v55  ;;  %v6616_v40 = vld [vmem:[#allocation5 + $0xc8] sm:$0xf]  ;;  %v7129_v54 = vor.u32 %v9867_v49, %v7128_v48 }
  0xff   :  { %v8306_v46 = vld [vmem:[#allocation5 + $0xe20] sm:$0xf0]  ;;  %3420 = vmatmul.bf16.vlgmr.msrb.gmra.mxu0 %v10823_v39  ;;  %v6872_v42 = vld [vmem:[#allocation5 + $0x2c8] sm:$0xf]  ;;  %v6617_v52 = vor.u32 %v9739_v41, %v6616_v40 }
 0x100   :  { %v8309_v60 = vor.u32 %v10158_v45, %v8306_v46  ;;  %3447 = vmatpush.bf16.msrb.mxu2 %v8053_v56  ;;  %3468 = vmatpush.bf16.msra.mxu0 %v6745_v61  ;;  %v7417_v45 = vor.u32 %v9939_v35, %v7416_v34  ;;  %v9803_v46 = vld [vmem:[#allocation5 + $0x2e4] sm:$0xf0] }
 0x101   :  { %3434 = vmatmul.bf16.vlgmr.msrb.gmra.mxu1 %v10827_v44  ;;  %v7384_v50 = vld [vmem:[#allocation5 + $0x6c8] sm:$0xf]  ;;  %v6873_v53 = vor.u32 %v9803_v46, %v6872_v42 }
 0x102   :  { %3461 = vmatpush.bf16.msrb.mxu3 %v8309_v60  ;;  %3482 = vmatpush.bf16.msra.mxu1 %v7001_v62  ;;  %v9931_v51 = vld [vmem:[#allocation5 + $0x6e4] sm:$0xf0] }
 0x103   :  { %3448 = vmatmul.bf16.vlgmr.msrb.gmra.mxu2 %v10825_v43  ;;  %v6584_v55 = vld [vmem:[#allocation5 + $0x88] sm:$0xf]  ;;  %v7385_v59 = vor.u32 %v9931_v51, %v7384_v50 }
 0x104   :  { %3496 = vmatpush.bf16.msra.mxu2 %v7257_v63  ;;  %3469 = vmatpush.bf16.msra.mxu0 %v6713_v11  ;;  %v9731_v56 = vld [vmem:[#allocation5 + $0xa4] sm:$0xf0] }
 0x105   :  { %3462 = vmatmul.bf16.vlgmr.msrb.gmra.mxu3 %v10829_v47  ;;  %v6840_v57 = vld [vmem:[#allocation5 + $0x288] sm:$0xf]  ;;  %v6585_v2 = vor.u32 %v9731_v56, %v6584_v55 }
 0x106   :  { %3510 = vmatpush.bf16.msra.mxu3 %v7513_v4  ;;  %3483 = vmatpush.bf16.msra.mxu1 %v6969_v12  ;;  %v9795_v60 = vld [vmem:[#allocation5 + $0x2a4] sm:$0xf0] }
 0x107   :  { %v7096_v61 = vld [vmem:[#allocation5 + $0x488] sm:$0xf]  ;;  %v6841_v3 = vor.u32 %v9795_v60, %v6840_v57 }
 0x108   :  { %3497 = vmatpush.bf16.msra.mxu2 %v7225_v13  ;;  %3470 = vmatpush.bf16.msra.mxu0 %v6681_v24  ;;  %v9859_v62 = vld [vmem:[#allocation5 + $0x4a4] sm:$0xf0] }
 0x109   :  { %v7352_v63 = vld [vmem:[#allocation5 + $0x688] sm:$0xf]  ;;  %v7097_v4 = vor.u32 %v9859_v62, %v7096_v61 }
 0x10a   :  { %3511 = vmatpush.bf16.msra.mxu3 %v7481_v18  ;;  %3484 = vmatpush.bf16.msra.mxu1 %v6937_v25  ;;  %v9923_v0 = vld [vmem:[#allocation5 + $0x6a4] sm:$0xf0] }
 0x10b   :  { %v6552_v5 = vld [vmem:[#allocation5 + $0x48] sm:$0xf]  ;;  %v7353_v8 = vor.u32 %v9923_v0, %v7352_v63  ;;  %v10843_v63 = vld [vmem:[#allocation7] sm:$0xff] }
 0x10c   :  { %3498 = vmatpush.bf16.msra.mxu2 %v7193_v26  ;;  %3471 = vmatpush.bf16.msra.mxu0 %v6649_v36  ;;  %v9723_v6 = vld [vmem:[#allocation5 + $0x64] sm:$0xf0] }
 0x10d   :  { %v6808_v7 = vld [vmem:[#allocation5 + $0x248] sm:$0xf]  ;;  %v6553_v15 = vor.u32 %v9723_v6, %v6552_v5 }
 0x10e   :  { %3512 = vmatpush.bf16.msra.mxu3 %v7449_v30  ;;  %3485 = vmatpush.bf16.msra.mxu1 %v6905_v37  ;;  %v9787_v9 = vld [vmem:[#allocation5 + $0x264] sm:$0xf0] }
 0x10f   :  { %v7064_v11 = vld [vmem:[#allocation5 + $0x448] sm:$0xf]  ;;  %v6809_v19 = vor.u32 %v9787_v9, %v6808_v7 }
 0x110   :  { %3499 = vmatpush.bf16.msra.mxu2 %v7161_v38  ;;  %3472 = vmatpush.bf16.msra.mxu0 %v6617_v52  ;;  %v9851_v12 = vld [vmem:[#allocation5 + $0x464] sm:$0xf0] }
 0x111   :  { %v7320_v13 = vld [vmem:[#allocation5 + $0x648] sm:$0xf]  ;;  %v7065_v20 = vor.u32 %v9851_v12, %v7064_v11 }
 0x112   :  { %3513 = vmatpush.bf16.msra.mxu3 %v7417_v45  ;;  %3486 = vmatpush.bf16.msra.mxu1 %v6873_v53  ;;  %v9915_v14 = vld [vmem:[#allocation5 + $0x664] sm:$0xf0] }
 0x113   :  { %v6520_v16 = vld [vmem:[#allocation5 + $0x8] sm:$0xf]  ;;  %v7321_v24 = vor.u32 %v9915_v14, %v7320_v13 }
 0x114   :  { %3500 = vmatpush.bf16.msra.mxu2 %v7129_v54  ;;  %3473 = vmatpush.bf16.msra.mxu0 %v6585_v2  ;;  %v9715_v18 = vld [vmem:[#allocation5 + $0x24] sm:$0xf0] }
 0x115   :  { %v6776_v21 = vld [vmem:[#allocation5 + $0x208] sm:$0xf]  ;;  %v6521_v31 = vor.u32 %v9715_v18, %v6520_v16 }
 0x116   :  { %3514 = vmatpush.bf16.msra.mxu3 %v7385_v59  ;;  %3487 = vmatpush.bf16.msra.mxu1 %v6841_v3  ;;  %v9779_v22 = vld [vmem:[#allocation5 + $0x224] sm:$0xf0] }
 0x117   :  { %v7032_v23 = vld [vmem:[#allocation5 + $0x408] sm:$0xf]  ;;  %v6777_v35 = vor.u32 %v9779_v22, %v6776_v21  ;;  %v3253_v22 = vpop.f32.mrf.mxu0 }
 0x118   :  { %3501 = vmatpush.bf16.msra.mxu2 %v7097_v4  ;;  %v9843_v25 = vld [vmem:[#allocation5 + $0x424] sm:$0xf0]  ;;  %3474 = vmatpush.bf16.msra.mxu0 %v6553_v15 }
 0x119   :  { %v7288_v26 = vld [vmem:[#allocation5 + $0x608] sm:$0xf]  ;;  %v7033_v36 = vor.u32 %v9843_v25, %v7032_v23 }
 0x11a   :  { %3515 = vmatpush.bf16.msra.mxu3 %v7353_v8  ;;  %v9907_v27 = vld [vmem:[#allocation5 + $0x624] sm:$0xf0]  ;;  %3488 = vmatpush.bf16.msra.mxu1 %v6809_v19  ;;  %v11206_v8 = vperm.slane %v10843_v63, 0 }
 0x11b   :  { %v7768_v28 = vld [vmem:[#allocation5 + $0x9c8] sm:$0xf]  ;;  %v7289_v40 = vor.u32 %v9907_v27, %v7288_v26 }
 0x11c   :  { %v10027_v29 = vld [vmem:[#allocation5 + $0x9e4] sm:$0xf0]  ;;  %3502 = vmatpush.bf16.msra.mxu2 %v7065_v20  ;;  %3475 = vmatpush.bf16.msra.mxu0 %v6521_v31 }
 0x11d   :  { %v8024_v30 = vld [vmem:[#allocation5 + $0xbc8] sm:$0xf]  ;;  %v7769_v41 = vor.u32 %v10027_v29, %v7768_v28 }
 0x11e   :  { %v10091_v32 = vld [vmem:[#allocation5 + $0xbe4] sm:$0xf0]  ;;  %3516 = vmatpush.bf16.msra.mxu3 %v7321_v24  ;;  %3489 = vmatpush.bf16.msra.mxu1 %v6777_v35  ;;  %v3254_v24 = vadd.f32 %v3253_v22, %v11206_v8  ;;  %v8258_v8 = vld [vmem:[#allocation5 + $0xdb0] sm:$0xf0] }
 0x11f   :  { %v8280_v33 = vld [vmem:[#allocation5 + $0xdc8] sm:$0xf]  ;;  %v8025_v42 = vor.u32 %v10091_v32, %v8024_v30  ;;  %3476 = vmatmul.bf16.vlgmr.msra.gmra.mxu0 %v10811_v58 }
 0x120   :  { %v10155_v34 = vld [vmem:[#allocation5 + $0xde4] sm:$0xf0]  ;;  %3503 = vmatpush.bf16.msra.mxu2 %v7033_v36  ;;  %3524 = vmatpush.bf16.msrb.mxu0 %v7769_v41  ;;  %v3267_v36 = vpop.f32.mrf.mxu1 }
 0x121   :  { %v8536_v37 = vld [vmem:[#allocation5 + $0xfc8] sm:$0xf]  ;;  %v8281_v45 = vor.u32 %v10155_v34, %v8280_v33  ;;  %3490 = vmatmul.bf16.vlgmr.msra.gmra.mxu1 %v10817_v10 }
 0x122   :  { %v10219_v38 = vld [vmem:[#allocation5 + $0xfe4] sm:$0xf0]  ;;  %3517 = vmatpush.bf16.msra.mxu3 %v7289_v40  ;;  %3538 = vmatpush.bf16.msrb.mxu1 %v8025_v42 }
 0x123   :  { %v7736_v46 = vld [vmem:[#allocation5 + $0x988] sm:$0xf]  ;;  %v8537_v50 = vor.u32 %v10219_v38, %v8536_v37  ;;  %3504 = vmatmul.bf16.vlgmr.msra.gmra.mxu2 %v10813_v1  ;;  %v3268_v38 = vadd.f32 %v3267_v36, %v3254_v24  ;;  %v9767_v24 = vld [vmem:[#allocation5 + $0x1cc] sm:$0xf] }
 0x124   :  { %v10019_v48 = vld [vmem:[#allocation5 + $0x9a4] sm:$0xf0]  ;;  %3552 = vmatpush.bf16.msrb.mxu2 %v8281_v45 }
 0x125   :  { %v7992_v49 = vld [vmem:[#allocation5 + $0xb88] sm:$0xf]  ;;  %v7737_v56 = vor.u32 %v10019_v48, %v7736_v46  ;;  %3518 = vmatmul.bf16.vlgmr.msra.gmra.mxu3 %v10819_v17 }
 0x126   :  { %v10083_v51 = vld [vmem:[#allocation5 + $0xba4] sm:$0xf0]  ;;  %3566 = vmatpush.bf16.msrb.mxu3 %v8537_v50 }
 0x127   :  { %v8248_v52 = vld [vmem:[#allocation5 + $0xd88] sm:$0xf]  ;;  %v7993_v59 = vor.u32 %v10083_v51, %v7992_v49  ;;  %3525 = vmatpush.bf16.msrb.mxu0 %v7737_v56 }
 0x128   :  { %v10147_v53 = vld [vmem:[#allocation5 + $0xda4] sm:$0xf0] }
 0x129   :  { %v8504_v54 = vld [vmem:[#allocation5 + $0xf88] sm:$0xf]  ;;  %v8249_v60 = vor.u32 %v10147_v53, %v8248_v52  ;;  %3539 = vmatpush.bf16.msrb.mxu1 %v7993_v59  ;;  %v3281_v52 = vpop.f32.mrf.mxu2 }
 0x12a   :  { %v10211_v55 = vld [vmem:[#allocation5 + $0xfa4] sm:$0xf0] }
 0x12b   :  { %v7704_v57 = vld [vmem:[#allocation5 + $0x948] sm:$0xf]  ;;  %v8505_v0 = vor.u32 %v10211_v55, %v8504_v54  ;;  %3553 = vmatpush.bf16.msrb.mxu2 %v8249_v60  ;;  %v3282_v55 = vadd.f32 %v3281_v52, %v3268_v38  ;;  %v7482_v52 = vld [vmem:[#allocation5 + $0x7a8] sm:$0xf0] }
 0x12c   :  { %v10011_v61 = vld [vmem:[#allocation5 + $0x964] sm:$0xf0] }
 0x12d   :  { %v7960_v62 = vld [vmem:[#allocation5 + $0xb48] sm:$0xf]  ;;  %v7705_v7 = vor.u32 %v10011_v61, %v7704_v57  ;;  %3567 = vmatpush.bf16.msrb.mxu3 %v8505_v0 }
 0x12e   :  { %v10075_v2 = vld [vmem:[#allocation5 + $0xb64] sm:$0xf0] }
 0x12f   :  { %v8216_v3 = vld [vmem:[#allocation5 + $0xd48] sm:$0xf]  ;;  %v7961_v9 = vor.u32 %v10075_v2, %v7960_v62  ;;  %3526 = vmatpush.bf16.msrb.mxu0 %v7705_v7 }
 0x130   :  { %v10139_v4 = vld [vmem:[#allocation5 + $0xd64] sm:$0xf0] }
 0x131   :  { %v8472_v5 = vld [vmem:[#allocation5 + $0xf48] sm:$0xf]  ;;  %v8217_v11 = vor.u32 %v10139_v4, %v8216_v3  ;;  %3540 = vmatpush.bf16.msrb.mxu1 %v7961_v9 }
 0x132   :  { %v10203_v6 = vld [vmem:[#allocation5 + $0xf64] sm:$0xf0] }
 0x133   :  { %v7672_v12 = vld [vmem:[#allocation5 + $0x908] sm:$0xf]  ;;  %v8473_v15 = vor.u32 %v10203_v6, %v8472_v5  ;;  %3554 = vmatpush.bf16.msrb.mxu2 %v8217_v11  ;;  %v3295_v5 = vpop.f32.mrf.mxu3 }
 0x134   :  { %v10003_v13 = vld [vmem:[#allocation5 + $0x924] sm:$0xf0]  ;;  %v10852_v9 = vadd.f32 %v3295_v5, %v3282_v55 }
 0x135   :  { %v7928_v14 = vld [vmem:[#allocation5 + $0xb08] sm:$0xf]  ;;  %v7673_v23 = vor.u32 %v10003_v13, %v7672_v12  ;;  %3568 = vmatpush.bf16.msrb.mxu3 %v8473_v15 }
 0x136   :  { %v10067_v16 = vld [vmem:[#allocation5 + $0xb24] sm:$0xf0] }
 0x137   :  { %v8184_v18 = vld [vmem:[#allocation5 + $0xd08] sm:$0xf]  ;;  %v7929_v25 = vor.u32 %v10067_v16, %v7928_v14  ;;  %3527 = vmatpush.bf16.msrb.mxu0 %v7673_v23 }
 0x138   :  { %v10131_v19 = vld [vmem:[#allocation5 + $0xd24] sm:$0xf0] }
 0x139   :  { %v8440_v20 = vld [vmem:[#allocation5 + $0xf08] sm:$0xf]  ;;  %v8185_v26 = vor.u32 %v10131_v19, %v8184_v18  ;;  %3541 = vmatpush.bf16.msrb.mxu1 %v7929_v25  ;;  %v6746_v25 = vld [vmem:[#allocation5 + $0x1e8] sm:$0xf0] }
 0x13a   :  { %v10195_v21 = vld [vmem:[#allocation5 + $0xf24] sm:$0xf0]  ;;  %v6749_v36 = vor.u32 %v9767_v24, %v6746_v25 }
 0x13b   :  { %v7640_v27 = vld [vmem:[#allocation5 + $0x8c8] sm:$0xf]  ;;  %v8441_v30 = vor.u32 %v10195_v21, %v8440_v20  ;;  %3555 = vmatpush.bf16.msrb.mxu2 %v8185_v26  ;;  %v9831_v26 = vld [vmem:[#allocation5 + $0x3cc] sm:$0xf] }
 0x13c   :  { %v9995_v28 = vld [vmem:[#allocation5 + $0x8e4] sm:$0xf0] }
 0x13d   :  { %v7896_v29 = vld [vmem:[#allocation5 + $0xac8] sm:$0xf]  ;;  %v7641_v37 = vor.u32 %v9995_v28, %v7640_v27  ;;  %3569 = vmatpush.bf16.msrb.mxu3 %v8441_v30  ;;  %v7002_v28 = vld [vmem:[#allocation5 + $0x3e8] sm:$0xf0] }
 0x13e   :  { %v10059_v31 = vld [vmem:[#allocation5 + $0xae4] sm:$0xf0]  ;;  %v7258_v30 = vld [vmem:[#allocation5 + $0x5e8] sm:$0xf0] }
 0x13f   :  { %v8152_v32 = vld [vmem:[#allocation5 + $0xcc8] sm:$0xf]  ;;  %v7897_v40 = vor.u32 %v10059_v31, %v7896_v29  ;;  %3528 = vmatpush.bf16.msrb.mxu0 %v7641_v37  ;;  %v9895_v29 = vld [vmem:[#allocation5 + $0x5cc] sm:$0xf]  ;;  %v7005_v37 = vor.u32 %v9831_v26, %v7002_v28 }
 0x140   :  { %v10123_v33 = vld [vmem:[#allocation5 + $0xce4] sm:$0xf0]  ;;  %v7261_v38 = vor.u32 %v9895_v29, %v7258_v30  ;;  %v9735_v29 = vld [vmem:[#allocation5 + $0xcc] sm:$0xf] }
 0x141   :  { %v8408_v34 = vld [vmem:[#allocation5 + $0xec8] sm:$0xf]  ;;  %v8153_v41 = vor.u32 %v10123_v33, %v8152_v32  ;;  %3542 = vmatpush.bf16.msrb.mxu1 %v7897_v40  ;;  %v9959_v33 = vld [vmem:[#allocation5 + $0x7cc] sm:$0xf]  ;;  %v10854_v40 = vpop.f32.mrf.mxu0 }
 0x142   :  { %v10187_v35 = vld [vmem:[#allocation5 + $0xee4] sm:$0xf0]  ;;  %v6618_v30 = vld [vmem:[#allocation5 + $0xe8] sm:$0xf0] }
 0x143   :  { %v7608_v42 = vld [vmem:[#allocation5 + $0x888] sm:$0xf]  ;;  %v8409_v48 = vor.u32 %v10187_v35, %v8408_v34  ;;  %3556 = vmatpush.bf16.msrb.mxu2 %v8153_v41  ;;  %v7514_v34 = vld [vmem:[#allocation5 + $0x7e8] sm:$0xf0] }
 0x144   :  { %v9987_v45 = vld [vmem:[#allocation5 + $0x8a4] sm:$0xf0]  ;;  %v9759_v41 = vld [vmem:[#allocation5 + $0x18c] sm:$0xf] }
 0x145   :  { %v7864_v46 = vld [vmem:[#allocation5 + $0xa88] sm:$0xf]  ;;  %v7609_v56 = vor.u32 %v9987_v45, %v7608_v42  ;;  %3570 = vmatpush.bf16.msrb.mxu3 %v8409_v48  ;;  %v6714_v42 = vld [vmem:[#allocation5 + $0x1a8] sm:$0xf0] }
 0x146   :  { %v10051_v49 = vld [vmem:[#allocation5 + $0xaa4] sm:$0xf0]  ;;  %v9823_v45 = vld [vmem:[#allocation5 + $0x38c] sm:$0xf] }
 0x147   :  { %v8120_v50 = vld [vmem:[#allocation5 + $0xc88] sm:$0xf]  ;;  %v7865_v57 = vor.u32 %v10051_v49, %v7864_v46  ;;  %3529 = vmatpush.bf16.msrb.mxu0 %v7609_v56  ;;  %v7517_v46 = vor.u32 %v9959_v33, %v7514_v34  ;;  %v6970_v48 = vld [vmem:[#allocation5 + $0x3a8] sm:$0xf0] }
 0x148   :  { %v10115_v51 = vld [vmem:[#allocation5 + $0xca4] sm:$0xf0]  ;;  %v9887_v49 = vld [vmem:[#allocation5 + $0x58c] sm:$0xf]  ;;  %v6973_v55 = vor.u32 %v9823_v45, %v6970_v48 }
 0x149   :  { %v8376_v53 = vld [vmem:[#allocation5 + $0xe88] sm:$0xf]  ;;  %v8121_v59 = vor.u32 %v10115_v51, %v8120_v50  ;;  %3543 = vmatpush.bf16.msrb.mxu1 %v7865_v57  ;;  %v7226_v50 = vld [vmem:[#allocation5 + $0x5a8] sm:$0xf0] }
 0x14a   :  { %v10179_v54 = vld [vmem:[#allocation5 + $0xea4] sm:$0xf0]  ;;  %v9951_v51 = vld [vmem:[#allocation5 + $0x78c] sm:$0xf]  ;;  %v7229_v56 = vor.u32 %v9887_v49, %v7226_v50 }
 0x14b   :  { %v7576_v60 = vld [vmem:[#allocation5 + $0x848] sm:$0xf]  ;;  %v8377_v0 = vor.u32 %v10179_v54, %v8376_v53  ;;  %3557 = vmatpush.bf16.msrb.mxu2 %v8121_v59  ;;  %v10856_v53 = vpop.f32.mrf.mxu1  ;;  %v6717_v54 = vor.u32 %v9759_v41, %v6714_v42  ;;  %v9751_v57 = vld [vmem:[#allocation5 + $0x14c] sm:$0xf]  ;;  %v6621_v41 = vor.u32 %v9735_v29, %v6618_v30 }
 0x14c   :  { %v9979_v61 = vld [vmem:[#allocation5 + $0x864] sm:$0xf0]  ;;  %v6682_v59 = vld [vmem:[#allocation5 + $0x168] sm:$0xf0] }
 0x14d   :  { %v7832_v62 = vld [vmem:[#allocation5 + $0xa48] sm:$0xf]  ;;  %v7577_v11 = vor.u32 %v9979_v61, %v7576_v60  ;;  %3571 = vmatpush.bf16.msrb.mxu3 %v8377_v0  ;;  %v9815_v60 = vld [vmem:[#allocation5 + $0x34c] sm:$0xf]  ;;  %v7485_v61 = vor.u32 %v9951_v51, %v7482_v52  ;;  %v6685_v5 = vor.u32 %v9751_v57, %v6682_v59 }
 0x14e   :  { %v10043_v2 = vld [vmem:[#allocation5 + $0xa64] sm:$0xf0]  ;;  %v9879_v0 = vld [vmem:[#allocation5 + $0x54c] sm:$0xf] }
 0x14f   :  { %v8088_v3 = vld [vmem:[#allocation5 + $0xc48] sm:$0xf]  ;;  %v7833_v14 = vor.u32 %v10043_v2, %v7832_v62  ;;  %3530 = vmatpush.bf16.msrb.mxu0 %v7577_v11  ;;  %v6938_v62 = vld [vmem:[#allocation5 + $0x368] sm:$0xf0] }
 0x150   :  { %v10107_v4 = vld [vmem:[#allocation5 + $0xc64] sm:$0xf0]  ;;  %v7194_v2 = vld [vmem:[#allocation5 + $0x568] sm:$0xf0] }
 0x151   :  { %v8344_v6 = vld [vmem:[#allocation5 + $0xe48] sm:$0xf]  ;;  %v8089_v15 = vor.u32 %v10107_v4, %v8088_v3  ;;  %3544 = vmatpush.bf16.msrb.mxu1 %v7833_v14  ;;  %v9943_v3 = vld [vmem:[#allocation5 + $0x74c] sm:$0xf]  ;;  %v7197_v11 = vor.u32 %v9879_v0, %v7194_v2 }
 0x152   :  { %v10171_v7 = vld [vmem:[#allocation5 + $0xe64] sm:$0xf0]  ;;  %v7450_v4 = vld [vmem:[#allocation5 + $0x768] sm:$0xf0] }
 0x153   :  { %v7544_v12 = vld [vmem:[#allocation5 + $0x808] sm:$0xf]  ;;  %v8345_v20 = vor.u32 %v10171_v7, %v8344_v6  ;;  %3558 = vmatpush.bf16.msrb.mxu2 %v8089_v15  ;;  %v10862_v6 = vpop.f32.mrf.mxu2  ;;  %v6941_v7 = vor.u32 %v9815_v60, %v6938_v62  ;;  %v9807_v14 = vld [vmem:[#allocation5 + $0x30c] sm:$0xf]  ;;  %v7453_v15 = vor.u32 %v9943_v3, %v7450_v4  ;;  %v3323_v28 = vpop.f32.mrf.mxu1 }
 0x154   :  { %v9971_v13 = vld [vmem:[#allocation5 + $0x824] sm:$0xf0]  ;;  %v6874_v34 = vld [vmem:[#allocation5 + $0x2e8] sm:$0xf0] }
 0x155   :  { %v7800_v16 = vld [vmem:[#allocation5 + $0xa08] sm:$0xf]  ;;  %v7545_v27 = vor.u32 %v9971_v13, %v7544_v12  ;;  %3572 = vmatpush.bf16.msrb.mxu3 %v8345_v20  ;;  %v9743_v12 = vld [vmem:[#allocation5 + $0x10c] sm:$0xf] }
 0x156   :  { %v10035_v18 = vld [vmem:[#allocation5 + $0xa24] sm:$0xf0]  ;;  %v6650_v13 = vld [vmem:[#allocation5 + $0x128] sm:$0xf0] }
 0x157   :  { %v8056_v19 = vld [vmem:[#allocation5 + $0xc08] sm:$0xf]  ;;  %v7801_v31 = vor.u32 %v10035_v18, %v7800_v16  ;;  %3531 = vmatpush.bf16.msrb.mxu0 %v7545_v27  ;;  %v10864_v16 = vpop.f32.mrf.mxu3  ;;  %v6906_v18 = vld [vmem:[#allocation5 + $0x328] sm:$0xf0]  ;;  %v6653_v25 = vor.u32 %v9743_v12, %v6650_v13 }
 0x158   :  { %v10099_v21 = vld [vmem:[#allocation5 + $0xc24] sm:$0xf0]  ;;  %v7162_v20 = vld [vmem:[#allocation5 + $0x528] sm:$0xf0]  ;;  %v6909_v26 = vor.u32 %v9807_v14, %v6906_v18 }
 0x159   :  { %v8312_v22 = vld [vmem:[#allocation5 + $0xe08] sm:$0xf]  ;;  %v8057_v32 = vor.u32 %v10099_v21, %v8056_v19  ;;  %3545 = vmatpush.bf16.msrb.mxu1 %v7801_v31  ;;  %v9871_v19 = vld [vmem:[#allocation5 + $0x50c] sm:$0xf]  ;;  %v3309_v21 = vpop.f32.mrf.mxu0 }
 0x15a   :  { %v10163_v23 = vld [vmem:[#allocation5 + $0xe24] sm:$0xf0]  ;;  %3532 = vmatmul.bf16.vlgmr.msrb.gmra.mxu0 %v10823_v39  ;;  %v3310_v24 = vadd.f32 %v3309_v21, %v10852_v9  ;;  %v7165_v27 = vor.u32 %v9871_v19, %v7162_v20  ;;  %v9799_v31 = vld [vmem:[#allocation5 + $0x2cc] sm:$0xf] }
 0x15b   :  { %v8313_v35 = vor.u32 %v10163_v23, %v8312_v22  ;;  %3559 = vmatpush.bf16.msrb.mxu2 %v8057_v32  ;;  %3580 = vmatpush.bf16.msra.mxu0 %v6749_v36  ;;  %v9935_v22 = vld [vmem:[#allocation5 + $0x70c] sm:$0xf]  ;;  %v6877_v9 = vor.u32 %v9799_v31, %v6874_v34  ;;  %v3337_v50 = vpop.f32.mrf.mxu2 }
 0x15c   :  { %3546 = vmatmul.bf16.vlgmr.msrb.gmra.mxu1 %v10827_v44  ;;  %v7418_v23 = vld [vmem:[#allocation5 + $0x728] sm:$0xf0]  ;;  %v3324_v33 = vadd.f32 %v3323_v28, %v3310_v24 }
 0x15d   :  { %3573 = vmatpush.bf16.msrb.mxu3 %v8313_v35  ;;  %3594 = vmatpush.bf16.msra.mxu1 %v7005_v37  ;;  %v7421_v32 = vor.u32 %v9935_v22, %v7418_v23  ;;  %v9863_v35 = vld [vmem:[#allocation5 + $0x4cc] sm:$0xf] }
 0x15e   :  { %3560 = vmatmul.bf16.vlgmr.msrb.gmra.mxu2 %v10825_v43  ;;  %v7130_v36 = vld [vmem:[#allocation5 + $0x4e8] sm:$0xf0] }
 0x15f   :  { %3608 = vmatpush.bf16.msra.mxu2 %v7261_v38  ;;  %3581 = vmatpush.bf16.msra.mxu0 %v6717_v54  ;;  %v9927_v37 = vld [vmem:[#allocation5 + $0x6cc] sm:$0xf]  ;;  %v7133_v42 = vor.u32 %v9863_v35, %v7130_v36  ;;  %v3351_v59 = vpop.f32.mrf.mxu3 }
 0x160   :  { %3574 = vmatmul.bf16.vlgmr.msrb.gmra.mxu3 %v10829_v47  ;;  %v7386_v38 = vld [vmem:[#allocation5 + $0x6e8] sm:$0xf0] }
 0x161   :  { %3622 = vmatpush.bf16.msra.mxu3 %v7517_v46  ;;  %3595 = vmatpush.bf16.msra.mxu1 %v6973_v55  ;;  %v9727_v45 = vld [vmem:[#allocation5 + $0x8c] sm:$0xf]  ;;  %v7389_v49 = vor.u32 %v9927_v37, %v7386_v38  ;;  %v3338_v55 = vadd.f32 %v3337_v50, %v3324_v33 }
 0x162   :  { %v6586_v46 = vld [vmem:[#allocation5 + $0xa8] sm:$0xf0] }
 0x163   :  { %3609 = vmatpush.bf16.msra.mxu2 %v7229_v56  ;;  %3582 = vmatpush.bf16.msra.mxu0 %v6685_v5  ;;  %v9791_v48 = vld [vmem:[#allocation5 + $0x28c] sm:$0xf]  ;;  %v6589_v60 = vor.u32 %v9727_v45, %v6586_v46 }
 0x164   :  { %v6842_v51 = vld [vmem:[#allocation5 + $0x2a8] sm:$0xf0] }
 0x165   :  { %3623 = vmatpush.bf16.msra.mxu3 %v7485_v61  ;;  %3596 = vmatpush.bf16.msra.mxu1 %v6941_v7  ;;  %v9855_v52 = vld [vmem:[#allocation5 + $0x48c] sm:$0xf]  ;;  %v10867_v61 = vadd.f32 %v3351_v59, %v3338_v55  ;;  %v6845_v62 = vor.u32 %v9791_v48, %v6842_v51 }
 0x166   :  { %v7098_v54 = vld [vmem:[#allocation5 + $0x4a8] sm:$0xf0] }
 0x167   :  { %3610 = vmatpush.bf16.msra.mxu2 %v7197_v11  ;;  %3583 = vmatpush.bf16.msra.mxu0 %v6653_v25  ;;  %v9919_v56 = vld [vmem:[#allocation5 + $0x68c] sm:$0xf]  ;;  %11208 = vst [vmem:[#allocation20_spill] sm:$0xff] %v10867_v61  ;;  %v7101_v0 = vor.u32 %v9855_v52, %v7098_v54  ;;  %v6730_v61 = vld [vmem:[#allocation5 + $0x1b8] sm:$0xf0] }
 0x168   :  { %v7354_v57 = vld [vmem:[#allocation5 + $0x6a8] sm:$0xf0] }
 0x169   :  { %3624 = vmatpush.bf16.msra.mxu3 %v7453_v15  ;;  %3597 = vmatpush.bf16.msra.mxu1 %v6909_v26  ;;  %v9719_v2 = vld [vmem:[#allocation5 + $0x4c] sm:$0xf]  ;;  %v7357_v5 = vor.u32 %v9919_v56, %v7354_v57  ;;  %v10869_v56 = vpop.f32.mrf.mxu0 }
 0x16a   :  { %v6554_v3 = vld [vmem:[#allocation5 + $0x68] sm:$0xf0] }
 0x16b   :  { %3611 = vmatpush.bf16.msra.mxu2 %v7165_v27  ;;  %3584 = vmatpush.bf16.msra.mxu0 %v6621_v41  ;;  %v9783_v4 = vld [vmem:[#allocation5 + $0x24c] sm:$0xf]  ;;  %v6557_v15 = vor.u32 %v9719_v2, %v6554_v3 }
 0x16c   :  { %v6810_v7 = vld [vmem:[#allocation5 + $0x268] sm:$0xf0] }
 0x16d   :  { %3625 = vmatpush.bf16.msra.mxu3 %v7421_v32  ;;  %3598 = vmatpush.bf16.msra.mxu1 %v6877_v9  ;;  %v9847_v11 = vld [vmem:[#allocation5 + $0x44c] sm:$0xf]  ;;  %v6813_v20 = vor.u32 %v9783_v4, %v6810_v7 }
 0x16e   :  { %v7066_v12 = vld [vmem:[#allocation5 + $0x468] sm:$0xf0] }
 0x16f   :  { %3612 = vmatpush.bf16.msra.mxu2 %v7133_v42  ;;  %v9911_v13 = vld [vmem:[#allocation5 + $0x64c] sm:$0xf]  ;;  %3585 = vmatpush.bf16.msra.mxu0 %v6589_v60  ;;  %v7069_v21 = vor.u32 %v9847_v11, %v7066_v12 }
 0x170   :  { %v7322_v14 = vld [vmem:[#allocation5 + $0x668] sm:$0xf0] }
 0x171   :  { %3626 = vmatpush.bf16.msra.mxu3 %v7389_v49  ;;  %v9711_v18 = vld [vmem:[#allocation5 + $0xc] sm:$0xf]  ;;  %3599 = vmatpush.bf16.msra.mxu1 %v6845_v62  ;;  %v7325_v25 = vor.u32 %v9911_v13, %v7322_v14  ;;  %v10871_v62 = vpop.f32.mrf.mxu1 }
 0x172   :  { %v6522_v19 = vld [vmem:[#allocation5 + $0x28] sm:$0xf0] }
 0x173   :  { %3613 = vmatpush.bf16.msra.mxu2 %v7101_v0  ;;  %v9775_v22 = vld [vmem:[#allocation5 + $0x20c] sm:$0xf]  ;;  %3586 = vmatpush.bf16.msra.mxu0 %v6557_v15  ;;  %v6525_v32 = vor.u32 %v9711_v18, %v6522_v19  ;;  %v11205_v19 = vperm.slane %v10843_v63, 1 }
 0x174   :  { %v6778_v23 = vld [vmem:[#allocation5 + $0x228] sm:$0xf0] }
 0x175   :  { %v9839_v24 = vld [vmem:[#allocation5 + $0x40c] sm:$0xf]  ;;  %3627 = vmatpush.bf16.msra.mxu3 %v7357_v5  ;;  %3600 = vmatpush.bf16.msra.mxu1 %v6813_v20  ;;  %v6781_v36 = vor.u32 %v9775_v22, %v6778_v23 }
 0x176   :  { %v7034_v26 = vld [vmem:[#allocation5 + $0x428] sm:$0xf0] }
 0x177   :  { %v9903_v27 = vld [vmem:[#allocation5 + $0x60c] sm:$0xf]  ;;  %3614 = vmatpush.bf16.msra.mxu2 %v7069_v21  ;;  %v7037_v37 = vor.u32 %v9839_v24, %v7034_v26  ;;  %3587 = vmatpush.bf16.msra.mxu0 %v6525_v32  ;;  %v3365_v32 = vpop.f32.mrf.mxu0 }
 0x178   :  { %v7290_v28 = vld [vmem:[#allocation5 + $0x628] sm:$0xf0] }
 0x179   :  { %v10023_v29 = vld [vmem:[#allocation5 + $0x9cc] sm:$0xf]  ;;  %3628 = vmatpush.bf16.msra.mxu3 %v7325_v25  ;;  %v7293_v9 = vor.u32 %v9903_v27, %v7290_v28  ;;  %3601 = vmatpush.bf16.msra.mxu1 %v6781_v36  ;;  %v10878_v25 = vpop.f32.mrf.mxu2 }
 0x17a   :  { %v7770_v30 = vld [vmem:[#allocation5 + $0x9e8] sm:$0xf0]  ;;  %3588 = vmatmul.bf16.vlgmr.msra.gmra.mxu0 %v10811_v58 }
 0x17b   :  { %v10087_v31 = vld [vmem:[#allocation5 + $0xbcc] sm:$0xf]  ;;  %v7773_v42 = vor.u32 %v10023_v29, %v7770_v30  ;;  %3615 = vmatpush.bf16.msra.mxu2 %v7037_v37 }
 0x17c   :  { %v8026_v33 = vld [vmem:[#allocation5 + $0xbe8] sm:$0xf0]  ;;  %3602 = vmatmul.bf16.vlgmr.msra.gmra.mxu1 %v10817_v10 }
 0x17d   :  { %v10151_v34 = vld [vmem:[#allocation5 + $0xdcc] sm:$0xf]  ;;  %v8029_v45 = vor.u32 %v10087_v31, %v8026_v33  ;;  %3629 = vmatpush.bf16.msra.mxu3 %v7293_v9  ;;  %3636 = vmatpush.bf16.msrb.mxu0 %v7773_v42  ;;  %v10880_v33 = vpop.f32.mrf.mxu3  ;;  %v3379_v42 = vpop.f32.mrf.mxu1 }
 0x17e   :  { %v8282_v35 = vld [vmem:[#allocation5 + $0xde8] sm:$0xf0]  ;;  %3616 = vmatmul.bf16.vlgmr.msra.gmra.mxu2 %v10813_v1  ;;  %11209 = vst [vmem:[#allocation21_spill] sm:$0xff] %v10880_v33 }
 0x17f   :  { %v10215_v38 = vld [vmem:[#allocation5 + $0xfcc] sm:$0xf]  ;;  %v8285_v46 = vor.u32 %v10151_v34, %v8282_v35  ;;  %3650 = vmatpush.bf16.msrb.mxu1 %v8029_v45  ;;  %v3366_v35 = vadd.f32 %v3365_v32, %v11205_v19  ;;  %v10080_v19 = vld [vmem:[#allocation5 + $0xb94] sm:$0xf] }
 0x180   :  { %v8538_v41 = vld [vmem:[#allocation5 + $0xfe8] sm:$0xf0]  ;;  %3630 = vmatmul.bf16.vlgmr.msra.gmra.mxu3 %v10819_v17 }
 0x181   :  { %v10015_v48 = vld [vmem:[#allocation5 + $0x98c] sm:$0xf]  ;;  %v8541_v51 = vor.u32 %v10215_v38, %v8538_v41  ;;  %3664 = vmatpush.bf16.msrb.mxu2 %v8285_v46 }
 0x182   :  { %v7738_v49 = vld [vmem:[#allocation5 + $0x9a8] sm:$0xf0] }
 0x183   :  { %v10079_v50 = vld [vmem:[#allocation5 + $0xb8c] sm:$0xf]  ;;  %v7741_v60 = vor.u32 %v10015_v48, %v7738_v49  ;;  %3678 = vmatpush.bf16.msrb.mxu3 %v8541_v51 }
 0x184   :  { %v7994_v52 = vld [vmem:[#allocation5 + $0xba8] sm:$0xf0] }
 0x185   :  { %v10143_v54 = vld [vmem:[#allocation5 + $0xd8c] sm:$0xf]  ;;  %v7997_v0 = vor.u32 %v10079_v50, %v7994_v52  ;;  %3637 = vmatpush.bf16.msrb.mxu0 %v7741_v60  ;;  %v3380_v50 = vadd.f32 %v3379_v42, %v3366_v35 }
 0x186   :  { %v8250_v55 = vld [vmem:[#allocation5 + $0xda8] sm:$0xf0] }
 0x187   :  { %v10207_v57 = vld [vmem:[#allocation5 + $0xf8c] sm:$0xf]  ;;  %v8253_v2 = vor.u32 %v10143_v54, %v8250_v55  ;;  %3651 = vmatpush.bf16.msrb.mxu1 %v7997_v0 }
 0x188   :  { %v8506_v59 = vld [vmem:[#allocation5 + $0xfa8] sm:$0xf0] }
 0x189   :  { %v10007_v3 = vld [vmem:[#allocation5 + $0x94c] sm:$0xf]  ;;  %v8509_v7 = vor.u32 %v10207_v57, %v8506_v59  ;;  %3665 = vmatpush.bf16.msrb.mxu2 %v8253_v2 }
 0x18a   :  { %v7706_v4 = vld [vmem:[#allocation5 + $0x968] sm:$0xf0] }
 0x18b   :  { %v10071_v5 = vld [vmem:[#allocation5 + $0xb4c] sm:$0xf]  ;;  %v7709_v18 = vor.u32 %v10007_v3, %v7706_v4  ;;  %3679 = vmatpush.bf16.msrb.mxu3 %v8509_v7  ;;  %v3393_v7 = vpop.f32.mrf.mxu2 }
 0x18c   :  { %v7962_v11 = vld [vmem:[#allocation5 + $0xb68] sm:$0xf0] }
 0x18d   :  { %v10135_v12 = vld [vmem:[#allocation5 + $0xd4c] sm:$0xf]  ;;  %v7965_v20 = vor.u32 %v10071_v5, %v7962_v11  ;;  %3638 = vmatpush.bf16.msrb.mxu0 %v7709_v18 }
 0x18e   :  { %v8218_v13 = vld [vmem:[#allocation5 + $0xd68] sm:$0xf0] }
 0x18f   :  { %v10199_v14 = vld [vmem:[#allocation5 + $0xf4c] sm:$0xf]  ;;  %v8221_v21 = vor.u32 %v10135_v12, %v8218_v13  ;;  %3652 = vmatpush.bf16.msrb.mxu1 %v7965_v20  ;;  %v3394_v13 = vadd.f32 %v3393_v7, %v3380_v50  ;;  %v9772_v50 = vld [vmem:[#allocation5 + $0x1ec] sm:$0xf0] }
 0x190   :  { %v8474_v15 = vld [vmem:[#allocation5 + $0xf68] sm:$0xf0] }
 0x191   :  { %v9999_v22 = vld [vmem:[#allocation5 + $0x90c] sm:$0xf]  ;;  %v8477_v26 = vor.u32 %v10199_v14, %v8474_v15  ;;  %3666 = vmatpush.bf16.msrb.mxu2 %v8221_v21  ;;  %v3407_v15 = vpop.f32.mrf.mxu3 }
 0x192   :  { %v7674_v23 = vld [vmem:[#allocation5 + $0x928] sm:$0xf0] }
 0x193   :  { %v10063_v24 = vld [vmem:[#allocation5 + $0xb0c] sm:$0xf]  ;;  %v7677_v34 = vor.u32 %v9999_v22, %v7674_v23  ;;  %3680 = vmatpush.bf16.msrb.mxu3 %v8477_v26 }
 0x194   :  { %v7930_v27 = vld [vmem:[#allocation5 + $0xb28] sm:$0xf0] }
 0x195   :  { %v10127_v28 = vld [vmem:[#allocation5 + $0xd0c] sm:$0xf]  ;;  %v7933_v36 = vor.u32 %v10063_v24, %v7930_v27  ;;  %3639 = vmatpush.bf16.msrb.mxu0 %v7677_v34  ;;  %v10884_v24 = vadd.f32 %v3407_v15, %v3394_v13  ;;  %v9764_v13 = vld [vmem:[#allocation5 + $0x1ac] sm:$0xf0] }
 0x196   :  { %v8186_v29 = vld [vmem:[#allocation5 + $0xd28] sm:$0xf0] }
 0x197   :  { %v10191_v30 = vld [vmem:[#allocation5 + $0xf0c] sm:$0xf]  ;;  %v8189_v37 = vor.u32 %v10127_v28, %v8186_v29  ;;  %3653 = vmatpush.bf16.msrb.mxu1 %v7933_v36 }
 0x198   :  { %v8442_v31 = vld [vmem:[#allocation5 + $0xf28] sm:$0xf0] }
 0x199   :  { %v9991_v38 = vld [vmem:[#allocation5 + $0x8cc] sm:$0xf]  ;;  %v8445_v45 = vor.u32 %v10191_v30, %v8442_v31  ;;  %3667 = vmatpush.bf16.msrb.mxu2 %v8189_v37 }
 0x19a   :  { %v7642_v41 = vld [vmem:[#allocation5 + $0x8e8] sm:$0xf0] }
 0x19b   :  { %v10055_v9 = vld [vmem:[#allocation5 + $0xacc] sm:$0xf]  ;;  %v7645_v54 = vor.u32 %v9991_v38, %v7642_v41  ;;  %3681 = vmatpush.bf16.msrb.mxu3 %v8445_v45 }
 0x19c   :  { %v7898_v46 = vld [vmem:[#allocation5 + $0xae8] sm:$0xf0] }
 0x19d   :  { %v10119_v48 = vld [vmem:[#allocation5 + $0xccc] sm:$0xf]  ;;  %v7901_v55 = vor.u32 %v10055_v9, %v7898_v46  ;;  %3640 = vmatpush.bf16.msrb.mxu0 %v7645_v54  ;;  %v9836_v54 = vld [vmem:[#allocation5 + $0x3ec] sm:$0xf0] }
 0x19e   :  { %v8154_v49 = vld [vmem:[#allocation5 + $0xce8] sm:$0xf0] }
 0x19f   :  { %v10183_v51 = vld [vmem:[#allocation5 + $0xecc] sm:$0xf]  ;;  %v8157_v57 = vor.u32 %v10119_v48, %v8154_v49  ;;  %3654 = vmatpush.bf16.msrb.mxu1 %v7901_v55  ;;  %v6752_v49 = vld [vmem:[#allocation5 + $0x1d0] sm:$0xf] }
 0x1a0   :  { %v8410_v52 = vld [vmem:[#allocation5 + $0xee8] sm:$0xf0]  ;;  %v7264_v55 = vld [vmem:[#allocation5 + $0x5d0] sm:$0xf] }
 0x1a1   :  { %v9983_v59 = vld [vmem:[#allocation5 + $0x88c] sm:$0xf]  ;;  %v8413_v2 = vor.u32 %v10183_v51, %v8410_v52  ;;  %3668 = vmatpush.bf16.msrb.mxu2 %v8157_v57  ;;  %v7008_v51 = vld [vmem:[#allocation5 + $0x3d0] sm:$0xf] }
 0x1a2   :  { %v7610_v60 = vld [vmem:[#allocation5 + $0x8a8] sm:$0xf0]  ;;  %v9900_v57 = vld [vmem:[#allocation5 + $0x5ec] sm:$0xf0] }
 0x1a3   :  { %v10047_v0 = vld [vmem:[#allocation5 + $0xa8c] sm:$0xf]  ;;  %v7613_v14 = vor.u32 %v9983_v59, %v7610_v60  ;;  %3682 = vmatpush.bf16.msrb.mxu3 %v8413_v2  ;;  %v9964_v2 = vld [vmem:[#allocation5 + $0x7ec] sm:$0xf0]  ;;  %v7265_v7 = vor.u32 %v9900_v57, %v7264_v55 }
 0x1a4   :  { %v7866_v3 = vld [vmem:[#allocation5 + $0xaa8] sm:$0xf0]  ;;  %v7168_v55 = vld [vmem:[#allocation5 + $0x510] sm:$0xf] }
 0x1a5   :  { %v10111_v4 = vld [vmem:[#allocation5 + $0xc8c] sm:$0xf]  ;;  %v7869_v18 = vor.u32 %v10047_v0, %v7866_v3  ;;  %3641 = vmatpush.bf16.msrb.mxu0 %v7613_v14  ;;  %v7520_v0 = vld [vmem:[#allocation5 + $0x7d0] sm:$0xf] }
 0x1a6   :  { %v8122_v5 = vld [vmem:[#allocation5 + $0xca8] sm:$0xf0]  ;;  %v6976_v14 = vld [vmem:[#allocation5 + $0x390] sm:$0xf]  ;;  %v7521_v15 = vor.u32 %v9964_v2, %v7520_v0 }
 0x1a7   :  { %v10175_v11 = vld [vmem:[#allocation5 + $0xe8c] sm:$0xf]  ;;  %v8125_v20 = vor.u32 %v10111_v4, %v8122_v5  ;;  %3655 = vmatpush.bf16.msrb.mxu1 %v7869_v18  ;;  %v6753_v4 = vor.u32 %v9772_v50, %v6752_v49  ;;  %v7009_v5 = vor.u32 %v9836_v54, %v7008_v51  ;;  %v9828_v18 = vld [vmem:[#allocation5 + $0x3ac] sm:$0xf0] }
 0x1a8   :  { %v8378_v12 = vld [vmem:[#allocation5 + $0xea8] sm:$0xf0]  ;;  %v9748_v49 = vld [vmem:[#allocation5 + $0x12c] sm:$0xf0] }
 0x1a9   :  { %v9975_v21 = vld [vmem:[#allocation5 + $0x84c] sm:$0xf]  ;;  %v8381_v26 = vor.u32 %v10175_v11, %v8378_v12  ;;  %3669 = vmatpush.bf16.msrb.mxu2 %v8125_v20  ;;  %v10886_v11 = vpop.f32.mrf.mxu0  ;;  %v6720_v12 = vld [vmem:[#allocation5 + $0x190] sm:$0xf] }
 0x1aa   :  { %v7578_v22 = vld [vmem:[#allocation5 + $0x868] sm:$0xf0]  ;;  %v7232_v20 = vld [vmem:[#allocation5 + $0x590] sm:$0xf] }
 0x1ab   :  { %v10039_v23 = vld [vmem:[#allocation5 + $0xa4c] sm:$0xf]  ;;  %v7581_v32 = vor.u32 %v9975_v21, %v7578_v22  ;;  %3683 = vmatpush.bf16.msrb.mxu3 %v8381_v26  ;;  %v9892_v21 = vld [vmem:[#allocation5 + $0x5ac] sm:$0xf0]  ;;  %v10888_v26 = vpop.f32.mrf.mxu1 }
 0x1ac   :  { %v7834_v27 = vld [vmem:[#allocation5 + $0xa68] sm:$0xf0]  ;;  %v7488_v22 = vld [vmem:[#allocation5 + $0x790] sm:$0xf] }
 0x1ad   :  { %v10103_v28 = vld [vmem:[#allocation5 + $0xc4c] sm:$0xf]  ;;  %v7837_v36 = vor.u32 %v10039_v23, %v7834_v27  ;;  %3642 = vmatpush.bf16.msrb.mxu0 %v7581_v32  ;;  %v9956_v23 = vld [vmem:[#allocation5 + $0x7ac] sm:$0xf0]  ;;  %v6721_v27 = vor.u32 %v9764_v13, %v6720_v12 }
 0x1ae   :  { %v8090_v29 = vld [vmem:[#allocation5 + $0xc68] sm:$0xf0]  ;;  %v6944_v32 = vld [vmem:[#allocation5 + $0x350] sm:$0xf] }
 0x1af   :  { %v10167_v30 = vld [vmem:[#allocation5 + $0xe4c] sm:$0xf]  ;;  %v8093_v37 = vor.u32 %v10103_v28, %v8090_v29  ;;  %3656 = vmatpush.bf16.msrb.mxu1 %v7837_v36  ;;  %v6977_v28 = vor.u32 %v9828_v18, %v6976_v14  ;;  %v7233_v29 = vor.u32 %v9892_v21, %v7232_v20  ;;  %v7200_v36 = vld [vmem:[#allocation5 + $0x550] sm:$0xf] }
 0x1b0   :  { %v8346_v31 = vld [vmem:[#allocation5 + $0xe68] sm:$0xf0]  ;;  %v6912_v50 = vld [vmem:[#allocation5 + $0x310] sm:$0xf] }
 0x1b1   :  { %v9967_v34 = vld [vmem:[#allocation5 + $0x80c] sm:$0xf]  ;;  %v8349_v42 = vor.u32 %v10167_v30, %v8346_v31  ;;  %3670 = vmatpush.bf16.msrb.mxu2 %v8093_v37  ;;  %v6688_v30 = vld [vmem:[#allocation5 + $0x150] sm:$0xf] }
 0x1b2   :  { %v7546_v35 = vld [vmem:[#allocation5 + $0x828] sm:$0xf0]  ;;  %v9756_v31 = vld [vmem:[#allocation5 + $0x16c] sm:$0xf0] }
 0x1b3   :  { %v10031_v38 = vld [vmem:[#allocation5 + $0xa0c] sm:$0xf]  ;;  %v7549_v52 = vor.u32 %v9967_v34, %v7546_v35  ;;  %3684 = vmatpush.bf16.msrb.mxu3 %v8349_v42  ;;  %v7489_v34 = vor.u32 %v9956_v23, %v7488_v22  ;;  %v9820_v35 = vld [vmem:[#allocation5 + $0x36c] sm:$0xf0]  ;;  %v10894_v42 = vpop.f32.mrf.mxu2 }
 0x1b4   :  { %v7802_v41 = vld [vmem:[#allocation5 + $0xa28] sm:$0xf0]  ;;  %v9884_v37 = vld [vmem:[#allocation5 + $0x56c] sm:$0xf0] }
 0x1b5   :  { %v10095_v9 = vld [vmem:[#allocation5 + $0xc0c] sm:$0xf]  ;;  %v7805_v59 = vor.u32 %v10031_v38, %v7802_v41  ;;  %3643 = vmatpush.bf16.msrb.mxu0 %v7549_v52  ;;  %v7456_v38 = vld [vmem:[#allocation5 + $0x750] sm:$0xf]  ;;  %v10896_v52 = vpop.f32.mrf.mxu3 }
 0x1b6   :  { %v8058_v45 = vld [vmem:[#allocation5 + $0xc28] sm:$0xf0]  ;;  %v9948_v41 = vld [vmem:[#allocation5 + $0x76c] sm:$0xf0] }
 0x1b7   :  { %v10159_v46 = vld [vmem:[#allocation5 + $0xe0c] sm:$0xf]  ;;  %v8061_v60 = vor.u32 %v10095_v9, %v8058_v45  ;;  %3657 = vmatpush.bf16.msrb.mxu1 %v7805_v59  ;;  %v6689_v9 = vor.u32 %v9756_v31, %v6688_v30  ;;  %v6945_v45 = vor.u32 %v9820_v35, %v6944_v32  ;;  %v7457_v51 = vor.u32 %v9948_v41, %v7456_v38  ;;  %v9812_v54 = vld [vmem:[#allocation5 + $0x32c] sm:$0xf0]  ;;  %v3421_v59 = vpop.f32.mrf.mxu0 }
 0x1b8   :  { %v8314_v48 = vld [vmem:[#allocation5 + $0xe28] sm:$0xf0]  ;;  %3644 = vmatmul.bf16.vlgmr.msrb.gmra.mxu0 %v10823_v39  ;;  %v9876_v57 = vld [vmem:[#allocation5 + $0x52c] sm:$0xf0]  ;;  %v3422_v2 = vadd.f32 %v3421_v59, %v10884_v24 }
 0x1b9   :  { %v8317_v3 = vor.u32 %v10159_v46, %v8314_v48  ;;  %3671 = vmatpush.bf16.msrb.mxu2 %v8061_v60  ;;  %3692 = vmatpush.bf16.msra.mxu0 %v6753_v4  ;;  %v7201_v46 = vor.u32 %v9884_v37, %v7200_v36  ;;  %v6656_v48 = vld [vmem:[#allocation5 + $0x110] sm:$0xf]  ;;  %v6913_v4 = vor.u32 %v9812_v54, %v6912_v50 }
 0x1ba   :  { %3658 = vmatmul.bf16.vlgmr.msrb.gmra.mxu1 %v10827_v44  ;;  %v7424_v60 = vld [vmem:[#allocation5 + $0x710] sm:$0xf] }
 0x1bb   :  { %3685 = vmatpush.bf16.msrb.mxu3 %v8317_v3  ;;  %3706 = vmatpush.bf16.msra.mxu1 %v7009_v5  ;;  %v9940_v0 = vld [vmem:[#allocation5 + $0x72c] sm:$0xf0]  ;;  %v6657_v3 = vor.u32 %v9748_v49, %v6656_v48  ;;  %v7169_v5 = vor.u32 %v9876_v57, %v7168_v55  ;;  %v3449_v35 = vpop.f32.mrf.mxu2 }
 0x1bc   :  { %3672 = vmatmul.bf16.vlgmr.msrb.gmra.mxu2 %v10825_v43  ;;  %v6624_v12 = vld [vmem:[#allocation5 + $0xd0] sm:$0xf] }
 0x1bd   :  { %3720 = vmatpush.bf16.msra.mxu2 %v7265_v7  ;;  %3693 = vmatpush.bf16.msra.mxu0 %v6721_v27  ;;  %v3435_v7 = vpop.f32.mrf.mxu1  ;;  %v9740_v13 = vld [vmem:[#allocation5 + $0xec] sm:$0xf0] }
 0x1be   :  { %3686 = vmatmul.bf16.vlgmr.msrb.gmra.mxu3 %v10829_v47  ;;  %v6880_v14 = vld [vmem:[#allocation5 + $0x2d0] sm:$0xf]  ;;  %v3436_v18 = vadd.f32 %v3435_v7, %v3422_v2 }
 0x1bf   :  { %3734 = vmatpush.bf16.msra.mxu3 %v7521_v15  ;;  %3707 = vmatpush.bf16.msra.mxu1 %v6977_v28  ;;  %v7425_v15 = vor.u32 %v9940_v0, %v7424_v60  ;;  %v9804_v20 = vld [vmem:[#allocation5 + $0x2ec] sm:$0xf0]  ;;  %v6625_v28 = vor.u32 %v9740_v13, %v6624_v12 }
 0x1c0   :  { %v7136_v21 = vld [vmem:[#allocation5 + $0x4d0] sm:$0xf]  ;;  %v6881_v24 = vor.u32 %v9804_v20, %v6880_v14  ;;  %v3450_v41 = vadd.f32 %v3449_v35, %v3436_v18 }
 0x1c1   :  { %3721 = vmatpush.bf16.msra.mxu2 %v7233_v29  ;;  %3694 = vmatpush.bf16.msra.mxu0 %v6689_v9  ;;  %v9868_v22 = vld [vmem:[#allocation5 + $0x4ec] sm:$0xf0] }
 0x1c2   :  { %v7392_v23 = vld [vmem:[#allocation5 + $0x6d0] sm:$0xf]  ;;  %v7137_v29 = vor.u32 %v9868_v22, %v7136_v21 }
 0x1c3   :  { %3735 = vmatpush.bf16.msra.mxu3 %v7489_v34  ;;  %3708 = vmatpush.bf16.msra.mxu1 %v6945_v45  ;;  %v9932_v27 = vld [vmem:[#allocation5 + $0x6ec] sm:$0xf0] }
 0x1c4   :  { %v6592_v30 = vld [vmem:[#allocation5 + $0x90] sm:$0xf]  ;;  %v7393_v34 = vor.u32 %v9932_v27, %v7392_v23 }
 0x1c5   :  { %3722 = vmatpush.bf16.msra.mxu2 %v7201_v46  ;;  %3695 = vmatpush.bf16.msra.mxu0 %v6657_v3  ;;  %v9732_v31 = vld [vmem:[#allocation5 + $0xac] sm:$0xf0]  ;;  %v3463_v46 = vpop.f32.mrf.mxu3 }
 0x1c6   :  { %v6848_v32 = vld [vmem:[#allocation5 + $0x290] sm:$0xf]  ;;  %v6593_v48 = vor.u32 %v9732_v31, %v6592_v30  ;;  %v10899_v49 = vadd.f32 %v3463_v46, %v3450_v41 }
 0x1c7   :  { %3736 = vmatpush.bf16.msra.mxu3 %v7457_v51  ;;  %3709 = vmatpush.bf16.msra.mxu1 %v6913_v4  ;;  %v9796_v36 = vld [vmem:[#allocation5 + $0x2ac] sm:$0xf0] }
 0x1c8   :  { %v7104_v37 = vld [vmem:[#allocation5 + $0x490] sm:$0xf]  ;;  %11210 = vst [vmem:[#allocation22_spill] sm:$0xff] %v10899_v49  ;;  %v6849_v50 = vor.u32 %v9796_v36, %v6848_v32  ;;  %v9761_v49 = vld [vmem:[#allocation5 + $0x19c] sm:$0xf] }
 0x1c9   :  { %3723 = vmatpush.bf16.msra.mxu2 %v7169_v5  ;;  %v9860_v38 = vld [vmem:[#allocation5 + $0x4ac] sm:$0xf0]  ;;  %3696 = vmatpush.bf16.msra.mxu0 %v6625_v28 }
 0x1ca   :  { %v7360_v9 = vld [vmem:[#allocation5 + $0x690] sm:$0xf]  ;;  %v7105_v51 = vor.u32 %v9860_v38, %v7104_v37 }
 0x1cb   :  { %3737 = vmatpush.bf16.msra.mxu3 %v7425_v15  ;;  %v9924_v45 = vld [vmem:[#allocation5 + $0x6ac] sm:$0xf0]  ;;  %3710 = vmatpush.bf16.msra.mxu1 %v6881_v24 }
 0x1cc   :  { %v6560_v54 = vld [vmem:[#allocation5 + $0x50] sm:$0xf]  ;;  %v7361_v59 = vor.u32 %v9924_v45, %v7360_v9 }
 0x1cd   :  { %3724 = vmatpush.bf16.msra.mxu2 %v7137_v29  ;;  %v9724_v55 = vld [vmem:[#allocation5 + $0x6c] sm:$0xf0]  ;;  %3697 = vmatpush.bf16.msra.mxu0 %v6593_v48 }
 0x1ce   :  { %v6816_v57 = vld [vmem:[#allocation5 + $0x250] sm:$0xf]  ;;  %v6561_v5 = vor.u32 %v9724_v55, %v6560_v54 }
 0x1cf   :  { %3738 = vmatpush.bf16.msra.mxu3 %v7393_v34  ;;  %v9788_v60 = vld [vmem:[#allocation5 + $0x26c] sm:$0xf0]  ;;  %3711 = vmatpush.bf16.msra.mxu1 %v6849_v50 }
 0x1d0   :  { %v7072_v0 = vld [vmem:[#allocation5 + $0x450] sm:$0xf]  ;;  %v6817_v13 = vor.u32 %v9788_v60, %v6816_v57  ;;  %v10901_v60 = vpop.f32.mrf.mxu0 }
 0x1d1   :  { %v9852_v2 = vld [vmem:[#allocation5 + $0x46c] sm:$0xf0]  ;;  %3725 = vmatpush.bf16.msra.mxu2 %v7105_v51  ;;  %3698 = vmatpush.bf16.msra.mxu0 %v6561_v5 }
 0x1d2   :  { %v7328_v3 = vld [vmem:[#allocation5 + $0x650] sm:$0xf]  ;;  %v7073_v14 = vor.u32 %v9852_v2, %v7072_v0 }
 0x1d3   :  { %v9916_v4 = vld [vmem:[#allocation5 + $0x66c] sm:$0xf0]  ;;  %3739 = vmatpush.bf16.msra.mxu3 %v7361_v59  ;;  %3712 = vmatpush.bf16.msra.mxu1 %v6817_v13 }
 0x1d4   :  { %v6528_v7 = vld [vmem:[#allocation5 + $0x10] sm:$0xf]  ;;  %v7329_v21 = vor.u32 %v9916_v4, %v7328_v3  ;;  %v10903_v4 = vpop.f32.mrf.mxu1 }
 0x1d5   :  { %v9716_v12 = vld [vmem:[#allocation5 + $0x2c] sm:$0xf0]  ;;  %3726 = vmatpush.bf16.msra.mxu2 %v7073_v14  ;;  %11211 = vst [vmem:[#allocation23_spill] sm:$0xff] %v10903_v4 }
 0x1d6   :  { %v6784_v15 = vld [vmem:[#allocation5 + $0x210] sm:$0xf]  ;;  %v6529_v30 = vor.u32 %v9716_v12, %v6528_v7 }
 0x1d7   :  { %v9780_v18 = vld [vmem:[#allocation5 + $0x22c] sm:$0xf0]  ;;  %3740 = vmatpush.bf16.msra.mxu3 %v7329_v21 }
 0x1d8   :  { %v7040_v20 = vld [vmem:[#allocation5 + $0x410] sm:$0xf]  ;;  %v6785_v35 = vor.u32 %v9780_v18, %v6784_v15  ;;  %3699 = vmatpush.bf16.msra.mxu0 %v6529_v30 }
 0x1d9   :  { %v9844_v22 = vld [vmem:[#allocation5 + $0x42c] sm:$0xf0] }
 0x1da   :  { %v7296_v23 = vld [vmem:[#allocation5 + $0x610] sm:$0xf]  ;;  %v7041_v36 = vor.u32 %v9844_v22, %v7040_v20  ;;  %3713 = vmatpush.bf16.msra.mxu1 %v6785_v35  ;;  %v10912_v35 = vpop.f32.mrf.mxu2 }
 0x1db   :  { %v9908_v27 = vld [vmem:[#allocation5 + $0x62c] sm:$0xf0]  ;;  %3700 = vmatmul.bf16.vlgmr.msra.gmra.mxu0 %v10811_v58  ;;  %11212 = vst [vmem:[#allocation24_spill] sm:$0xff] %v10912_v35 }
 0x1dc   :  { %v7776_v28 = vld [vmem:[#allocation5 + $0x9d0] sm:$0xf]  ;;  %v7297_v41 = vor.u32 %v9908_v27, %v7296_v23  ;;  %3727 = vmatpush.bf16.msra.mxu2 %v7041_v36 }
 0x1dd   :  { %v10028_v24 = vld [vmem:[#allocation5 + $0x9ec] sm:$0xf0]  ;;  %3714 = vmatmul.bf16.vlgmr.msra.gmra.mxu1 %v10817_v10 }
 0x1de   :  { %v8032_v29 = vld [vmem:[#allocation5 + $0xbd0] sm:$0xf]  ;;  %v7777_v9 = vor.u32 %v10028_v24, %v7776_v28  ;;  %3741 = vmatpush.bf16.msra.mxu3 %v7297_v41  ;;  %v10909_v28 = vld [vmem:[#allocation7] sm:$0xff] }
 0x1df   :  { %v10092_v31 = vld [vmem:[#allocation5 + $0xbec] sm:$0xf0]  ;;  %3728 = vmatmul.bf16.vlgmr.msra.gmra.mxu2 %v10813_v1  ;;  %v11204_v24 = vperm.slane %v10909_v28, 2 }
 0x1e0   :  { %v8288_v32 = vld [vmem:[#allocation5 + $0xdd0] sm:$0xf]  ;;  %v8033_v45 = vor.u32 %v10092_v31, %v8032_v29  ;;  %3748 = vmatpush.bf16.msrb.mxu0 %v7777_v9 }
 0x1e1   :  { %v10156_v34 = vld [vmem:[#allocation5 + $0xdec] sm:$0xf0]  ;;  %3742 = vmatmul.bf16.vlgmr.msra.gmra.mxu3 %v10819_v17 }
 0x1e2   :  { %v8544_v37 = vld [vmem:[#allocation5 + $0xfd0] sm:$0xf]  ;;  %v8289_v46 = vor.u32 %v10156_v34, %v8288_v32  ;;  %3762 = vmatpush.bf16.msrb.mxu1 %v8033_v45 }
 0x1e3   :  { %v10220_v38 = vld [vmem:[#allocation5 + $0xfec] sm:$0xf0] }
 0x1e4   :  { %v7744_v48 = vld [vmem:[#allocation5 + $0x990] sm:$0xf]  ;;  %v8545_v54 = vor.u32 %v10220_v38, %v8544_v37  ;;  %3776 = vmatpush.bf16.msrb.mxu2 %v8289_v46  ;;  %v3477_v46 = vpop.f32.mrf.mxu0 }
 0x1e5   :  { %v10020_v50 = vld [vmem:[#allocation5 + $0x9ac] sm:$0xf0] }
 0x1e6   :  { %v8000_v51 = vld [vmem:[#allocation5 + $0xb90] sm:$0xf]  ;;  %v7745_v3 = vor.u32 %v10020_v50, %v7744_v48  ;;  %3790 = vmatpush.bf16.msrb.mxu3 %v8545_v54  ;;  %v10914_v48 = vpop.f32.mrf.mxu3 }
 0x1e7   :  { %v10084_v55 = vld [vmem:[#allocation5 + $0xbac] sm:$0xf0]  ;;  %11213 = vst [vmem:[#allocation25_spill] sm:$0xff] %v10914_v48  ;;  %v7242_v48 = vld [vmem:[#allocation5 + $0x5b8] sm:$0xf0] }
 0x1e8   :  { %v8256_v57 = vld [vmem:[#allocation5 + $0xd90] sm:$0xf]  ;;  %v8001_v5 = vor.u32 %v10084_v55, %v8000_v51  ;;  %3749 = vmatpush.bf16.msrb.mxu0 %v7745_v3  ;;  %v3478_v51 = vadd.f32 %v3477_v46, %v11204_v24  ;;  %v7746_v24 = vld [vmem:[#allocation5 + $0x9b0] sm:$0xf0] }
 0x1e9   :  { %v10148_v59 = vld [vmem:[#allocation5 + $0xdac] sm:$0xf0] }
 0x1ea   :  { %v8512_v0 = vld [vmem:[#allocation5 + $0xf90] sm:$0xf]  ;;  %v8257_v7 = vor.u32 %v10148_v59, %v8256_v57  ;;  %3763 = vmatpush.bf16.msrb.mxu1 %v8001_v5 }
 0x1eb   :  { %v10212_v2 = vld [vmem:[#allocation5 + $0xfac] sm:$0xf0] }
 0x1ec   :  { %v7712_v12 = vld [vmem:[#allocation5 + $0x950] sm:$0xf]  ;;  %v8513_v15 = vor.u32 %v10212_v2, %v8512_v0  ;;  %3777 = vmatpush.bf16.msrb.mxu2 %v8257_v7  ;;  %v3491_v2 = vpop.f32.mrf.mxu1 }
 0x1ed   :  { %v10012_v13 = vld [vmem:[#allocation5 + $0x96c] sm:$0xf0] }
 0x1ee   :  { %v7968_v14 = vld [vmem:[#allocation5 + $0xb50] sm:$0xf]  ;;  %v7713_v27 = vor.u32 %v10012_v13, %v7712_v12  ;;  %3791 = vmatpush.bf16.msrb.mxu3 %v8513_v15  ;;  %v3492_v13 = vadd.f32 %v3491_v2, %v3478_v51 }
 0x1ef   :  { %v10076_v18 = vld [vmem:[#allocation5 + $0xb6c] sm:$0xf0] }
 0x1f0   :  { %v8224_v20 = vld [vmem:[#allocation5 + $0xd50] sm:$0xf]  ;;  %v7969_v29 = vor.u32 %v10076_v18, %v7968_v14  ;;  %3750 = vmatpush.bf16.msrb.mxu0 %v7713_v27 }
 0x1f1   :  { %v10140_v21 = vld [vmem:[#allocation5 + $0xd6c] sm:$0xf0] }
 0x1f2   :  { %v8480_v22 = vld [vmem:[#allocation5 + $0xf50] sm:$0xf]  ;;  %v8225_v30 = vor.u32 %v10140_v21, %v8224_v20  ;;  %3764 = vmatpush.bf16.msrb.mxu1 %v7969_v29 }
 0x1f3   :  { %v10204_v23 = vld [vmem:[#allocation5 + $0xf6c] sm:$0xf0] }
 0x1f4   :  { %v7680_v31 = vld [vmem:[#allocation5 + $0x910] sm:$0xf]  ;;  %v8481_v36 = vor.u32 %v10204_v23, %v8480_v22  ;;  %3778 = vmatpush.bf16.msrb.mxu2 %v8225_v30 }
 0x1f5   :  { %v10004_v32 = vld [vmem:[#allocation5 + $0x92c] sm:$0xf0] }
 0x1f6   :  { %v7936_v34 = vld [vmem:[#allocation5 + $0xb10] sm:$0xf]  ;;  %v7681_v50 = vor.u32 %v10004_v32, %v7680_v31  ;;  %3792 = vmatpush.bf16.msrb.mxu3 %v8481_v36 }
 0x1f7   :  { %v10068_v37 = vld [vmem:[#allocation5 + $0xb2c] sm:$0xf0] }
 0x1f8   :  { %v8192_v38 = vld [vmem:[#allocation5 + $0xd10] sm:$0xf]  ;;  %v7937_v54 = vor.u32 %v10068_v37, %v7936_v34  ;;  %3751 = vmatpush.bf16.msrb.mxu0 %v7681_v50  ;;  %v3505_v34 = vpop.f32.mrf.mxu2 }
 0x1f9   :  { %v10132_v41 = vld [vmem:[#allocation5 + $0xd2c] sm:$0xf0] }
 0x1fa   :  { %v8448_v9 = vld [vmem:[#allocation5 + $0xf10] sm:$0xf]  ;;  %v8193_v55 = vor.u32 %v10132_v41, %v8192_v38  ;;  %3765 = vmatpush.bf16.msrb.mxu1 %v7937_v54  ;;  %v3506_v38 = vadd.f32 %v3505_v34, %v3492_v13 }
 0x1fb   :  { %v10196_v45 = vld [vmem:[#allocation5 + $0xf2c] sm:$0xf0] }
 0x1fc   :  { %v7648_v57 = vld [vmem:[#allocation5 + $0x8d0] sm:$0xf]  ;;  %v8449_v3 = vor.u32 %v10196_v45, %v8448_v9  ;;  %3779 = vmatpush.bf16.msrb.mxu2 %v8193_v55  ;;  %v3519_v9 = vpop.f32.mrf.mxu3 }
 0x1fd   :  { %v9996_v59 = vld [vmem:[#allocation5 + $0x8ec] sm:$0xf0]  ;;  %v10918_v55 = vadd.f32 %v3519_v9, %v3506_v38  ;;  %v7266_v38 = vld [vmem:[#allocation5 + $0x5f0] sm:$0xf0] }
 0x1fe   :  { %v7904_v0 = vld [vmem:[#allocation5 + $0xad0] sm:$0xf]  ;;  %v7649_v18 = vor.u32 %v9996_v59, %v7648_v57  ;;  %3793 = vmatpush.bf16.msrb.mxu3 %v8449_v3 }
 0x1ff   :  { %v10060_v5 = vld [vmem:[#allocation5 + $0xaec] sm:$0xf0] }
 0x200   :  { %v8160_v7 = vld [vmem:[#allocation5 + $0xcd0] sm:$0xf]  ;;  %v7905_v20 = vor.u32 %v10060_v5, %v7904_v0  ;;  %3752 = vmatpush.bf16.msrb.mxu0 %v7649_v18 }
 0x201   :  { %v10124_v12 = vld [vmem:[#allocation5 + $0xcec] sm:$0xf0] }
 0x202   :  { %v8416_v14 = vld [vmem:[#allocation5 + $0xed0] sm:$0xf]  ;;  %v8161_v21 = vor.u32 %v10124_v12, %v8160_v7  ;;  %3766 = vmatpush.bf16.msrb.mxu1 %v7905_v20 }
 0x203   :  { %v10188_v15 = vld [vmem:[#allocation5 + $0xeec] sm:$0xf0] }
 0x204   :  { %v7616_v22 = vld [vmem:[#allocation5 + $0x890] sm:$0xf]  ;;  %v8417_v29 = vor.u32 %v10188_v15, %v8416_v14  ;;  %3780 = vmatpush.bf16.msrb.mxu2 %v8161_v21 }
 0x205   :  { %v9988_v23 = vld [vmem:[#allocation5 + $0x8ac] sm:$0xf0] }
 0x206   :  { %v7872_v27 = vld [vmem:[#allocation5 + $0xa90] sm:$0xf]  ;;  %v7617_v41 = vor.u32 %v9988_v23, %v7616_v22  ;;  %3794 = vmatpush.bf16.msrb.mxu3 %v8417_v29 }
 0x207   :  { %v10052_v30 = vld [vmem:[#allocation5 + $0xaac] sm:$0xf0] }
 0x208   :  { %v8128_v31 = vld [vmem:[#allocation5 + $0xc90] sm:$0xf]  ;;  %v7873_v45 = vor.u32 %v10052_v30, %v7872_v27  ;;  %3753 = vmatpush.bf16.msrb.mxu0 %v7617_v41  ;;  %v9768_v30 = vld [vmem:[#allocation5 + $0x1d4] sm:$0xf] }
 0x209   :  { %v10116_v32 = vld [vmem:[#allocation5 + $0xcac] sm:$0xf0] }
 0x20a   :  { %v8384_v36 = vld [vmem:[#allocation5 + $0xe90] sm:$0xf]  ;;  %v8129_v46 = vor.u32 %v10116_v32, %v8128_v31  ;;  %3767 = vmatpush.bf16.msrb.mxu1 %v7873_v45  ;;  %v6754_v31 = vld [vmem:[#allocation5 + $0x1f0] sm:$0xf0] }
 0x20b   :  { %v10180_v37 = vld [vmem:[#allocation5 + $0xeac] sm:$0xf0]  ;;  %v9832_v32 = vld [vmem:[#allocation5 + $0x3d4] sm:$0xf] }
 0x20c   :  { %v7584_v50 = vld [vmem:[#allocation5 + $0x850] sm:$0xf]  ;;  %v8385_v57 = vor.u32 %v10180_v37, %v8384_v36  ;;  %3781 = vmatpush.bf16.msrb.mxu2 %v8129_v46  ;;  %v7010_v36 = vld [vmem:[#allocation5 + $0x3f0] sm:$0xf0] }
 0x20d   :  { %v9980_v51 = vld [vmem:[#allocation5 + $0x86c] sm:$0xf0]  ;;  %v9896_v37 = vld [vmem:[#allocation5 + $0x5d4] sm:$0xf] }
 0x20e   :  { %v7840_v54 = vld [vmem:[#allocation5 + $0xa50] sm:$0xf]  ;;  %v7585_v7 = vor.u32 %v9980_v51, %v7584_v50  ;;  %3795 = vmatpush.bf16.msrb.mxu3 %v8385_v57  ;;  %v9960_v45 = vld [vmem:[#allocation5 + $0x7d4] sm:$0xf]  ;;  %v6757_v51 = vor.u32 %v9768_v30, %v6754_v31  ;;  %v7269_v57 = vor.u32 %v9896_v37, %v7266_v38 }
 0x20f   :  { %v10044_v59 = vld [vmem:[#allocation5 + $0xa6c] sm:$0xf0]  ;;  %v7522_v46 = vld [vmem:[#allocation5 + $0x7f0] sm:$0xf0] }
 0x210   :  { %v8096_v0 = vld [vmem:[#allocation5 + $0xc50] sm:$0xf]  ;;  %v7841_v14 = vor.u32 %v10044_v59, %v7840_v54  ;;  %3754 = vmatpush.bf16.msrb.mxu0 %v7585_v7  ;;  %v7013_v54 = vor.u32 %v9832_v32, %v7010_v36  ;;  %v10920_v59 = vpop.f32.mrf.mxu0  ;;  %v6978_v7 = vld [vmem:[#allocation5 + $0x3b0] sm:$0xf0] }
 0x211   :  { %v10108_v2 = vld [vmem:[#allocation5 + $0xc6c] sm:$0xf0]  ;;  %v6946_v31 = vld [vmem:[#allocation5 + $0x370] sm:$0xf0] }
 0x212   :  { %v8352_v3 = vld [vmem:[#allocation5 + $0xe50] sm:$0xf]  ;;  %v8097_v15 = vor.u32 %v10108_v2, %v8096_v0  ;;  %3768 = vmatpush.bf16.msrb.mxu1 %v7841_v14  ;;  %v9760_v0 = vld [vmem:[#allocation5 + $0x194] sm:$0xf] }
 0x213   :  { %v10172_v5 = vld [vmem:[#allocation5 + $0xe6c] sm:$0xf0]  ;;  %v6722_v2 = vld [vmem:[#allocation5 + $0x1b0] sm:$0xf0] }
 0x214   :  { %v7552_v12 = vld [vmem:[#allocation5 + $0x810] sm:$0xf]  ;;  %v8353_v22 = vor.u32 %v10172_v5, %v8352_v3  ;;  %3782 = vmatpush.bf16.msrb.mxu2 %v8097_v15  ;;  %v9824_v3 = vld [vmem:[#allocation5 + $0x394] sm:$0xf]  ;;  %v7525_v5 = vor.u32 %v9960_v45, %v7522_v46 }
 0x215   :  { %v9972_v13 = vld [vmem:[#allocation5 + $0x82c] sm:$0xf0]  ;;  %v9952_v14 = vld [vmem:[#allocation5 + $0x794] sm:$0xf] }
 0x216   :  { %v7808_v18 = vld [vmem:[#allocation5 + $0xa10] sm:$0xf]  ;;  %v7553_v34 = vor.u32 %v9972_v13, %v7552_v12  ;;  %3796 = vmatpush.bf16.msrb.mxu3 %v8353_v22  ;;  %v9888_v12 = vld [vmem:[#allocation5 + $0x594] sm:$0xf] }
 0x217   :  { %v10036_v20 = vld [vmem:[#allocation5 + $0xa2c] sm:$0xf0]  ;;  %v7234_v13 = vld [vmem:[#allocation5 + $0x5b0] sm:$0xf0] }
 0x218   :  { %v8064_v21 = vld [vmem:[#allocation5 + $0xc10] sm:$0xf]  ;;  %v7809_v41 = vor.u32 %v10036_v20, %v7808_v18  ;;  %3755 = vmatpush.bf16.msrb.mxu0 %v7553_v34  ;;  %v7490_v15 = vld [vmem:[#allocation5 + $0x7b0] sm:$0xf0]  ;;  %v10922_v18 = vpop.f32.mrf.mxu1  ;;  %v6725_v20 = vor.u32 %v9760_v0, %v6722_v2  ;;  %v7237_v22 = vor.u32 %v9888_v12, %v7234_v13 }
 0x219   :  { %v10100_v23 = vld [vmem:[#allocation5 + $0xc2c] sm:$0xf0]  ;;  %v7493_v30 = vor.u32 %v9952_v14, %v7490_v15  ;;  %v9880_v32 = vld [vmem:[#allocation5 + $0x554] sm:$0xf] }
 0x21a   :  { %v8320_v27 = vld [vmem:[#allocation5 + $0xe10] sm:$0xf]  ;;  %v8065_v9 = vor.u32 %v10100_v23, %v8064_v21  ;;  %3769 = vmatpush.bf16.msrb.mxu1 %v7809_v41  ;;  %v6981_v21 = vor.u32 %v9824_v3, %v6978_v7  ;;  %v9752_v23 = vld [vmem:[#allocation5 + $0x154] sm:$0xf]  ;;  %v10928_v41 = vpop.f32.mrf.mxu2 }
 0x21b   :  { %v10164_v29 = vld [vmem:[#allocation5 + $0xe2c] sm:$0xf0]  ;;  %3756 = vmatmul.bf16.vlgmr.msrb.gmra.mxu0 %v10823_v39  ;;  %v7202_v34 = vld [vmem:[#allocation5 + $0x570] sm:$0xf0] }
 0x21c   :  { %v8321_v50 = vor.u32 %v10164_v29, %v8320_v27  ;;  %3783 = vmatpush.bf16.msrb.mxu2 %v8065_v9  ;;  %3804 = vmatpush.bf16.msra.mxu0 %v6757_v51  ;;  %v6690_v27 = vld [vmem:[#allocation5 + $0x170] sm:$0xf0]  ;;  %v7205_v45 = vor.u32 %v9880_v32, %v7202_v34 }
 0x21d   :  { %v9816_v29 = vld [vmem:[#allocation5 + $0x354] sm:$0xf]  ;;  %3770 = vmatmul.bf16.vlgmr.msrb.gmra.mxu1 %v10827_v44  ;;  %v6693_v38 = vor.u32 %v9752_v23, %v6690_v27 }
 0x21e   :  { %3797 = vmatpush.bf16.msrb.mxu3 %v8321_v50  ;;  %3818 = vmatpush.bf16.msra.mxu1 %v7013_v54  ;;  %v9944_v36 = vld [vmem:[#allocation5 + $0x754] sm:$0xf]  ;;  %v6949_v9 = vor.u32 %v9816_v29, %v6946_v31 }
 0x21f   :  { %3784 = vmatmul.bf16.vlgmr.msrb.gmra.mxu2 %v10825_v43  ;;  %v7458_v37 = vld [vmem:[#allocation5 + $0x770] sm:$0xf0] }
 0x220   :  { %3832 = vmatpush.bf16.msra.mxu2 %v7269_v57  ;;  %3805 = vmatpush.bf16.msra.mxu0 %v6725_v20  ;;  %v9744_v46 = vld [vmem:[#allocation5 + $0x114] sm:$0xf]  ;;  %v7461_v54 = vor.u32 %v9944_v36, %v7458_v37  ;;  %v10930_v57 = vpop.f32.mrf.mxu3 }
 0x221   :  { %3798 = vmatmul.bf16.vlgmr.msrb.gmra.mxu3 %v10829_v47  ;;  %v6658_v50 = vld [vmem:[#allocation5 + $0x130] sm:$0xf0] }
 0x222   :  { %3846 = vmatpush.bf16.msra.mxu3 %v7525_v5  ;;  %3819 = vmatpush.bf16.msra.mxu1 %v6981_v21  ;;  %v9808_v51 = vld [vmem:[#allocation5 + $0x314] sm:$0xf]  ;;  %v3533_v5 = vpop.f32.mrf.mxu0  ;;  %v6661_v14 = vor.u32 %v9744_v46, %v6658_v50  ;;  %v3547_v21 = vpop.f32.mrf.mxu1 }
 0x223   :  { %v6914_v0 = vld [vmem:[#allocation5 + $0x330] sm:$0xf0]  ;;  %v3534_v13 = vadd.f32 %v3533_v5, %v10918_v55 }
 0x224   :  { %3833 = vmatpush.bf16.msra.mxu2 %v7237_v22  ;;  %v9872_v2 = vld [vmem:[#allocation5 + $0x514] sm:$0xf]  ;;  %3806 = vmatpush.bf16.msra.mxu0 %v6693_v38  ;;  %v6917_v15 = vor.u32 %v9808_v51, %v6914_v0  ;;  %v3561_v0 = vpop.f32.mrf.mxu2 }
 0x225   :  { %v7170_v3 = vld [vmem:[#allocation5 + $0x530] sm:$0xf0] }
 0x226   :  { %3847 = vmatpush.bf16.msra.mxu3 %v7493_v30  ;;  %v9936_v7 = vld [vmem:[#allocation5 + $0x714] sm:$0xf]  ;;  %3820 = vmatpush.bf16.msra.mxu1 %v6949_v9  ;;  %v7173_v20 = vor.u32 %v9872_v2, %v7170_v3  ;;  %v3548_v30 = vadd.f32 %v3547_v21, %v3534_v13 }
 0x227   :  { %v7426_v12 = vld [vmem:[#allocation5 + $0x730] sm:$0xf0] }
 0x228   :  { %3834 = vmatpush.bf16.msra.mxu2 %v7205_v45  ;;  %v9736_v22 = vld [vmem:[#allocation5 + $0xd4] sm:$0xf]  ;;  %v7429_v29 = vor.u32 %v9936_v7, %v7426_v12  ;;  %3807 = vmatpush.bf16.msra.mxu0 %v6661_v14  ;;  %v3562_v5 = vadd.f32 %v3561_v0, %v3548_v30  ;;  %v3575_v13 = vpop.f32.mrf.mxu3 }
 0x229   :  { %v6626_v23 = vld [vmem:[#allocation5 + $0xf0] sm:$0xf0] }
 0x22a   :  { %v9800_v27 = vld [vmem:[#allocation5 + $0x2d4] sm:$0xf]  ;;  %3848 = vmatpush.bf16.msra.mxu3 %v7461_v54  ;;  %v6629_v38 = vor.u32 %v9736_v22, %v6626_v23  ;;  %3821 = vmatpush.bf16.msra.mxu1 %v6917_v15  ;;  %v10933_v15 = vadd.f32 %v3575_v13, %v3562_v5 }
 0x22b   :  { %v6882_v31 = vld [vmem:[#allocation5 + $0x2f0] sm:$0xf0] }
 0x22c   :  { %v9864_v32 = vld [vmem:[#allocation5 + $0x4d4] sm:$0xf]  ;;  %3835 = vmatpush.bf16.msra.mxu2 %v7173_v20  ;;  %v6885_v55 = vor.u32 %v9800_v27, %v6882_v31  ;;  %3808 = vmatpush.bf16.msra.mxu0 %v6629_v38  ;;  %11214 = vst [vmem:[#allocation26_spill] sm:$0xff] %v10933_v15 }
 0x22d   :  { %v7138_v34 = vld [vmem:[#allocation5 + $0x4f0] sm:$0xf0] }
 0x22e   :  { %v9928_v36 = vld [vmem:[#allocation5 + $0x6d4] sm:$0xf]  ;;  %v7141_v9 = vor.u32 %v9864_v32, %v7138_v34  ;;  %3849 = vmatpush.bf16.msra.mxu3 %v7429_v29  ;;  %3822 = vmatpush.bf16.msra.mxu1 %v6885_v55 }
 0x22f   :  { %v7394_v37 = vld [vmem:[#allocation5 + $0x6f0] sm:$0xf0] }
 0x230   :  { %v9728_v45 = vld [vmem:[#allocation5 + $0x94] sm:$0xf]  ;;  %v7397_v51 = vor.u32 %v9928_v36, %v7394_v37  ;;  %3836 = vmatpush.bf16.msra.mxu2 %v7141_v9 }
 0x231   :  { %v6594_v46 = vld [vmem:[#allocation5 + $0xb0] sm:$0xf0] }
 0x232   :  { %v9792_v50 = vld [vmem:[#allocation5 + $0x294] sm:$0xf]  ;;  %v6597_v14 = vor.u32 %v9728_v45, %v6594_v46  ;;  %3850 = vmatpush.bf16.msra.mxu3 %v7397_v51 }
 0x233   :  { %v6850_v54 = vld [vmem:[#allocation5 + $0x2b0] sm:$0xf0] }
 0x234   :  { %v9856_v2 = vld [vmem:[#allocation5 + $0x494] sm:$0xf]  ;;  %v6853_v20 = vor.u32 %v9792_v50, %v6850_v54  ;;  %3809 = vmatpush.bf16.msra.mxu0 %v6597_v14 }
 0x235   :  { %v7106_v3 = vld [vmem:[#allocation5 + $0x4b0] sm:$0xf0] }
 0x236   :  { %v9920_v7 = vld [vmem:[#allocation5 + $0x694] sm:$0xf]  ;;  %v7109_v21 = vor.u32 %v9856_v2, %v7106_v3  ;;  %3823 = vmatpush.bf16.msra.mxu1 %v6853_v20 }
 0x237   :  { %v7362_v12 = vld [vmem:[#allocation5 + $0x6b0] sm:$0xf0] }
 0x238   :  { %v9720_v22 = vld [vmem:[#allocation5 + $0x54] sm:$0xf]  ;;  %v7365_v29 = vor.u32 %v9920_v7, %v7362_v12  ;;  %3837 = vmatpush.bf16.msra.mxu2 %v7109_v21 }
 0x239   :  { %v6562_v23 = vld [vmem:[#allocation5 + $0x70] sm:$0xf0] }
 0x23a   :  { %v9784_v27 = vld [vmem:[#allocation5 + $0x254] sm:$0xf]  ;;  %v6565_v37 = vor.u32 %v9720_v22, %v6562_v23  ;;  %3851 = vmatpush.bf16.msra.mxu3 %v7365_v29 }
 0x23b   :  { %v6818_v31 = vld [vmem:[#allocation5 + $0x270] sm:$0xf0] }
 0x23c   :  { %v9848_v32 = vld [vmem:[#allocation5 + $0x454] sm:$0xf]  ;;  %v6821_v55 = vor.u32 %v9784_v27, %v6818_v31  ;;  %3810 = vmatpush.bf16.msra.mxu0 %v6565_v37 }
 0x23d   :  { %v7074_v34 = vld [vmem:[#allocation5 + $0x470] sm:$0xf0] }
 0x23e   :  { %v9912_v30 = vld [vmem:[#allocation5 + $0x654] sm:$0xf]  ;;  %v7077_v9 = vor.u32 %v9848_v32, %v7074_v34  ;;  %3824 = vmatpush.bf16.msra.mxu1 %v6821_v55 }
 0x23f   :  { %v7330_v36 = vld [vmem:[#allocation5 + $0x670] sm:$0xf0] }
 0x240   :  { %v9712_v38 = vld [vmem:[#allocation5 + $0x14] sm:$0xf]  ;;  %v7333_v54 = vor.u32 %v9912_v30, %v7330_v36  ;;  %3838 = vmatpush.bf16.msra.mxu2 %v7077_v9 }
 0x241   :  { %v6530_v45 = vld [vmem:[#allocation5 + $0x30] sm:$0xf0] }
 0x242   :  { %v9776_v46 = vld [vmem:[#allocation5 + $0x214] sm:$0xf]  ;;  %v6533_v13 = vor.u32 %v9712_v38, %v6530_v45  ;;  %3852 = vmatpush.bf16.msra.mxu3 %v7333_v54 }
 0x243   :  { %v6786_v50 = vld [vmem:[#allocation5 + $0x230] sm:$0xf0] }
 0x244   :  { %v9840_v0 = vld [vmem:[#allocation5 + $0x414] sm:$0xf]  ;;  %v6789_v20 = vor.u32 %v9776_v46, %v6786_v50  ;;  %3811 = vmatpush.bf16.msra.mxu0 %v6533_v13 }
 0x245   :  { %v7042_v51 = vld [vmem:[#allocation5 + $0x430] sm:$0xf0] }
 0x246   :  { %v9904_v2 = vld [vmem:[#allocation5 + $0x614] sm:$0xf]  ;;  %v7045_v21 = vor.u32 %v9840_v0, %v7042_v51  ;;  %3825 = vmatpush.bf16.msra.mxu1 %v6789_v20 }
 0x247   :  { %v7298_v3 = vld [vmem:[#allocation5 + $0x630] sm:$0xf0]  ;;  %3812 = vmatmul.bf16.vlgmr.msra.gmra.mxu0 %v10811_v58 }
 0x248   :  { %v10024_v5 = vld [vmem:[#allocation5 + $0x9d4] sm:$0xf]  ;;  %v7301_v29 = vor.u32 %v9904_v2, %v7298_v3  ;;  %3839 = vmatpush.bf16.msra.mxu2 %v7045_v21 }
 0x249   :  { %v7778_v7 = vld [vmem:[#allocation5 + $0x9f0] sm:$0xf0]  ;;  %3826 = vmatmul.bf16.vlgmr.msra.gmra.mxu1 %v10817_v10 }
 0x24a   :  { %v10088_v12 = vld [vmem:[#allocation5 + $0xbd4] sm:$0xf]  ;;  %v7781_v32 = vor.u32 %v10024_v5, %v7778_v7  ;;  %3853 = vmatpush.bf16.msra.mxu3 %v7301_v29 }
 0x24b   :  { %v8034_v14 = vld [vmem:[#allocation5 + $0xbf0] sm:$0xf0]  ;;  %3840 = vmatmul.bf16.vlgmr.msra.gmra.mxu2 %v10813_v1 }
 0x24c   :  { %v10152_v22 = vld [vmem:[#allocation5 + $0xdd4] sm:$0xf]  ;;  %v8037_v34 = vor.u32 %v10088_v12, %v8034_v14  ;;  %3860 = vmatpush.bf16.msrb.mxu0 %v7781_v32 }
 0x24d   :  { %v8290_v23 = vld [vmem:[#allocation5 + $0xdf0] sm:$0xf0]  ;;  %3854 = vmatmul.bf16.vlgmr.msra.gmra.mxu3 %v10819_v17 }
 0x24e   :  { %v10216_v27 = vld [vmem:[#allocation5 + $0xfd4] sm:$0xf]  ;;  %v8293_v30 = vor.u32 %v10152_v22, %v8290_v23  ;;  %3874 = vmatpush.bf16.msrb.mxu1 %v8037_v34 }
 0x24f   :  { %v8546_v31 = vld [vmem:[#allocation5 + $0xff0] sm:$0xf0] }
 0x250   :  { %v10016_v36 = vld [vmem:[#allocation5 + $0x994] sm:$0xf]  ;;  %v8549_v37 = vor.u32 %v10216_v27, %v8546_v31  ;;  %3888 = vmatpush.bf16.msrb.mxu2 %v8293_v30 }
 0x251   :  { %v8002_v38 = vld [vmem:[#allocation5 + $0xbb0] sm:$0xf0]  ;;  %v7749_v46 = vor.u32 %v10016_v36, %v7746_v24 }
 0x252   :  { %v10144_v45 = vld [vmem:[#allocation5 + $0xd94] sm:$0xf]  ;;  %v8005_v50 = vor.u32 %v10080_v19, %v8002_v38  ;;  %3902 = vmatpush.bf16.msrb.mxu3 %v8549_v37 }
 0x253   :  { %v10208_v55 = vld [vmem:[#allocation5 + $0xf94] sm:$0xf]  ;;  %v8261_v0 = vor.u32 %v10144_v45, %v8258_v8  ;;  %3861 = vmatpush.bf16.msrb.mxu0 %v7749_v46 }
 0x254   :  { %v8514_v9 = vld [vmem:[#allocation5 + $0xfb0] sm:$0xf0]  ;;  %3875 = vmatpush.bf16.msrb.mxu1 %v8005_v50 }
 0x255   :  { %v10008_v54 = vld [vmem:[#allocation5 + $0x954] sm:$0xf]  ;;  %v8517_v3 = vor.u32 %v10208_v55, %v8514_v9  ;;  %3889 = vmatpush.bf16.msrb.mxu2 %v8261_v0 }
 0x256   :  { %v7714_v51 = vld [vmem:[#allocation5 + $0x970] sm:$0xf0] }
 0x257   :  { %v10072_v2 = vld [vmem:[#allocation5 + $0xb54] sm:$0xf]  ;;  %v7717_v24 = vor.u32 %v10008_v54, %v7714_v51  ;;  %3903 = vmatpush.bf16.msrb.mxu3 %v8517_v3 }
 0x258   :  { %v7970_v5 = vld [vmem:[#allocation5 + $0xb70] sm:$0xf0] }
 0x259   :  { %v10136_v7 = vld [vmem:[#allocation5 + $0xd54] sm:$0xf]  ;;  %v7973_v8 = vor.u32 %v10072_v2, %v7970_v5  ;;  %3862 = vmatpush.bf16.msrb.mxu0 %v7717_v24 }
 0x25a   :  { %v8226_v12 = vld [vmem:[#allocation5 + $0xd70] sm:$0xf0] }
 0x25b   :  { %v10200_v13 = vld [vmem:[#allocation5 + $0xf54] sm:$0xf]  ;;  %v8229_v19 = vor.u32 %v10136_v7, %v8226_v12  ;;  %3876 = vmatpush.bf16.msrb.mxu1 %v7973_v8 }
 0x25c   :  { %v8482_v14 = vld [vmem:[#allocation5 + $0xf70] sm:$0xf0] }
 0x25d   :  { %v10000_v22 = vld [vmem:[#allocation5 + $0x914] sm:$0xf]  ;;  %v8485_v21 = vor.u32 %v10200_v13, %v8482_v14  ;;  %3890 = vmatpush.bf16.msrb.mxu2 %v8229_v19 }
 0x25e   :  { %v7682_v23 = vld [vmem:[#allocation5 + $0x930] sm:$0xf0] }
 0x25f   :  { %v10064_v20 = vld [vmem:[#allocation5 + $0xb14] sm:$0xf]  ;;  %v7685_v30 = vor.u32 %v10000_v22, %v7682_v23  ;;  %3904 = vmatpush.bf16.msrb.mxu3 %v8485_v21 }
 0x260   :  { %v7938_v27 = vld [vmem:[#allocation5 + $0xb30] sm:$0xf0] }
 0x261   :  { %v10128_v31 = vld [vmem:[#allocation5 + $0xd14] sm:$0xf]  ;;  %v7941_v36 = vor.u32 %v10064_v20, %v7938_v27  ;;  %3863 = vmatpush.bf16.msrb.mxu0 %v7685_v30 }
 0x262   :  { %v8194_v29 = vld [vmem:[#allocation5 + $0xd30] sm:$0xf0] }
 0x263   :  { %v10192_v32 = vld [vmem:[#allocation5 + $0xf14] sm:$0xf]  ;;  %v8197_v37 = vor.u32 %v10128_v31, %v8194_v29  ;;  %3877 = vmatpush.bf16.msrb.mxu1 %v7941_v36 }
 0x264   :  { %v8450_v34 = vld [vmem:[#allocation5 + $0xf30] sm:$0xf0] }
 0x265   :  { %v9992_v38 = vld [vmem:[#allocation5 + $0x8d4] sm:$0xf]  ;;  %v8453_v9 = vor.u32 %v10192_v32, %v8450_v34  ;;  %3891 = vmatpush.bf16.msrb.mxu2 %v8197_v37 }
 0x266   :  { %v7650_v45 = vld [vmem:[#allocation5 + $0x8f0] sm:$0xf0] }
 0x267   :  { %v10056_v55 = vld [vmem:[#allocation5 + $0xad4] sm:$0xf]  ;;  %v7653_v2 = vor.u32 %v9992_v38, %v7650_v45  ;;  %3905 = vmatpush.bf16.msrb.mxu3 %v8453_v9 }
 0x268   :  { %v7906_v46 = vld [vmem:[#allocation5 + $0xaf0] sm:$0xf0] }
 0x269   :  { %v10120_v50 = vld [vmem:[#allocation5 + $0xcd4] sm:$0xf]  ;;  %v7909_v3 = vor.u32 %v10056_v55, %v7906_v46  ;;  %3864 = vmatpush.bf16.msrb.mxu0 %v7653_v2 }
 0x26a   :  { %v8162_v0 = vld [vmem:[#allocation5 + $0xcf0] sm:$0xf0] }
 0x26b   :  { %v10184_v54 = vld [vmem:[#allocation5 + $0xed4] sm:$0xf]  ;;  %v8165_v5 = vor.u32 %v10120_v50, %v8162_v0  ;;  %3878 = vmatpush.bf16.msrb.mxu1 %v7909_v3 }
 0x26c   :  { %v8418_v51 = vld [vmem:[#allocation5 + $0xef0] sm:$0xf0] }
 0x26d   :  { %v9984_v7 = vld [vmem:[#allocation5 + $0x894] sm:$0xf]  ;;  %v8421_v14 = vor.u32 %v10184_v54, %v8418_v51  ;;  %3892 = vmatpush.bf16.msrb.mxu2 %v8165_v5 }
 0x26e   :  { %v7618_v12 = vld [vmem:[#allocation5 + $0x8b0] sm:$0xf0] }
 0x26f   :  { %v10048_v13 = vld [vmem:[#allocation5 + $0xa94] sm:$0xf]  ;;  %v7621_v20 = vor.u32 %v9984_v7, %v7618_v12  ;;  %3906 = vmatpush.bf16.msrb.mxu3 %v8421_v14  ;;  %v9773_v14 = vld [vmem:[#allocation5 + $0x1f4] sm:$0xf0] }
 0x270   :  { %v7874_v24 = vld [vmem:[#allocation5 + $0xab0] sm:$0xf0] }
 0x271   :  { %v10112_v8 = vld [vmem:[#allocation5 + $0xc94] sm:$0xf]  ;;  %v7877_v21 = vor.u32 %v10048_v13, %v7874_v24  ;;  %3865 = vmatpush.bf16.msrb.mxu0 %v7621_v20  ;;  %v6760_v13 = vld [vmem:[#allocation5 + $0x1d8] sm:$0xf] }
 0x272   :  { %v8130_v19 = vld [vmem:[#allocation5 + $0xcb0] sm:$0xf0]  ;;  %v7016_v24 = vld [vmem:[#allocation5 + $0x3d8] sm:$0xf] }
 0x273   :  { %v10176_v22 = vld [vmem:[#allocation5 + $0xe94] sm:$0xf]  ;;  %v8133_v27 = vor.u32 %v10112_v8, %v8130_v19  ;;  %3879 = vmatpush.bf16.msrb.mxu1 %v7877_v21  ;;  %v9837_v19 = vld [vmem:[#allocation5 + $0x3f4] sm:$0xf0] }
 0x274   :  { %v8386_v23 = vld [vmem:[#allocation5 + $0xeb0] sm:$0xf0] }
 0x275   :  { %v9976_v31 = vld [vmem:[#allocation5 + $0x854] sm:$0xf]  ;;  %v8389_v34 = vor.u32 %v10176_v22, %v8386_v23  ;;  %3893 = vmatpush.bf16.msrb.mxu2 %v8133_v27  ;;  %v7272_v22 = vld [vmem:[#allocation5 + $0x5d8] sm:$0xf] }
 0x276   :  { %v7586_v29 = vld [vmem:[#allocation5 + $0x870] sm:$0xf0]  ;;  %v9901_v23 = vld [vmem:[#allocation5 + $0x5f4] sm:$0xf0] }
 0x277   :  { %v10040_v32 = vld [vmem:[#allocation5 + $0xa54] sm:$0xf]  ;;  %v7589_v55 = vor.u32 %v9976_v31, %v7586_v29  ;;  %3907 = vmatpush.bf16.msrb.mxu3 %v8389_v34  ;;  %v7528_v27 = vld [vmem:[#allocation5 + $0x7d8] sm:$0xf]  ;;  %v7017_v34 = vor.u32 %v9837_v19, %v7016_v24 }
 0x278   :  { %v7842_v30 = vld [vmem:[#allocation5 + $0xa70] sm:$0xf0]  ;;  %v9965_v31 = vld [vmem:[#allocation5 + $0x7f4] sm:$0xf0] }
 0x279   :  { %v10104_v36 = vld [vmem:[#allocation5 + $0xc54] sm:$0xf]  ;;  %v7845_v50 = vor.u32 %v10040_v32, %v7842_v30  ;;  %3866 = vmatpush.bf16.msrb.mxu0 %v7589_v55  ;;  %v6761_v32 = vor.u32 %v9773_v14, %v6760_v13  ;;  %v7273_v30 = vor.u32 %v9901_v23, %v7272_v22  ;;  %v9829_v55 = vld [vmem:[#allocation5 + $0x3b4] sm:$0xf0] }
 0x27a   :  { %v8098_v37 = vld [vmem:[#allocation5 + $0xc70] sm:$0xf0]  ;;  %v9821_v13 = vld [vmem:[#allocation5 + $0x374] sm:$0xf0] }
 0x27b   :  { %v10168_v38 = vld [vmem:[#allocation5 + $0xe54] sm:$0xf]  ;;  %v8101_v0 = vor.u32 %v10104_v36, %v8098_v37  ;;  %3880 = vmatpush.bf16.msrb.mxu1 %v7845_v50  ;;  %v6728_v36 = vld [vmem:[#allocation5 + $0x198] sm:$0xf] }
 0x27c   :  { %v8354_v45 = vld [vmem:[#allocation5 + $0xe70] sm:$0xf0]  ;;  %v9765_v37 = vld [vmem:[#allocation5 + $0x1b4] sm:$0xf0] }
 0x27d   :  { %v9968_v9 = vld [vmem:[#allocation5 + $0x814] sm:$0xf]  ;;  %v8357_v3 = vor.u32 %v10168_v38, %v8354_v45  ;;  %3894 = vmatpush.bf16.msrb.mxu2 %v8101_v0  ;;  %v6984_v38 = vld [vmem:[#allocation5 + $0x398] sm:$0xf]  ;;  %v7529_v45 = vor.u32 %v9965_v31, %v7528_v27 }
 0x27e   :  { %v7554_v46 = vld [vmem:[#allocation5 + $0x830] sm:$0xf0]  ;;  %v7496_v50 = vld [vmem:[#allocation5 + $0x798] sm:$0xf] }
 0x27f   :  { %v10032_v54 = vld [vmem:[#allocation5 + $0xa14] sm:$0xf]  ;;  %v7557_v8 = vor.u32 %v9968_v9, %v7554_v46  ;;  %3908 = vmatpush.bf16.msrb.mxu3 %v8357_v3  ;;  %v7240_v9 = vld [vmem:[#allocation5 + $0x598] sm:$0xf] }
 0x280   :  { %v7810_v51 = vld [vmem:[#allocation5 + $0xa30] sm:$0xf0]  ;;  %v9893_v46 = vld [vmem:[#allocation5 + $0x5b4] sm:$0xf0] }
 0x281   :  { %v10096_v2 = vld [vmem:[#allocation5 + $0xc14] sm:$0xf]  ;;  %v7813_v20 = vor.u32 %v10032_v54, %v7810_v51  ;;  %3867 = vmatpush.bf16.msrb.mxu0 %v7557_v8  ;;  %v9957_v0 = vld [vmem:[#allocation5 + $0x7b4] sm:$0xf0]  ;;  %v6729_v54 = vor.u32 %v9765_v37, %v6728_v36  ;;  %v6985_v51 = vor.u32 %v9829_v55, %v6984_v38 }
 0x282   :  { %v8066_v5 = vld [vmem:[#allocation5 + $0xc30] sm:$0xf0]  ;;  %v6696_v3 = vld [vmem:[#allocation5 + $0x158] sm:$0xf] }
 0x283   :  { %v10160_v7 = vld [vmem:[#allocation5 + $0xe14] sm:$0xf]  ;;  %v8069_v21 = vor.u32 %v10096_v2, %v8066_v5  ;;  %3881 = vmatpush.bf16.msrb.mxu1 %v7813_v20  ;;  %v7241_v2 = vor.u32 %v9893_v46, %v7240_v9  ;;  %v9757_v5 = vld [vmem:[#allocation5 + $0x174] sm:$0xf0] }
 0x284   :  { %v8322_v12 = vld [vmem:[#allocation5 + $0xe30] sm:$0xf0]  ;;  %3868 = vmatmul.bf16.vlgmr.msrb.gmra.mxu0 %v10823_v39  ;;  %v7208_v14 = vld [vmem:[#allocation5 + $0x558] sm:$0xf]  ;;  %v6697_v22 = vor.u32 %v9757_v5, %v6696_v3 }
 0x285   :  { %v8325_v29 = vor.u32 %v10160_v7, %v8322_v12  ;;  %3895 = vmatpush.bf16.msrb.mxu2 %v8069_v21  ;;  %3916 = vmatpush.bf16.msra.mxu0 %v6761_v32  ;;  %v6952_v7 = vld [vmem:[#allocation5 + $0x358] sm:$0xf]  ;;  %v7497_v12 = vor.u32 %v9957_v0, %v7496_v50 }
 0x286   :  { %v9885_v24 = vld [vmem:[#allocation5 + $0x574] sm:$0xf0]  ;;  %3882 = vmatmul.bf16.vlgmr.msrb.gmra.mxu1 %v10827_v44  ;;  %v6953_v23 = vor.u32 %v9821_v13, %v6952_v7 }
 0x287   :  { %3909 = vmatpush.bf16.msrb.mxu3 %v8325_v29  ;;  %3930 = vmatpush.bf16.msra.mxu1 %v7017_v34  ;;  %v7464_v8 = vld [vmem:[#allocation5 + $0x758] sm:$0xf]  ;;  %v7209_v20 = vor.u32 %v9885_v24, %v7208_v14 }
 0x288   :  { %3896 = vmatmul.bf16.vlgmr.msrb.gmra.mxu2 %v10825_v43  ;;  %v9949_v19 = vld [vmem:[#allocation5 + $0x774] sm:$0xf0] }
 0x289   :  { %3944 = vmatpush.bf16.msra.mxu2 %v7273_v30  ;;  %3917 = vmatpush.bf16.msra.mxu0 %v6729_v54  ;;  %v6664_v21 = vld [vmem:[#allocation5 + $0x118] sm:$0xf]  ;;  %v7465_v29 = vor.u32 %v9949_v19, %v7464_v8 }
 0x28a   :  { %3910 = vmatmul.bf16.vlgmr.msrb.gmra.mxu3 %v10829_v47  ;;  %v9749_v27 = vld [vmem:[#allocation5 + $0x134] sm:$0xf0] }
 0x28b   :  { %3958 = vmatpush.bf16.msra.mxu3 %v7529_v45  ;;  %3931 = vmatpush.bf16.msra.mxu1 %v6985_v51  ;;  %v6920_v31 = vld [vmem:[#allocation5 + $0x318] sm:$0xf]  ;;  %v6665_v38 = vor.u32 %v9749_v27, %v6664_v21 }
 0x28c   :  { %v9813_v32 = vld [vmem:[#allocation5 + $0x334] sm:$0xf0] }
 0x28d   :  { %3945 = vmatpush.bf16.msra.mxu2 %v7241_v2  ;;  %v7176_v34 = vld [vmem:[#allocation5 + $0x518] sm:$0xf]  ;;  %3918 = vmatpush.bf16.msra.mxu0 %v6697_v22  ;;  %v6921_v45 = vor.u32 %v9813_v32, %v6920_v31 }
 0x28e   :  { %v9877_v30 = vld [vmem:[#allocation5 + $0x534] sm:$0xf0] }
 0x28f   :  { %3959 = vmatpush.bf16.msra.mxu3 %v7497_v12  ;;  %v7432_v36 = vld [vmem:[#allocation5 + $0x718] sm:$0xf]  ;;  %3932 = vmatpush.bf16.msra.mxu1 %v6953_v23  ;;  %v7177_v55 = vor.u32 %v9877_v30, %v7176_v34 }
 0x290   :  { %v9941_v37 = vld [vmem:[#allocation5 + $0x734] sm:$0xf0] }
 0x291   :  { %3946 = vmatpush.bf16.msra.mxu2 %v7209_v20  ;;  %v6632_v9 = vld [vmem:[#allocation5 + $0xd8] sm:$0xf]  ;;  %v7433_v0 = vor.u32 %v9941_v37, %v7432_v36  ;;  %3919 = vmatpush.bf16.msra.mxu0 %v6665_v38 }
 0x292   :  { %v9741_v46 = vld [vmem:[#allocation5 + $0xf4] sm:$0xf0] }
 0x293   :  { %v6888_v50 = vld [vmem:[#allocation5 + $0x2d8] sm:$0xf]  ;;  %3960 = vmatpush.bf16.msra.mxu3 %v7465_v29  ;;  %v6633_v7 = vor.u32 %v9741_v46, %v6632_v9  ;;  %3933 = vmatpush.bf16.msra.mxu1 %v6921_v45 }
 0x294   :  { %v9805_v54 = vld [vmem:[#allocation5 + $0x2f4] sm:$0xf0] }
 0x295   :  { %v7144_v51 = vld [vmem:[#allocation5 + $0x4d8] sm:$0xf]  ;;  %3947 = vmatpush.bf16.msra.mxu2 %v7177_v55  ;;  %v6889_v12 = vor.u32 %v9805_v54, %v6888_v50  ;;  %3920 = vmatpush.bf16.msra.mxu0 %v6633_v7 }
 0x296   :  { %v9869_v2 = vld [vmem:[#allocation5 + $0x4f4] sm:$0xf0] }
 0x297   :  { %v7400_v3 = vld [vmem:[#allocation5 + $0x6d8] sm:$0xf]  ;;  %v7145_v13 = vor.u32 %v9869_v2, %v7144_v51  ;;  %3961 = vmatpush.bf16.msra.mxu3 %v7433_v0  ;;  %3934 = vmatpush.bf16.msra.mxu1 %v6889_v12 }
 0x298   :  { %v9933_v5 = vld [vmem:[#allocation5 + $0x6f4] sm:$0xf0] }
 0x299   :  { %v6600_v14 = vld [vmem:[#allocation5 + $0x98] sm:$0xf]  ;;  %v7401_v19 = vor.u32 %v9933_v5, %v7400_v3  ;;  %3948 = vmatpush.bf16.msra.mxu2 %v7145_v13 }
 0x29a   :  { %v9733_v24 = vld [vmem:[#allocation5 + $0xb4] sm:$0xf0] }
 0x29b   :  { %v6856_v8 = vld [vmem:[#allocation5 + $0x298] sm:$0xf]  ;;  %v6601_v31 = vor.u32 %v9733_v24, %v6600_v14  ;;  %3962 = vmatpush.bf16.msra.mxu3 %v7401_v19 }
 0x29c   :  { %v9797_v22 = vld [vmem:[#allocation5 + $0x2b4] sm:$0xf0] }
 0x29d   :  { %v7112_v23 = vld [vmem:[#allocation5 + $0x498] sm:$0xf]  ;;  %v6857_v29 = vor.u32 %v9797_v22, %v6856_v8  ;;  %3921 = vmatpush.bf16.msra.mxu0 %v6601_v31 }
 0x29e   :  { %v9861_v20 = vld [vmem:[#allocation5 + $0x4b4] sm:$0xf0] }
 0x29f   :  { %v7368_v21 = vld [vmem:[#allocation5 + $0x698] sm:$0xf]  ;;  %v7113_v32 = vor.u32 %v9861_v20, %v7112_v23  ;;  %3935 = vmatpush.bf16.msra.mxu1 %v6857_v29 }
 0x2a0   :  { %v9925_v27 = vld [vmem:[#allocation5 + $0x6b4] sm:$0xf0] }
 0x2a1   :  { %v6568_v34 = vld [vmem:[#allocation5 + $0x58] sm:$0xf]  ;;  %v7369_v37 = vor.u32 %v9925_v27, %v7368_v21  ;;  %3949 = vmatpush.bf16.msra.mxu2 %v7113_v32 }
 0x2a2   :  { %v9725_v30 = vld [vmem:[#allocation5 + $0x74] sm:$0xf0] }
 0x2a3   :  { %v6824_v36 = vld [vmem:[#allocation5 + $0x258] sm:$0xf]  ;;  %v6569_v50 = vor.u32 %v9725_v30, %v6568_v34  ;;  %3963 = vmatpush.bf16.msra.mxu3 %v7369_v37 }
 0x2a4   :  { %v9789_v38 = vld [vmem:[#allocation5 + $0x274] sm:$0xf0] }
 0x2a5   :  { %v7080_v45 = vld [vmem:[#allocation5 + $0x458] sm:$0xf]  ;;  %v6825_v51 = vor.u32 %v9789_v38, %v6824_v36  ;;  %3922 = vmatpush.bf16.msra.mxu0 %v6569_v50 }
 0x2a6   :  { %v9853_v55 = vld [vmem:[#allocation5 + $0x474] sm:$0xf0] }
 0x2a7   :  { %v7336_v9 = vld [vmem:[#allocation5 + $0x658] sm:$0xf]  ;;  %v7081_v2 = vor.u32 %v9853_v55, %v7080_v45  ;;  %3936 = vmatpush.bf16.msra.mxu1 %v6825_v51 }
 0x2a8   :  { %v9917_v46 = vld [vmem:[#allocation5 + $0x674] sm:$0xf0] }
 0x2a9   :  { %v6536_v0 = vld [vmem:[#allocation5 + $0x18] sm:$0xf]  ;;  %v7337_v12 = vor.u32 %v9917_v46, %v7336_v9  ;;  %3950 = vmatpush.bf16.msra.mxu2 %v7081_v2 }
 0x2aa   :  { %v9717_v54 = vld [vmem:[#allocation5 + $0x34] sm:$0xf0] }
 0x2ab   :  { %v6792_v3 = vld [vmem:[#allocation5 + $0x218] sm:$0xf]  ;;  %v6537_v23 = vor.u32 %v9717_v54, %v6536_v0  ;;  %3964 = vmatpush.bf16.msra.mxu3 %v7337_v12 }
 0x2ac   :  { %v9781_v5 = vld [vmem:[#allocation5 + $0x234] sm:$0xf0] }
 0x2ad   :  { %v7048_v7 = vld [vmem:[#allocation5 + $0x418] sm:$0xf]  ;;  %v6793_v31 = vor.u32 %v9781_v5, %v6792_v3  ;;  %3923 = vmatpush.bf16.msra.mxu0 %v6537_v23 }
 0x2ae   :  { %v9845_v13 = vld [vmem:[#allocation5 + $0x434] sm:$0xf0] }
 0x2af   :  { %v7304_v14 = vld [vmem:[#allocation5 + $0x618] sm:$0xf]  ;;  %v7049_v29 = vor.u32 %v9845_v13, %v7048_v7  ;;  %3937 = vmatpush.bf16.msra.mxu1 %v6793_v31 }
 0x2b0   :  { %v9909_v24 = vld [vmem:[#allocation5 + $0x634] sm:$0xf0]  ;;  %3924 = vmatmul.bf16.vlgmr.msra.gmra.mxu0 %v10811_v58 }
 0x2b1   :  { %v7784_v8 = vld [vmem:[#allocation5 + $0x9d8] sm:$0xf]  ;;  %v7305_v30 = vor.u32 %v9909_v24, %v7304_v14  ;;  %3951 = vmatpush.bf16.msra.mxu2 %v7049_v29 }
 0x2b2   :  { %v10029_v19 = vld [vmem:[#allocation5 + $0x9f4] sm:$0xf0]  ;;  %3938 = vmatmul.bf16.vlgmr.msra.gmra.mxu1 %v10817_v10 }
 0x2b3   :  { %v8040_v22 = vld [vmem:[#allocation5 + $0xbd8] sm:$0xf]  ;;  %v7785_v36 = vor.u32 %v10029_v19, %v7784_v8  ;;  %3965 = vmatpush.bf16.msra.mxu3 %v7305_v30 }
 0x2b4   :  { %v10093_v20 = vld [vmem:[#allocation5 + $0xbf4] sm:$0xf0]  ;;  %3952 = vmatmul.bf16.vlgmr.msra.gmra.mxu2 %v10813_v1 }
 0x2b5   :  { %v8296_v21 = vld [vmem:[#allocation5 + $0xdd8] sm:$0xf]  ;;  %v8041_v37 = vor.u32 %v10093_v20, %v8040_v22  ;;  %3972 = vmatpush.bf16.msrb.mxu0 %v7785_v36 }
 0x2b6   :  { %v10157_v27 = vld [vmem:[#allocation5 + $0xdf4] sm:$0xf0]  ;;  %3966 = vmatmul.bf16.vlgmr.msra.gmra.mxu3 %v10819_v17 }
 0x2b7   :  { %v8552_v32 = vld [vmem:[#allocation5 + $0xfd8] sm:$0xf]  ;;  %v8297_v38 = vor.u32 %v10157_v27, %v8296_v21  ;;  %3986 = vmatpush.bf16.msrb.mxu1 %v8041_v37 }
 0x2b8   :  { %v10221_v34 = vld [vmem:[#allocation5 + $0xff4] sm:$0xf0] }
 0x2b9   :  { %v7752_v45 = vld [vmem:[#allocation5 + $0x998] sm:$0xf]  ;;  %v8553_v46 = vor.u32 %v10221_v34, %v8552_v32  ;;  %4000 = vmatpush.bf16.msrb.mxu2 %v8297_v38 }
 0x2ba   :  { %v10021_v55 = vld [vmem:[#allocation5 + $0x9b4] sm:$0xf0] }
 0x2bb   :  { %v8008_v9 = vld [vmem:[#allocation5 + $0xb98] sm:$0xf]  ;;  %v7753_v3 = vor.u32 %v10021_v55, %v7752_v45  ;;  %4014 = vmatpush.bf16.msrb.mxu3 %v8553_v46 }
 0x2bc   :  { %v10085_v50 = vld [vmem:[#allocation5 + $0xbb4] sm:$0xf0] }
 0x2bd   :  { %v8264_v0 = vld [vmem:[#allocation5 + $0xd98] sm:$0xf]  ;;  %v8009_v5 = vor.u32 %v10085_v50, %v8008_v9  ;;  %3973 = vmatpush.bf16.msrb.mxu0 %v7753_v3 }
 0x2be   :  { %v10149_v54 = vld [vmem:[#allocation5 + $0xdb4] sm:$0xf0] }
 0x2bf   :  { %v8520_v51 = vld [vmem:[#allocation5 + $0xf98] sm:$0xf]  ;;  %v8265_v7 = vor.u32 %v10149_v54, %v8264_v0  ;;  %3987 = vmatpush.bf16.msrb.mxu1 %v8009_v5 }
 0x2c0   :  { %v10213_v2 = vld [vmem:[#allocation5 + $0xfb4] sm:$0xf0] }
 0x2c1   :  { %v7720_v12 = vld [vmem:[#allocation5 + $0x958] sm:$0xf]  ;;  %v8521_v24 = vor.u32 %v10213_v2, %v8520_v51  ;;  %4001 = vmatpush.bf16.msrb.mxu2 %v8265_v7 }
 0x2c2   :  { %v10013_v13 = vld [vmem:[#allocation5 + $0x974] sm:$0xf0] }
 0x2c3   :  { %v7976_v14 = vld [vmem:[#allocation5 + $0xb58] sm:$0xf]  ;;  %v7721_v21 = vor.u32 %v10013_v13, %v7720_v12  ;;  %4015 = vmatpush.bf16.msrb.mxu3 %v8521_v24 }
 0x2c4   :  { %v10077_v8 = vld [vmem:[#allocation5 + $0xb74] sm:$0xf0] }
 0x2c5   :  { %v8232_v19 = vld [vmem:[#allocation5 + $0xd58] sm:$0xf]  ;;  %v7977_v27 = vor.u32 %v10077_v8, %v7976_v14  ;;  %3974 = vmatpush.bf16.msrb.mxu0 %v7721_v21 }
 0x2c6   :  { %v10141_v22 = vld [vmem:[#allocation5 + $0xd74] sm:$0xf0] }
 0x2c7   :  { %v8488_v23 = vld [vmem:[#allocation5 + $0xf58] sm:$0xf]  ;;  %v8233_v31 = vor.u32 %v10141_v22, %v8232_v19  ;;  %3988 = vmatpush.bf16.msrb.mxu1 %v7977_v27 }
 0x2c8   :  { %v10205_v20 = vld [vmem:[#allocation5 + $0xf74] sm:$0xf0] }
 0x2c9   :  { %v7688_v29 = vld [vmem:[#allocation5 + $0x918] sm:$0xf]  ;;  %v8489_v30 = vor.u32 %v10205_v20, %v8488_v23  ;;  %4002 = vmatpush.bf16.msrb.mxu2 %v8233_v31 }
 0x2ca   :  { %v10005_v32 = vld [vmem:[#allocation5 + $0x934] sm:$0xf0] }
 0x2cb   :  { %v7944_v34 = vld [vmem:[#allocation5 + $0xb18] sm:$0xf]  ;;  %v7689_v9 = vor.u32 %v10005_v32, %v7688_v29  ;;  %4016 = vmatpush.bf16.msrb.mxu3 %v8489_v30  ;;  %v10947_v29 = vpop.f32.mrf.mxu0  ;;  %v10949_v30 = vpop.f32.mrf.mxu1 }
 0x2cc   :  { %v10069_v36 = vld [vmem:[#allocation5 + $0xb34] sm:$0xf0]  ;;  %11215 = vst [vmem:[#allocation27_spill] sm:$0xff] %v10947_v29  ;;  %v10081_v29 = vld [vmem:[#allocation5 + $0xb9c] sm:$0xf] }
 0x2cd   :  { %v8200_v37 = vld [vmem:[#allocation5 + $0xd18] sm:$0xf]  ;;  %v7945_v46 = vor.u32 %v10069_v36, %v7944_v34  ;;  %3975 = vmatpush.bf16.msrb.mxu0 %v7689_v9  ;;  %11216 = vst [vmem:[#allocation28_spill] sm:$0xff] %v10949_v30 }
 0x2ce   :  { %v10133_v38 = vld [vmem:[#allocation5 + $0xd34] sm:$0xf0] }
 0x2cf   :  { %v8456_v45 = vld [vmem:[#allocation5 + $0xf18] sm:$0xf]  ;;  %v8201_v50 = vor.u32 %v10133_v38, %v8200_v37  ;;  %3989 = vmatpush.bf16.msrb.mxu1 %v7945_v46 }
 0x2d0   :  { %v10197_v55 = vld [vmem:[#allocation5 + $0xf34] sm:$0xf0] }
 0x2d1   :  { %v7656_v0 = vld [vmem:[#allocation5 + $0x8d8] sm:$0xf]  ;;  %v8457_v2 = vor.u32 %v10197_v55, %v8456_v45  ;;  %4003 = vmatpush.bf16.msrb.mxu2 %v8201_v50 }
 0x2d2   :  { %v9997_v54 = vld [vmem:[#allocation5 + $0x8f4] sm:$0xf0] }
 0x2d3   :  { %v7912_v51 = vld [vmem:[#allocation5 + $0xad8] sm:$0xf]  ;;  %v7657_v14 = vor.u32 %v9997_v54, %v7656_v0  ;;  %4017 = vmatpush.bf16.msrb.mxu3 %v8457_v2 }
 0x2d4   :  { %v10061_v3 = vld [vmem:[#allocation5 + $0xaf4] sm:$0xf0] }
 0x2d5   :  { %v8168_v5 = vld [vmem:[#allocation5 + $0xcd8] sm:$0xf]  ;;  %v7913_v24 = vor.u32 %v10061_v3, %v7912_v51  ;;  %3976 = vmatpush.bf16.msrb.mxu0 %v7657_v14 }
 0x2d6   :  { %v10125_v7 = vld [vmem:[#allocation5 + $0xcf4] sm:$0xf0] }
 0x2d7   :  { %v8424_v12 = vld [vmem:[#allocation5 + $0xed8] sm:$0xf]  ;;  %v8169_v8 = vor.u32 %v10125_v7, %v8168_v5  ;;  %3990 = vmatpush.bf16.msrb.mxu1 %v7913_v24 }
 0x2d8   :  { %v10189_v13 = vld [vmem:[#allocation5 + $0xef4] sm:$0xf0] }
 0x2d9   :  { %v7624_v19 = vld [vmem:[#allocation5 + $0x898] sm:$0xf]  ;;  %v8425_v20 = vor.u32 %v10189_v13, %v8424_v12  ;;  %4004 = vmatpush.bf16.msrb.mxu2 %v8169_v8  ;;  %v10951_v12 = vpop.f32.mrf.mxu2 }
 0x2da   :  { %v9989_v22 = vld [vmem:[#allocation5 + $0x8b4] sm:$0xf0]  ;;  %11217 = vst [vmem:[#allocation29_spill] sm:$0xff] %v10951_v12  ;;  %v9825_v12 = vld [vmem:[#allocation5 + $0x39c] sm:$0xf] }
 0x2db   :  { %v7880_v23 = vld [vmem:[#allocation5 + $0xa98] sm:$0xf]  ;;  %v7625_v36 = vor.u32 %v9989_v22, %v7624_v19  ;;  %4018 = vmatpush.bf16.msrb.mxu3 %v8425_v20 }
 0x2dc   :  { %v10053_v21 = vld [vmem:[#allocation5 + $0xab4] sm:$0xf0] }
 0x2dd   :  { %v8136_v27 = vld [vmem:[#allocation5 + $0xc98] sm:$0xf]  ;;  %v7881_v37 = vor.u32 %v10053_v21, %v7880_v23  ;;  %3977 = vmatpush.bf16.msrb.mxu0 %v7625_v36  ;;  %v9833_v36 = vld [vmem:[#allocation5 + $0x3dc] sm:$0xf] }
 0x2de   :  { %v10117_v31 = vld [vmem:[#allocation5 + $0xcb4] sm:$0xf0] }
 0x2df   :  { %v8392_v32 = vld [vmem:[#allocation5 + $0xe98] sm:$0xf]  ;;  %v8137_v38 = vor.u32 %v10117_v31, %v8136_v27  ;;  %3991 = vmatpush.bf16.msrb.mxu1 %v7881_v37  ;;  %v10953_v27 = vpop.f32.mrf.mxu3  ;;  %v10955_v31 = vpop.f32.mrf.mxu0 }
 0x2e0   :  { %v10181_v34 = vld [vmem:[#allocation5 + $0xeb4] sm:$0xf0]  ;;  %11218 = vst [vmem:[#allocation30_spill] sm:$0xff] %v10953_v27 }
 0x2e1   :  { %v7592_v45 = vld [vmem:[#allocation5 + $0x858] sm:$0xf]  ;;  %v8393_v46 = vor.u32 %v10181_v34, %v8392_v32  ;;  %4005 = vmatpush.bf16.msrb.mxu2 %v8137_v38  ;;  %v9769_v32 = vld [vmem:[#allocation5 + $0x1dc] sm:$0xf]  ;;  %v10959_v30 = vpop.f32.mrf.mxu2 }
 0x2e2   :  { %v9981_v55 = vld [vmem:[#allocation5 + $0x874] sm:$0xf0]  ;;  %v6762_v34 = vld [vmem:[#allocation5 + $0x1f8] sm:$0xf0] }
 0x2e3   :  { %v7848_v9 = vld [vmem:[#allocation5 + $0xa58] sm:$0xf]  ;;  %v7593_v3 = vor.u32 %v9981_v55, %v7592_v45  ;;  %4019 = vmatpush.bf16.msrb.mxu3 %v8393_v46  ;;  %v10957_v45 = vpop.f32.mrf.mxu1  ;;  %v7018_v38 = vld [vmem:[#allocation5 + $0x3f8] sm:$0xf0] }
 0x2e4   :  { %v10045_v50 = vld [vmem:[#allocation5 + $0xa74] sm:$0xf0]  ;;  %v9897_v55 = vld [vmem:[#allocation5 + $0x5dc] sm:$0xf]  ;;  %v7021_v15 = vor.u32 %v9833_v36, %v7018_v38 }
 0x2e5   :  { %v8104_v0 = vld [vmem:[#allocation5 + $0xc58] sm:$0xf]  ;;  %v7849_v13 = vor.u32 %v10045_v50, %v7848_v9  ;;  %3978 = vmatpush.bf16.msrb.mxu0 %v7593_v3  ;;  %v7274_v9 = vld [vmem:[#allocation5 + $0x5f8] sm:$0xf0] }
 0x2e6   :  { %v10109_v54 = vld [vmem:[#allocation5 + $0xc74] sm:$0xf0]  ;;  %v7277_v27 = vor.u32 %v9897_v55, %v7274_v9  ;;  %v9881_v36 = vld [vmem:[#allocation5 + $0x55c] sm:$0xf] }
 0x2e7   :  { %v8360_v51 = vld [vmem:[#allocation5 + $0xe58] sm:$0xf]  ;;  %v8105_v14 = vor.u32 %v10109_v54, %v8104_v0  ;;  %3992 = vmatpush.bf16.msrb.mxu1 %v7849_v13  ;;  %v9961_v0 = vld [vmem:[#allocation5 + $0x7dc] sm:$0xf]  ;;  %v10964_v38 = vpop.f32.mrf.mxu0 }
 0x2e8   :  { %v10173_v2 = vld [vmem:[#allocation5 + $0xe74] sm:$0xf0]  ;;  %v7530_v54 = vld [vmem:[#allocation5 + $0x7f8] sm:$0xf0] }
 0x2e9   :  { %v7560_v5 = vld [vmem:[#allocation5 + $0x818] sm:$0xf]  ;;  %v8361_v22 = vor.u32 %v10173_v2, %v8360_v51  ;;  %4006 = vmatpush.bf16.msrb.mxu2 %v8105_v14  ;;  %v6765_v2 = vor.u32 %v9769_v32, %v6762_v34  ;;  %v7533_v3 = vor.u32 %v9961_v0, %v7530_v54  ;;  %v9953_v13 = vld [vmem:[#allocation5 + $0x79c] sm:$0xf] }
 0x2ea   :  { %v9973_v7 = vld [vmem:[#allocation5 + $0x834] sm:$0xf0]  ;;  %v7498_v14 = vld [vmem:[#allocation5 + $0x7b8] sm:$0xf0] }
 0x2eb   :  { %v7816_v24 = vld [vmem:[#allocation5 + $0xa18] sm:$0xf]  ;;  %v7561_v37 = vor.u32 %v9973_v7, %v7560_v5  ;;  %4020 = vmatpush.bf16.msrb.mxu3 %v8361_v22  ;;  %v6986_v5 = vld [vmem:[#allocation5 + $0x3b8] sm:$0xf0]  ;;  %v7501_v32 = vor.u32 %v9953_v13, %v7498_v14 }
 0x2ec   :  { %v10037_v8 = vld [vmem:[#allocation5 + $0xa34] sm:$0xf0]  ;;  %v9889_v7 = vld [vmem:[#allocation5 + $0x59c] sm:$0xf] }
 0x2ed   :  { %v8072_v19 = vld [vmem:[#allocation5 + $0xc18] sm:$0xf]  ;;  %v7817_v46 = vor.u32 %v10037_v8, %v7816_v24  ;;  %3979 = vmatpush.bf16.msrb.mxu0 %v7561_v37  ;;  %v6733_v24 = vor.u32 %v9761_v49, %v6730_v61  ;;  %v10961_v8 = vpop.f32.mrf.mxu3  ;;  %v7245_v22 = vor.u32 %v9889_v7, %v7242_v48  ;;  %v6954_v34 = vld [vmem:[#allocation5 + $0x378] sm:$0xf0]  ;;  %v10971_v7 = vpop.f32.mrf.mxu2 }
 0x2ee   :  { %v10101_v23 = vld [vmem:[#allocation5 + $0xc34] sm:$0xf0]  ;;  %11219 = vst [vmem:[#allocation31_spill] sm:$0xff] %v10961_v8  ;;  %v7210_v37 = vld [vmem:[#allocation5 + $0x578] sm:$0xf0] }
 0x2ef   :  { %v8328_v20 = vld [vmem:[#allocation5 + $0xe18] sm:$0xf]  ;;  %v8073_v50 = vor.u32 %v10101_v23, %v8072_v19  ;;  %3993 = vmatpush.bf16.msrb.mxu1 %v7817_v46  ;;  %v6989_v19 = vor.u32 %v9825_v12, %v6986_v5  ;;  %v9753_v23 = vld [vmem:[#allocation5 + $0x15c] sm:$0xf] }
 0x2f0   :  { %v10165_v21 = vld [vmem:[#allocation5 + $0xe34] sm:$0xf0]  ;;  %3980 = vmatmul.bf16.vlgmr.msrb.gmra.mxu0 %v10823_v39  ;;  %v9945_v61 = vld [vmem:[#allocation5 + $0x75c] sm:$0xf] }
 0x2f1   :  { %v8329_v51 = vor.u32 %v10165_v21, %v8328_v20  ;;  %4007 = vmatpush.bf16.msrb.mxu2 %v8073_v50  ;;  %4028 = vmatpush.bf16.msra.mxu0 %v6765_v2  ;;  %v6698_v20 = vld [vmem:[#allocation5 + $0x178] sm:$0xf0] }
 0x2f2   :  { %v9817_v21 = vld [vmem:[#allocation5 + $0x35c] sm:$0xf]  ;;  %3994 = vmatmul.bf16.vlgmr.msrb.gmra.mxu1 %v10827_v44  ;;  %v6701_v48 = vor.u32 %v9753_v23, %v6698_v20 }
 0x2f3   :  { %4021 = vmatpush.bf16.msrb.mxu3 %v8329_v51  ;;  %4042 = vmatpush.bf16.msra.mxu1 %v7021_v15  ;;  %v7466_v49 = vld [vmem:[#allocation5 + $0x778] sm:$0xf0]  ;;  %v10968_v15 = vpop.f32.mrf.mxu1  ;;  %v6957_v12 = vor.u32 %v9817_v21, %v6954_v34 }
 0x2f4   :  { %4008 = vmatmul.bf16.vlgmr.msrb.gmra.mxu2 %v10825_v43  ;;  %v9745_v55 = vld [vmem:[#allocation5 + $0x11c] sm:$0xf]  ;;  %v7469_v50 = vor.u32 %v9945_v61, %v7466_v49  ;;  %v10975_v49 = vpop.f32.mrf.mxu0 }
 0x2f5   :  { %4056 = vmatpush.bf16.msra.mxu2 %v7277_v27  ;;  %4029 = vmatpush.bf16.msra.mxu0 %v6733_v24  ;;  %v7213_v27 = vor.u32 %v9881_v36, %v7210_v37  ;;  %v6666_v9 = vld [vmem:[#allocation5 + $0x138] sm:$0xf0]  ;;  %v10973_v34 = vpop.f32.mrf.mxu3  ;;  %11221 = vst [vmem:[#allocation33_spill] sm:$0xff] %v10975_v49 }
 0x2f6   :  { %4022 = vmatmul.bf16.vlgmr.msrb.gmra.mxu3 %v10829_v47  ;;  %v9809_v46 = vld [vmem:[#allocation5 + $0x31c] sm:$0xf]  ;;  %v6669_v5 = vor.u32 %v9745_v55, %v6666_v9  ;;  %11220 = vst [vmem:[#allocation32_spill] sm:$0xff] %v10973_v34 }
 0x2f7   :  { %4070 = vmatpush.bf16.msra.mxu3 %v7533_v3  ;;  %4043 = vmatpush.bf16.msra.mxu1 %v6989_v19  ;;  %v6922_v0 = vld [vmem:[#allocation5 + $0x338] sm:$0xf0] }
 0x2f8   :  { %v9873_v54 = vld [vmem:[#allocation5 + $0x51c] sm:$0xf]  ;;  %v6925_v13 = vor.u32 %v9809_v46, %v6922_v0 }
 0x2f9   :  { %4057 = vmatpush.bf16.msra.mxu2 %v7245_v22  ;;  %v7178_v51 = vld [vmem:[#allocation5 + $0x538] sm:$0xf0]  ;;  %4030 = vmatpush.bf16.msra.mxu0 %v6701_v48 }
 0x2fa   :  { %v9937_v2 = vld [vmem:[#allocation5 + $0x71c] sm:$0xf]  ;;  %v7181_v14 = vor.u32 %v9873_v54, %v7178_v51 }
 0x2fb   :  { %4071 = vmatpush.bf16.msra.mxu3 %v7501_v32  ;;  %v7434_v3 = vld [vmem:[#allocation5 + $0x738] sm:$0xf0]  ;;  %4044 = vmatpush.bf16.msra.mxu1 %v6957_v12  ;;  %v10977_v46 = vpop.f32.mrf.mxu1 }
 0x2fc   :  { %v9737_v24 = vld [vmem:[#allocation5 + $0xdc] sm:$0xf]  ;;  %v7437_v23 = vor.u32 %v9937_v2, %v7434_v3  ;;  %11222 = vst [vmem:[#allocation34_spill] sm:$0xff] %v10977_v46 }
 0x2fd   :  { %4058 = vmatpush.bf16.msra.mxu2 %v7213_v27  ;;  %v6634_v19 = vld [vmem:[#allocation5 + $0xf8] sm:$0xf0]  ;;  %4031 = vmatpush.bf16.msra.mxu0 %v6669_v5 }
 0x2fe   :  { %v9801_v22 = vld [vmem:[#allocation5 + $0x2dc] sm:$0xf]  ;;  %v6637_v61 = vor.u32 %v9737_v24, %v6634_v19 }
 0x2ff   :  { %4072 = vmatpush.bf16.msra.mxu3 %v7469_v50  ;;  %v6890_v20 = vld [vmem:[#allocation5 + $0x2f8] sm:$0xf0]  ;;  %4045 = vmatpush.bf16.msra.mxu1 %v6925_v13 }
 0x300   :  { %v9865_v21 = vld [vmem:[#allocation5 + $0x4dc] sm:$0xf]  ;;  %v6893_v48 = vor.u32 %v9801_v22, %v6890_v20 }
 0x301   :  { %v7146_v32 = vld [vmem:[#allocation5 + $0x4f8] sm:$0xf0]  ;;  %4059 = vmatpush.bf16.msra.mxu2 %v7181_v14  ;;  %4032 = vmatpush.bf16.msra.mxu0 %v6637_v61 }
 0x302   :  { %v9929_v36 = vld [vmem:[#allocation5 + $0x6dc] sm:$0xf]  ;;  %v7149_v12 = vor.u32 %v9865_v21, %v7146_v32 }
 0x303   :  { %v7402_v37 = vld [vmem:[#allocation5 + $0x6f8] sm:$0xf0]  ;;  %4073 = vmatpush.bf16.msra.mxu3 %v7437_v23  ;;  %4046 = vmatpush.bf16.msra.mxu1 %v6893_v48  ;;  %v10981_v48 = vpop.f32.mrf.mxu3  ;;  %v10985_v33 = vpop.f32.mrf.mxu1 }
 0x304   :  { %v9729_v27 = vld [vmem:[#allocation5 + $0x9c] sm:$0xf]  ;;  %v7405_v50 = vor.u32 %v9929_v36, %v7402_v37  ;;  %v10979_v36 = vpop.f32.mrf.mxu2  ;;  %11224 = vst [vmem:[#allocation36_spill] sm:$0xff] %v10981_v48 }
 0x305   :  { %v6602_v55 = vld [vmem:[#allocation5 + $0xb8] sm:$0xf0]  ;;  %4060 = vmatpush.bf16.msra.mxu2 %v7149_v12  ;;  %11223 = vst [vmem:[#allocation35_spill] sm:$0xff] %v10979_v36  ;;  %v10983_v36 = vpop.f32.mrf.mxu0 }
 0x306   :  { %v9793_v9 = vld [vmem:[#allocation5 + $0x29c] sm:$0xf]  ;;  %v6605_v5 = vor.u32 %v9729_v27, %v6602_v55  ;;  %11225 = vst [vmem:[#allocation37_spill] sm:$0xff] %v10983_v36 }
 0x307   :  { %v6858_v0 = vld [vmem:[#allocation5 + $0x2b8] sm:$0xf0]  ;;  %4074 = vmatpush.bf16.msra.mxu3 %v7405_v50  ;;  %11226 = vst [vmem:[#allocation38_spill] sm:$0xff] %v10985_v33 }
 0x308   :  { %v9857_v54 = vld [vmem:[#allocation5 + $0x49c] sm:$0xf]  ;;  %v6861_v13 = vor.u32 %v9793_v9, %v6858_v0  ;;  %4033 = vmatpush.bf16.msra.mxu0 %v6605_v5 }
 0x309   :  { %v7114_v51 = vld [vmem:[#allocation5 + $0x4b8] sm:$0xf0] }
 0x30a   :  { %v9921_v2 = vld [vmem:[#allocation5 + $0x69c] sm:$0xf]  ;;  %v7117_v14 = vor.u32 %v9857_v54, %v7114_v51  ;;  %4047 = vmatpush.bf16.msra.mxu1 %v6861_v13 }
 0x30b   :  { %v7370_v3 = vld [vmem:[#allocation5 + $0x6b8] sm:$0xf0] }
 0x30c   :  { %v9721_v24 = vld [vmem:[#allocation5 + $0x5c] sm:$0xf]  ;;  %v7373_v20 = vor.u32 %v9921_v2, %v7370_v3  ;;  %4061 = vmatpush.bf16.msra.mxu2 %v7117_v14  ;;  %v10987_v4 = vpop.f32.mrf.mxu2 }
 0x30d   :  { %v6570_v19 = vld [vmem:[#allocation5 + $0x78] sm:$0xf0] }
 0x30e   :  { %v9785_v22 = vld [vmem:[#allocation5 + $0x25c] sm:$0xf]  ;;  %v6573_v49 = vor.u32 %v9721_v24, %v6570_v19  ;;  %4075 = vmatpush.bf16.msra.mxu3 %v7373_v20 }
 0x30f   :  { %v6826_v21 = vld [vmem:[#allocation5 + $0x278] sm:$0xf0] }
 0x310   :  { %v9849_v32 = vld [vmem:[#allocation5 + $0x45c] sm:$0xf]  ;;  %v6829_v12 = vor.u32 %v9785_v22, %v6826_v21  ;;  %4034 = vmatpush.bf16.msra.mxu0 %v6573_v49 }
 0x311   :  { %v7082_v23 = vld [vmem:[#allocation5 + $0x478] sm:$0xf0] }
 0x312   :  { %v9913_v37 = vld [vmem:[#allocation5 + $0x65c] sm:$0xf]  ;;  %v7085_v55 = vor.u32 %v9849_v32, %v7082_v23  ;;  %4048 = vmatpush.bf16.msra.mxu1 %v6829_v12 }
 0x313   :  { %v7338_v46 = vld [vmem:[#allocation5 + $0x678] sm:$0xf0] }
 0x314   :  { %v9713_v61 = vld [vmem:[#allocation5 + $0x1c] sm:$0xf]  ;;  %v7341_v54 = vor.u32 %v9913_v37, %v7338_v46  ;;  %4062 = vmatpush.bf16.msra.mxu2 %v7085_v55 }
 0x315   :  { %v6538_v27 = vld [vmem:[#allocation5 + $0x38] sm:$0xf0] }
 0x316   :  { %v9777_v9 = vld [vmem:[#allocation5 + $0x21c] sm:$0xf]  ;;  %v6541_v13 = vor.u32 %v9713_v61, %v6538_v27  ;;  %4076 = vmatpush.bf16.msra.mxu3 %v7341_v54 }
 0x317   :  { %v6794_v50 = vld [vmem:[#allocation5 + $0x238] sm:$0xf0] }
 0x318   :  { %v9841_v0 = vld [vmem:[#allocation5 + $0x41c] sm:$0xf]  ;;  %v6797_v32 = vor.u32 %v9777_v9, %v6794_v50  ;;  %4035 = vmatpush.bf16.msra.mxu0 %v6541_v13  ;;  %v10989_v50 = vpop.f32.mrf.mxu3 }
 0x319   :  { %v7050_v51 = vld [vmem:[#allocation5 + $0x438] sm:$0xf0] }
 0x31a   :  { %v9905_v2 = vld [vmem:[#allocation5 + $0x61c] sm:$0xf]  ;;  %v7053_v20 = vor.u32 %v9841_v0, %v7050_v51  ;;  %4049 = vmatpush.bf16.msra.mxu1 %v6797_v32  ;;  %v10991_v0 = vpop.f32.mrf.mxu0 }
 0x31b   :  { %v7306_v3 = vld [vmem:[#allocation5 + $0x638] sm:$0xf0]  ;;  %4036 = vmatmul.bf16.vlgmr.msra.gmra.mxu0 %v10811_v58 }
 0x31c   :  { %v10025_v5 = vld [vmem:[#allocation5 + $0x9dc] sm:$0xf]  ;;  %v7309_v37 = vor.u32 %v9905_v2, %v7306_v3  ;;  %4063 = vmatpush.bf16.msra.mxu2 %v7053_v20 }
 0x31d   :  { %v7786_v24 = vld [vmem:[#allocation5 + $0x9f8] sm:$0xf0]  ;;  %4050 = vmatmul.bf16.vlgmr.msra.gmra.mxu1 %v10817_v10 }
 0x31e   :  { %v10089_v19 = vld [vmem:[#allocation5 + $0xbdc] sm:$0xf]  ;;  %v7789_v48 = vor.u32 %v10025_v5, %v7786_v24  ;;  %4077 = vmatpush.bf16.msra.mxu3 %v7309_v37  ;;  %v10993_v24 = vpop.f32.mrf.mxu1 }
 0x31f   :  { %v8042_v14 = vld [vmem:[#allocation5 + $0xbf8] sm:$0xf0]  ;;  %4064 = vmatmul.bf16.vlgmr.msra.gmra.mxu2 %v10813_v1 }
 0x320   :  { %v10153_v22 = vld [vmem:[#allocation5 + $0xddc] sm:$0xf]  ;;  %v8045_v36 = vor.u32 %v10089_v19, %v8042_v14  ;;  %4084 = vmatpush.bf16.msrb.mxu0 %v7789_v48 }
 0x321   :  { %v8298_v21 = vld [vmem:[#allocation5 + $0xdf8] sm:$0xf0]  ;;  %4078 = vmatmul.bf16.vlgmr.msra.gmra.mxu3 %v10819_v17 }
 0x322   :  { %v10217_v46 = vld [vmem:[#allocation5 + $0xfdc] sm:$0xf]  ;;  %v8301_v35 = vor.u32 %v10153_v22, %v8298_v21  ;;  %4098 = vmatpush.bf16.msrb.mxu1 %v8045_v36 }
 0x323   :  { %v8554_v23 = vld [vmem:[#allocation5 + $0xff8] sm:$0xf0] }
 0x324   :  { %v10017_v34 = vld [vmem:[#allocation5 + $0x99c] sm:$0xf]  ;;  %v8557_v49 = vor.u32 %v10217_v46, %v8554_v23  ;;  %4112 = vmatpush.bf16.msrb.mxu2 %v8301_v35  ;;  %v10999_v23 = vpop.f32.mrf.mxu2 }
 0x325   :  { %v7754_v8 = vld [vmem:[#allocation5 + $0x9b8] sm:$0xf0] }
 0x326   :  { %v8010_v61 = vld [vmem:[#allocation5 + $0xbb8] sm:$0xf0]  ;;  %v7757_v9 = vor.u32 %v10017_v34, %v7754_v8  ;;  %4126 = vmatpush.bf16.msrb.mxu3 %v8557_v49  ;;  %v11001_v49 = vpop.f32.mrf.mxu3 }
 0x327   :  { %v10145_v27 = vld [vmem:[#allocation5 + $0xd9c] sm:$0xf]  ;;  %v8013_v54 = vor.u32 %v10081_v29, %v8010_v61 }
 0x328   :  { %v8266_v33 = vld [vmem:[#allocation5 + $0xdb8] sm:$0xf0]  ;;  %4085 = vmatpush.bf16.msrb.mxu0 %v7757_v9 }
 0x329   :  { %v10209_v12 = vld [vmem:[#allocation5 + $0xf9c] sm:$0xf]  ;;  %v8269_v51 = vor.u32 %v10145_v27, %v8266_v33  ;;  %4099 = vmatpush.bf16.msrb.mxu1 %v8013_v54 }
 0x32a   :  { %v8522_v55 = vld [vmem:[#allocation5 + $0xfb8] sm:$0xf0] }
 0x32b   :  { %v10009_v2 = vld [vmem:[#allocation5 + $0x95c] sm:$0xf]  ;;  %v8525_v19 = vor.u32 %v10209_v12, %v8522_v55  ;;  %4113 = vmatpush.bf16.msrb.mxu2 %v8269_v51 }
 0x32c   :  { %v7722_v3 = vld [vmem:[#allocation5 + $0x978] sm:$0xf0] }
 0x32d   :  { %v10073_v5 = vld [vmem:[#allocation5 + $0xb5c] sm:$0xf]  ;;  %v7725_v33 = vor.u32 %v10009_v2, %v7722_v3  ;;  %4127 = vmatpush.bf16.msrb.mxu3 %v8525_v19  ;;  %v11003_v3 = vpop.f32.mrf.mxu0 }
 0x32e   :  { %v7978_v13 = vld [vmem:[#allocation5 + $0xb78] sm:$0xf0] }
 0x32f   :  { %v10137_v48 = vld [vmem:[#allocation5 + $0xd5c] sm:$0xf]  ;;  %v7981_v35 = vor.u32 %v10073_v5, %v7978_v13  ;;  %4086 = vmatpush.bf16.msrb.mxu0 %v7725_v33  ;;  %v11227_v13 = vperm.slane %v10843_v63, 0 }
 0x330   :  { %v8234_v8 = vld [vmem:[#allocation5 + $0xd78] sm:$0xf0] }
 0x331   :  { %v10201_v34 = vld [vmem:[#allocation5 + $0xf5c] sm:$0xf]  ;;  %v8237_v29 = vor.u32 %v10137_v48, %v8234_v8  ;;  %4100 = vmatpush.bf16.msrb.mxu1 %v7981_v35  ;;  %v3256_v48 = vadd.f32 %v10854_v40, %v11227_v13  ;;  %v11008_v8 = vpop.f32.mrf.mxu1  ;;  %v11019_v13 = vld [vmem:[#allocation7] sm:$0xff] }
 0x332   :  { %v8490_v14 = vld [vmem:[#allocation5 + $0xf78] sm:$0xf0] }
 0x333   :  { %v10001_v36 = vld [vmem:[#allocation5 + $0x91c] sm:$0xf]  ;;  %v8493_v21 = vor.u32 %v10201_v34, %v8490_v14  ;;  %4114 = vmatpush.bf16.msrb.mxu2 %v8237_v29  ;;  %v3270_v40 = vadd.f32 %v10856_v53, %v3256_v48  ;;  %v671_v48 = vperm.slane %v11019_v13, 3 }
 0x334   :  { %v7690_v22 = vld [vmem:[#allocation5 + $0x938] sm:$0xf0] }
 0x335   :  { %v10065_v1 = vld [vmem:[#allocation5 + $0xb1c] sm:$0xf]  ;;  %v7693_v37 = vor.u32 %v10001_v36, %v7690_v22  ;;  %4128 = vmatpush.bf16.msrb.mxu3 %v8493_v21 }
 0x336   :  { %v7946_v32 = vld [vmem:[#allocation5 + $0xb38] sm:$0xf0] }
 0x337   :  { %v10129_v20 = vld [vmem:[#allocation5 + $0xd1c] sm:$0xf]  ;;  %v7949_v10 = vor.u32 %v10065_v1, %v7946_v32  ;;  %4087 = vmatpush.bf16.msrb.mxu0 %v7693_v37 }
 0x338   :  { %v8202_v46 = vld [vmem:[#allocation5 + $0xd38] sm:$0xf0] }
 0x339   :  { %v10193_v58 = vld [vmem:[#allocation5 + $0xf1c] sm:$0xf]  ;;  %v8205_v61 = vor.u32 %v10129_v20, %v8202_v46  ;;  %4101 = vmatpush.bf16.msrb.mxu1 %v7949_v10  ;;  %v11014_v10 = vpop.f32.mrf.mxu2 }
 0x33a   :  { %v8458_v17 = vld [vmem:[#allocation5 + $0xf38] sm:$0xf0] }
 0x33b   :  { %v9993_v27 = vld [vmem:[#allocation5 + $0x8dc] sm:$0xf]  ;;  %v8461_v9 = vor.u32 %v10193_v58, %v8458_v17  ;;  %4115 = vmatpush.bf16.msrb.mxu2 %v8205_v61  ;;  %v11228_v17 = vperm.slane %v10843_v63, 1 }
 0x33c   :  { %v7658_v12 = vld [vmem:[#allocation5 + $0x8f8] sm:$0xf0] }
 0x33d   :  { %v10057_v55 = vld [vmem:[#allocation5 + $0xadc] sm:$0xf]  ;;  %v7661_v34 = vor.u32 %v9993_v27, %v7658_v12  ;;  %4129 = vmatpush.bf16.msrb.mxu3 %v8461_v9  ;;  %v3368_v37 = vadd.f32 %v10886_v11, %v11228_v17  ;;  %v3284_v11 = vadd.f32 %v10862_v6, %v3270_v40  ;;  %v11229_v6 = vperm.slane %v10909_v28, 2 }
 0x33e   :  { %v7914_v54 = vld [vmem:[#allocation5 + $0xaf8] sm:$0xf0] }
 0x33f   :  { %v10121_v51 = vld [vmem:[#allocation5 + $0xcdc] sm:$0xf]  ;;  %v7917_v14 = vor.u32 %v10057_v55, %v7914_v54  ;;  %4088 = vmatpush.bf16.msrb.mxu0 %v7661_v34 }
 0x340   :  { %v8170_v2 = vld [vmem:[#allocation5 + $0xcf8] sm:$0xf0] }
 0x341   :  { %v10185_v5 = vld [vmem:[#allocation5 + $0xedc] sm:$0xf]  ;;  %v8173_v33 = vor.u32 %v10121_v51, %v8170_v2  ;;  %4102 = vmatpush.bf16.msrb.mxu1 %v7917_v14 }
 0x342   :  { %v8426_v19 = vld [vmem:[#allocation5 + $0xef8] sm:$0xf0] }
 0x343   :  { %v9985_v35 = vld [vmem:[#allocation5 + $0x89c] sm:$0xf]  ;;  %v8429_v22 = vor.u32 %v10185_v5, %v8426_v19  ;;  %4116 = vmatpush.bf16.msrb.mxu2 %v8173_v33  ;;  %v11016_v5 = vpop.f32.mrf.mxu3 }
 0x344   :  { %v7626_v29 = vld [vmem:[#allocation5 + $0x8b8] sm:$0xf0] }
 0x345   :  { %v10049_v36 = vld [vmem:[#allocation5 + $0xa9c] sm:$0xf]  ;;  %v7629_v58 = vor.u32 %v9985_v35, %v7626_v29  ;;  %4130 = vmatpush.bf16.msrb.mxu3 %v8429_v22  ;;  %v3382_v35 = vadd.f32 %v10888_v26, %v3368_v37  ;;  %v11023_v29 = vpop.f32.mrf.mxu0  ;;  %v8672_v37 = vld [vmem:[#allocation8 + $0xe0] sm:$0xf] }
 0x346   :  { %v7882_v1 = vld [vmem:[#allocation5 + $0xab8] sm:$0xf0] }
 0x347   :  { %v10113_v21 = vld [vmem:[#allocation5 + $0xc9c] sm:$0xf]  ;;  %v7885_v61 = vor.u32 %v10049_v36, %v7882_v1  ;;  %4089 = vmatpush.bf16.msrb.mxu0 %v7629_v58  ;;  %v3396_v28 = vadd.f32 %v10894_v42, %v3382_v35  ;;  %v8656_v42 = vld [vmem:[#allocation8 + $0xc0] sm:$0xf]  ;;  %v10248_v35 = vld [vmem:[#allocation8 + $0xcc] sm:$0xf0] }
 0x348   :  { %v8138_v32 = vld [vmem:[#allocation5 + $0xcb8] sm:$0xf0] }
 0x349   :  { %v10177_v20 = vld [vmem:[#allocation5 + $0xe9c] sm:$0xf]  ;;  %v8141_v27 = vor.u32 %v10113_v21, %v8138_v32  ;;  %4103 = vmatpush.bf16.msrb.mxu1 %v7885_v61  ;;  %v8800_v61 = vld [vmem:[#allocation8 + $0x1e0] sm:$0xf] }
 0x34a   :  { %v8394_v46 = vld [vmem:[#allocation5 + $0xeb8] sm:$0xf0] }
 0x34b   :  { %v9977_v12 = vld [vmem:[#allocation5 + $0x85c] sm:$0xf]  ;;  %v8397_v54 = vor.u32 %v10177_v20, %v8394_v46  ;;  %4117 = vmatpush.bf16.msrb.mxu2 %v8141_v27  ;;  %v3480_v20 = vadd.f32 %v10920_v59, %v11229_v6  ;;  %v11028_v46 = vpop.f32.mrf.mxu1  ;;  %v3298_v27 = vadd.f32 %v10864_v16, %v3284_v11  ;;  %v3590_v6 = vadd.f32 %v10955_v31, %v671_v48 }
 0x34c   :  { %v7594_v55 = vld [vmem:[#allocation5 + $0x878] sm:$0xf0]  ;;  %11230 = vst [vmem:[#allocation39_spill] sm:$0xff] %v11028_v46  ;;  %v3592_v11 = vadd.f32 %v10964_v38, %v671_v48  ;;  %v3410_v31 = vadd.f32 %v10896_v52, %v3396_v28  ;;  %v9040_v38 = vld [vmem:[#allocation8 + $0x3c0] sm:$0xf] }
 0x34d   :  { %v10041_v9 = vld [vmem:[#allocation5 + $0xa5c] sm:$0xf]  ;;  %v7597_v34 = vor.u32 %v9977_v12, %v7594_v55  ;;  %4131 = vmatpush.bf16.msrb.mxu3 %v8397_v54  ;;  %v10252_v12 = vld [vmem:[#allocation8 + $0xec] sm:$0xf0] }
 0x34e   :  { %v7850_v51 = vld [vmem:[#allocation5 + $0xa78] sm:$0xf0]  ;;  %v8673_v16 = vor.u32 %v10252_v12, %v8672_v37  ;;  %v10344_v48 = vld [vmem:[#allocation8 + $0x3cc] sm:$0xf0]  ;;  %v11044_v37 = vpop.f32.mrf.mxu0  ;;  %v8640_v12 = vld [vmem:[#allocation8 + $0xa0] sm:$0xf] }
 0x34f   :  { %v10105_v2 = vld [vmem:[#allocation5 + $0xc5c] sm:$0xf]  ;;  %v7853_v36 = vor.u32 %v10041_v9, %v7850_v51  ;;  %4090 = vmatpush.bf16.msrb.mxu0 %v7597_v34  ;;  %v10284_v9 = vld [vmem:[#allocation8 + $0x1ec] sm:$0xf0]  ;;  %v8928_v51 = vld [vmem:[#allocation8 + $0x2e0] sm:$0xf]  ;;  %v11035_v34 = vpop.f32.mrf.mxu2 }
 0x350   :  { %v8106_v53 = vld [vmem:[#allocation5 + $0xc78] sm:$0xf0]  ;;  %v10340_v28 = vld [vmem:[#allocation8 + $0x3ac] sm:$0xf0] }
 0x351   :  { %v10169_v19 = vld [vmem:[#allocation5 + $0xe5c] sm:$0xf]  ;;  %v8109_v22 = vor.u32 %v10105_v2, %v8106_v53  ;;  %v10316_v2 = vld [vmem:[#allocation8 + $0x2ec] sm:$0xf0]  ;;  %4104 = vmatpush.bf16.msrb.mxu1 %v7853_v36  ;;  %v9056_v53 = vld [vmem:[#allocation8 + $0x3e0] sm:$0xf] }
 0x352   :  { %v8362_v63 = vld [vmem:[#allocation5 + $0xe78] sm:$0xf0]  ;;  %v8784_v36 = vld [vmem:[#allocation8 + $0x1c0] sm:$0xf] }
 0x353   :  { %v9969_v14 = vld [vmem:[#allocation5 + $0x81c] sm:$0xf]  ;;  %v8365_v40 = vor.u32 %v10169_v19, %v8362_v63  ;;  %4118 = vmatpush.bf16.msrb.mxu2 %v8109_v22  ;;  %v10348_v19 = vld [vmem:[#allocation8 + $0x3ec] sm:$0xf0]  ;;  %v3494_v63 = vadd.f32 %v10922_v18, %v3480_v20  ;;  %v3312_v18 = vadd.f32 %v10869_v56, %v3298_v27  ;;  %v11039_v20 = vpop.f32.mrf.mxu3  ;;  %v8768_v27 = vld [vmem:[#allocation8 + $0x1a0] sm:$0xf] }
 0x354   :  { %v7562_v33 = vld [vmem:[#allocation5 + $0x838] sm:$0xf0]  ;;  %v9057_v22 = vor.u32 %v10348_v19, %v9056_v53  ;;  %v8624_v19 = vld [vmem:[#allocation8 + $0x80] sm:$0xf] }
 0x355   :  { %v10033_v1 = vld [vmem:[#allocation5 + $0xa1c] sm:$0xf]  ;;  %v7565_v55 = vor.u32 %v9969_v14, %v7562_v33  ;;  %4132 = vmatpush.bf16.msrb.mxu3 %v8365_v40  ;;  %v8801_v14 = vor.u32 %v10284_v9, %v8800_v61  ;;  %v8929_v33 = vor.u32 %v10316_v2, %v8928_v51  ;;  %v3508_v40 = vadd.f32 %v10928_v41, %v3494_v63  ;;  %v10244_v61 = vld [vmem:[#allocation8 + $0xac] sm:$0xf0]  ;;  %v9024_v2 = vld [vmem:[#allocation8 + $0x3a0] sm:$0xf] }
 0x356   :  { %v7818_v21 = vld [vmem:[#allocation5 + $0xa38] sm:$0xf0]  ;;  %v9041_v41 = vor.u32 %v10344_v48, %v9040_v38  ;;  %v10308_v9 = vld [vmem:[#allocation8 + $0x2ac] sm:$0xf0]  ;;  %v3424_v51 = vadd.f32 %v10901_v60, %v3410_v31  ;;  %v8752_v63 = vld [vmem:[#allocation8 + $0x180] sm:$0xf]  ;;  %v11066_v31 = vpop.f32.mrf.mxu0 }
 0x357   :  { %v10097_v32 = vld [vmem:[#allocation5 + $0xc1c] sm:$0xf]  ;;  %v7821_v59 = vor.u32 %v10033_v1, %v7818_v21  ;;  %4091 = vmatpush.bf16.msrb.mxu0 %v7565_v55  ;;  %v10280_v1 = vld [vmem:[#allocation8 + $0x1cc] sm:$0xf0]  ;;  %v8912_v21 = vld [vmem:[#allocation8 + $0x2c0] sm:$0xf]  ;;  %v11046_v55 = vpop.f32.mrf.mxu1 }
 0x358   :  { %v8074_v58 = vld [vmem:[#allocation5 + $0xc38] sm:$0xf0]  ;;  %v8785_v56 = vor.u32 %v10280_v1, %v8784_v36  ;;  %v8608_v48 = vld [vmem:[#allocation8 + $0x60] sm:$0xf] }
 0x359   :  { %v10161_v17 = vld [vmem:[#allocation5 + $0xe1c] sm:$0xf]  ;;  %v8077_v54 = vor.u32 %v10097_v32, %v8074_v58  ;;  %v10312_v32 = vld [vmem:[#allocation8 + $0x2cc] sm:$0xf0]  ;;  %4105 = vmatpush.bf16.msrb.mxu1 %v7821_v59  ;;  %v3604_v58 = vadd.f32 %v10957_v45, %v3590_v6  ;;  %v3522_v59 = vadd.f32 %v10930_v57, %v3508_v40 }
 0x35a   :  { %v8330_v26 = vld [vmem:[#allocation5 + $0xe38] sm:$0xf0]  ;;  %v8913_v52 = vor.u32 %v10312_v32, %v8912_v21  ;;  %4092 = vmatmul.bf16.vlgmr.msrb.gmra.mxu0 %v10823_v39  ;;  %v10276_v45 = vld [vmem:[#allocation8 + $0x1ac] sm:$0xf0]  ;;  %v8641_v39 = vor.u32 %v10244_v61, %v8640_v12 }
 0x35b   :  { %v8333_v46 = vor.u32 %v10161_v17, %v8330_v26  ;;  %4119 = vmatpush.bf16.msrb.mxu2 %v8077_v54  ;;  %5710 = vmatpush.bf16.msra.mxu0 %v8673_v16  ;;  %v8657_v17 = vor.u32 %v10248_v35, %v8656_v42  ;;  %v3606_v26 = vadd.f32 %v10968_v15, %v3592_v11  ;;  %v10272_v6 = vld [vmem:[#allocation8 + $0x18c] sm:$0xf0]  ;;  %v8880_v16 = vld [vmem:[#allocation8 + $0x280] sm:$0xf]  ;;  %v11058_v11 = vpop.f32.mrf.mxu2  ;;  %v11234_v21 = vld [vmem:[#allocation32_spill] sm:$0xff] }
 0x35c   :  { %v3326_v15 = vadd.f32 %v10871_v62, %v3312_v18  ;;  %4106 = vmatmul.bf16.vlgmr.msrb.gmra.mxu1 %v10827_v44  ;;  %v3618_v54 = vadd.f32 %v10959_v30, %v3604_v58  ;;  %v8769_v62 = vor.u32 %v10276_v45, %v8768_v27  ;;  %v10240_v44 = vld [vmem:[#allocation8 + $0x8c] sm:$0xf0]  ;;  %v11064_v18 = vpop.f32.mrf.mxu3  ;;  %v8736_v58 = vld [vmem:[#allocation8 + $0x160] sm:$0xf]  ;;  %v11235_v61 = vld [vmem:[#allocation24_spill] sm:$0xff] }
 0x35d   :  { %4133 = vmatpush.bf16.msrb.mxu3 %v8333_v46  ;;  %5724 = vmatpush.bf16.msra.mxu1 %v8801_v14  ;;  %v8896_v46 = vld [vmem:[#allocation8 + $0x2a0] sm:$0xf]  ;;  %v3620_v53 = vadd.f32 %v10971_v7, %v3606_v26  ;;  %v10304_v57 = vld [vmem:[#allocation8 + $0x28c] sm:$0xf0]  ;;  %v8625_v1 = vor.u32 %v10240_v44, %v8624_v19 }
 0x35e   :  { %4120 = vmatmul.bf16.vlgmr.msrb.gmra.mxu2 %v10825_v43  ;;  %v8897_v60 = vor.u32 %v10308_v9, %v8896_v46  ;;  %v9025_v43 = vor.u32 %v10340_v28, %v9024_v2  ;;  %v3340_v30 = vadd.f32 %v10878_v25, %v3326_v15  ;;  %v10336_v14 = vld [vmem:[#allocation8 + $0x38c] sm:$0xf0]  ;;  %v8753_v25 = vor.u32 %v10272_v6, %v8752_v63  ;;  %v11236_v46 = vld [vmem:[#allocation21_spill] sm:$0xff]  ;;  %v11237_v15 = vld [vmem:[#allocation28_spill] sm:$0xff] }
 0x35f   :  { %5738 = vmatpush.bf16.msra.mxu2 %v8929_v33  ;;  %5711 = vmatpush.bf16.msra.mxu0 %v8657_v17  ;;  %v11231_v33 = vld [vmem:[#allocation23_spill] sm:$0xff]  ;;  %v3634_v32 = vadd.f32 %v11234_v21, %v3620_v53  ;;  %v8881_v38 = vor.u32 %v10304_v57, %v8880_v16  ;;  %v11068_v17 = vpop.f32.mrf.mxu1  ;;  %v11238_v2 = vld [vmem:[#allocation33_spill] sm:$0xff] }
 0x360   :  { %4134 = vmatmul.bf16.vlgmr.msrb.gmra.mxu3 %v10829_v47  ;;  %v9008_v47 = vld [vmem:[#allocation8 + $0x380] sm:$0xf]  ;;  %v3438_v7 = vadd.f32 %v11231_v33, %v3424_v51  ;;  %v11232_v42 = vld [vmem:[#allocation27_spill] sm:$0xff]  ;;  %v11072_v9 = vadd.f32 %v11236_v46, %v3340_v30 }
 0x361   :  { %5752 = vmatpush.bf16.msra.mxu3 %v9057_v22  ;;  %5725 = vmatpush.bf16.msra.mxu1 %v8785_v56  ;;  %v3536_v35 = vadd.f32 %v11232_v42, %v3522_v59  ;;  %v11233_v36 = vld [vmem:[#allocation31_spill] sm:$0xff]  ;;  %v9009_v26 = vor.u32 %v10336_v14, %v9008_v47  ;;  %v8720_v44 = vld [vmem:[#allocation8 + $0x140] sm:$0xf] }
 0x362   :  { %v3632_v22 = vadd.f32 %v11233_v36, %v3618_v54  ;;  %v10236_v40 = vld [vmem:[#allocation8 + $0x6c] sm:$0xf0]  ;;  %v3452_v27 = vadd.f32 %v11235_v61, %v3438_v7  ;;  %v11239_v54 = vld [vmem:[#allocation37_spill] sm:$0xff] }
 0x363   :  { %5739 = vmatpush.bf16.msra.mxu2 %v8913_v52  ;;  %5712 = vmatpush.bf16.msra.mxu0 %v8641_v39  ;;  %v10268_v56 = vld [vmem:[#allocation8 + $0x16c] sm:$0xf0]  ;;  %v8864_v52 = vld [vmem:[#allocation8 + $0x260] sm:$0xf]  ;;  %v3550_v51 = vadd.f32 %v11237_v15, %v3536_v35  ;;  %v8609_v59 = vor.u32 %v10236_v40, %v8608_v48  ;;  %v3648_v39 = vadd.f32 %v11239_v54, %v3634_v32  ;;  %v11081_v33 = vpop.f32.mrf.mxu2  ;;  %v11242_v35 = vld [vmem:[#allocation20_spill] sm:$0xff] }
 0x364   :  { %v10300_v12 = vld [vmem:[#allocation8 + $0x26c] sm:$0xf0]  ;;  %v3646_v28 = vadd.f32 %v11238_v2, %v3632_v22  ;;  %v8737_v53 = vor.u32 %v10268_v56, %v8736_v58  ;;  %v8848_v6 = vld [vmem:[#allocation8 + $0x240] sm:$0xf]  ;;  %v4140_v36 = vmax.f32 %v11242_v35, 0.0  ;;  %v4148_v22 = vmax.f32 %v11072_v9, 0.0  ;;  %v11087_v48 = vpop.f32.mrf.mxu3 }
 0x365   :  { %5753 = vmatpush.bf16.msra.mxu3 %v9041_v41  ;;  %5726 = vmatpush.bf16.msra.mxu1 %v8769_v62  ;;  %v8992_v41 = vld [vmem:[#allocation8 + $0x360] sm:$0xf]  ;;  %v10332_v45 = vld [vmem:[#allocation8 + $0x36c] sm:$0xf0]  ;;  %v8865_v62 = vor.u32 %v10300_v12, %v8864_v52 }
 0x366   :  { %v10232_v19 = vld [vmem:[#allocation8 + $0x4c] sm:$0xf0]  ;;  %v8993_v63 = vor.u32 %v10332_v45, %v8992_v41  ;;  %v11240_v57 = vld [vmem:[#allocation25_spill] sm:$0xff]  ;;  %v11245_v45 = vld [vmem:[#allocation22_spill] sm:$0xff] }
 0x367   :  { %5740 = vmatpush.bf16.msra.mxu2 %v8897_v60  ;;  %5713 = vmatpush.bf16.msra.mxu0 %v8625_v1  ;;  %v8592_v60 = vld [vmem:[#allocation8 + $0x40] sm:$0xf]  ;;  %v10296_v16 = vld [vmem:[#allocation8 + $0x24c] sm:$0xf0]  ;;  %v11078_v30 = vadd.f32 %v11240_v57, %v3452_v27  ;;  %v11243_v1 = vld [vmem:[#allocation34_spill] sm:$0xff]  ;;  %v4141_v46 = vmax.f32 %v11245_v45, 0.0 }
 0x368   :  { %v11241_v47 = vld [vmem:[#allocation29_spill] sm:$0xff]  ;;  %v10328_v42 = vld [vmem:[#allocation8 + $0x34c] sm:$0xf0]  ;;  %v3660_v21 = vadd.f32 %v11243_v1, %v3646_v28  ;;  %v8593_v32 = vor.u32 %v10232_v19, %v8592_v60  ;;  %v8849_v58 = vor.u32 %v10296_v16, %v8848_v6  ;;  %v672_v60 = vperm.slane %v11019_v13, 4 }
 0x369   :  { %5754 = vmatpush.bf16.msra.mxu3 %v9025_v43  ;;  %5727 = vmatpush.bf16.msra.mxu1 %v8753_v25  ;;  %v10264_v43 = vld [vmem:[#allocation8 + $0x14c] sm:$0xf0]  ;;  %v3564_v14 = vadd.f32 %v11241_v47, %v3550_v51  ;;  %v8976_v7 = vld [vmem:[#allocation8 + $0x340] sm:$0xf]  ;;  %v11244_v25 = vld [vmem:[#allocation38_spill] sm:$0xff]  ;;  %v4149_v15 = vmax.f32 %v11078_v30, 0.0 }
 0x36a   :  { %v8721_v40 = vor.u32 %v10264_v43, %v8720_v44  ;;  %v10228_v56 = vld [vmem:[#allocation8 + $0x2c] sm:$0xf0]  ;;  %v8704_v52 = vld [vmem:[#allocation8 + $0x120] sm:$0xf]  ;;  %v8977_v12 = vor.u32 %v10328_v42, %v8976_v7  ;;  %v11246_v51 = vld [vmem:[#allocation30_spill] sm:$0xff]  ;;  %v673_v19 = vperm.slane %v11019_v13, 5  ;;  %v3829_v44 = vpop.f32.mrf.mxu1 }
 0x36b   :  { %5741 = vmatpush.bf16.msra.mxu2 %v8881_v38  ;;  %5714 = vmatpush.bf16.msra.mxu0 %v8609_v59  ;;  %v3662_v38 = vadd.f32 %v11244_v25, %v3648_v39  ;;  %v10260_v61 = vld [vmem:[#allocation8 + $0x12c] sm:$0xf0]  ;;  %v8832_v27 = vld [vmem:[#allocation8 + $0x220] sm:$0xf]  ;;  %v3578_v2 = vadd.f32 %v11246_v51, %v3564_v14  ;;  %v3815_v59 = vpop.f32.mrf.mxu0  ;;  %v3843_v45 = vpop.f32.mrf.mxu2 }
 0x36c   :  { %v10292_v41 = vld [vmem:[#allocation8 + $0x22c] sm:$0xf0]  ;;  %v8960_v54 = vld [vmem:[#allocation8 + $0x320] sm:$0xf]  ;;  %v8705_v6 = vor.u32 %v10260_v61, %v8704_v52 }
 0x36d   :  { %5755 = vmatpush.bf16.msra.mxu3 %v9009_v26  ;;  %5728 = vmatpush.bf16.msra.mxu1 %v8737_v53  ;;  %v8576_v26 = vld [vmem:[#allocation8 + $0x20] sm:$0xf]  ;;  %v3676_v28 = vadd.f32 %v10987_v4, %v3662_v38  ;;  %v10324_v39 = vld [vmem:[#allocation8 + $0x32c] sm:$0xf0]  ;;  %v8833_v16 = vor.u32 %v10292_v41, %v8832_v27  ;;  %v11249_v27 = vld [vmem:[#allocation26_spill] sm:$0xff]  ;;  %v3704_v41 = vadd.f32 %v11003_v3, %v672_v60 }
 0x36e   :  { %v11247_v53 = vld [vmem:[#allocation35_spill] sm:$0xff]  ;;  %v8560_v43 = vld [vmem:[#allocation8] sm:$0xf]  ;;  %v8961_v47 = vor.u32 %v10324_v39, %v8960_v54  ;;  %v11106_v3 = vpack.c.bf16 %v4148_v22, %v4140_v36 }
 0x36f   :  { %5742 = vmatpush.bf16.msra.mxu2 %v8865_v62  ;;  %v3674_v62 = vadd.f32 %v11247_v53, %v3660_v21  ;;  %5715 = vmatpush.bf16.msra.mxu0 %v8593_v32  ;;  %v10224_v57 = vld [vmem:[#allocation8 + $0xc] sm:$0xf0]  ;;  %v8688_v30 = vld [vmem:[#allocation8 + $0x100] sm:$0xf]  ;;  %v3690_v1 = vadd.f32 %v10989_v50, %v3676_v28  ;;  %v4150_v32 = vmax.f32 %v3578_v2, 0.0  ;;  %v3814_v28 = vadd.f32 %v11066_v31, %v673_v19 }
 0x370   :  { %v10256_v4 = vld [vmem:[#allocation8 + $0x10c] sm:$0xf0]  ;;  %v8816_v14 = vld [vmem:[#allocation8 + $0x200] sm:$0xf]  ;;  %v3816_v2 = vadd.f32 %v3815_v59, %v673_v19 }
 0x371   :  { %5756 = vmatpush.bf16.msra.mxu3 %v8993_v63  ;;  %v8577_v63 = vor.u32 %v10228_v56, %v8576_v26  ;;  %5729 = vmatpush.bf16.msra.mxu1 %v8721_v40  ;;  %v10288_v7 = vld [vmem:[#allocation8 + $0x20c] sm:$0xf0]  ;;  %v8944_v42 = vld [vmem:[#allocation8 + $0x300] sm:$0xf]  ;;  %v11248_v26 = vld [vmem:[#allocation36_spill] sm:$0xff]  ;;  %v3702_v40 = vadd.f32 %v10991_v0, %v672_v60  ;;  %v8689_v50 = vor.u32 %v10256_v4, %v8688_v30 }
 0x372   :  { %v10320_v21 = vld [vmem:[#allocation8 + $0x30c] sm:$0xf0]  ;;  %v9184_v25 = vld [vmem:[#allocation8 + $0x4e0] sm:$0xf]  ;;  %v3688_v56 = vadd.f32 %v11248_v26, %v3674_v62  ;;  %v8817_v51 = vor.u32 %v10288_v7, %v8816_v14  ;;  %v4151_v62 = vmax.f32 %v3690_v1, 0.0  ;;  %v11108_v60 = vpack.c.bf16 %v4149_v15, %v4141_v46  ;;  %v11117_v22 = vpop.f32.mrf.mxu1 }
 0x373   :  { %5743 = vmatpush.bf16.msra.mxu2 %v8849_v58  ;;  %v10380_v38 = vld [vmem:[#allocation8 + $0x4ec] sm:$0xf0]  ;;  %5716 = vmatpush.bf16.msra.mxu0 %v8577_v63  ;;  %v8561_v58 = vor.u32 %v10224_v57, %v8560_v43  ;;  %v9312_v52 = vld [vmem:[#allocation8 + $0x5e0] sm:$0xf]  ;;  %v8945_v54 = vor.u32 %v10320_v21, %v8944_v42  ;;  %v3857_v63 = vpop.f32.mrf.mxu3  ;;  %v3718_v30 = vadd.f32 %v11008_v8, %v3704_v41  ;;  %v11114_v4 = vpop.f32.mrf.mxu0 }
 0x374   :  { %v10412_v61 = vld [vmem:[#allocation8 + $0x5ec] sm:$0xf0]  ;;  %v9185_v39 = vor.u32 %v10380_v38, %v9184_v25  ;;  %v9440_v0 = vld [vmem:[#allocation8 + $0x6e0] sm:$0xf]  ;;  %v3828_v9 = vadd.f32 %v11068_v17, %v3814_v28  ;;  %v3830_v36 = vadd.f32 %v3829_v44, %v3816_v2 }
 0x375   :  { %5757 = vmatpush.bf16.msra.mxu3 %v8977_v12  ;;  %v4142_v12 = vmax.f32 %v11249_v27, 0.0  ;;  %5730 = vmatpush.bf16.msra.mxu1 %v8705_v6  ;;  %v10444_v53 = vld [vmem:[#allocation8 + $0x6ec] sm:$0xf0]  ;;  %v9313_v43 = vor.u32 %v10412_v61, %v9312_v52  ;;  %v9168_v57 = vld [vmem:[#allocation8 + $0x4c0] sm:$0xf]  ;;  %v4143_v6 = vmax.f32 %v3688_v56, 0.0  ;;  %v3732_v1 = vadd.f32 %v11014_v10, %v3718_v30 }
 0x376   :  { %v10376_v26 = vld [vmem:[#allocation8 + $0x4cc] sm:$0xf0]  ;;  %v9296_v59 = vld [vmem:[#allocation8 + $0x5c0] sm:$0xf]  ;;  %v9441_v35 = vor.u32 %v10444_v53, %v9440_v0  ;;  %v3842_v25 = vadd.f32 %v11081_v33, %v3828_v9  ;;  %v3844_v38 = vadd.f32 %v3843_v45, %v3830_v36 }
 0x377   :  { %5744 = vmatpush.bf16.msra.mxu2 %v8833_v16  ;;  %v11110_v31 = vpack.c.bf16 %v4150_v32, %v4142_v12  ;;  %5717 = vmatpush.bf16.msra.mxu0 %v8561_v58  ;;  %v10408_v19 = vld [vmem:[#allocation8 + $0x5cc] sm:$0xf0]  ;;  %v3716_v16 = vadd.f32 %v10993_v24, %v3702_v40  ;;  %v9169_v46 = vor.u32 %v10376_v26, %v9168_v57  ;;  %v9424_v15 = vld [vmem:[#allocation8 + $0x6c0] sm:$0xf]  ;;  %v11128_v58 = vpop.f32.mrf.mxu2 }
 0x378   :  { %v11119_v14 = vpack.c.bf16 %v4151_v62, %v4143_v6  ;;  %v9297_v24 = vor.u32 %v10408_v19, %v9296_v59  ;;  %v9152_v8 = vld [vmem:[#allocation8 + $0x4a0] sm:$0xf]  ;;  %v10372_v7 = vld [vmem:[#allocation8 + $0x4ac] sm:$0xf0]  ;;  %v3746_v41 = vadd.f32 %v11016_v5, %v3732_v1  ;;  %v3856_v45 = vadd.f32 %v11087_v48, %v3842_v25 }
 0x379   :  { %5758 = vmatpush.bf16.msra.mxu3 %v8961_v47  ;;  %5731 = vmatpush.bf16.msra.mxu1 %v8689_v50  ;;  %v10440_v47 = vld [vmem:[#allocation8 + $0x6cc] sm:$0xf0]  ;;  %v9280_v17 = vld [vmem:[#allocation8 + $0x5a0] sm:$0xf]  ;;  %v3730_v42 = vadd.f32 %v10999_v23, %v3716_v16  ;;  %v9153_v32 = vor.u32 %v10372_v7, %v9152_v8 }
 0x37a   :  { %5718 = vmatmul.bf16.vlgmr.msra.gmra.mxu0 %v11106_v3  ;;  %v10404_v44 = vld [vmem:[#allocation8 + $0x5ac] sm:$0xf0]  ;;  %v9425_v21 = vor.u32 %v10440_v47, %v9424_v15  ;;  %v9408_v56 = vld [vmem:[#allocation8 + $0x6a0] sm:$0xf]  ;;  %v3760_v26 = vadd.f32 %v11044_v37, %v3746_v41  ;;  %v3870_v48 = vadd.f32 %v11114_v4, %v3856_v45 }
 0x37b   :  { %5745 = vmatpush.bf16.msra.mxu2 %v8817_v51  ;;  %5766 = vmatpush.bf16.msrb.mxu0 %v9185_v39  ;;  %v10436_v40 = vld [vmem:[#allocation8 + $0x6ac] sm:$0xf0]  ;;  %v9281_v52 = vor.u32 %v10404_v44, %v9280_v17  ;;  %v9136_v61 = vld [vmem:[#allocation8 + $0x480] sm:$0xf]  ;;  %v3744_v10 = vadd.f32 %v11001_v49, %v3730_v42  ;;  %v11132_v50 = vpop.f32.mrf.mxu3  ;;  %v3858_v51 = vadd.f32 %v3857_v63, %v3844_v38  ;;  %v3871_v39 = vpop.f32.mrf.mxu0 }
 0x37c   :  { %5732 = vmatmul.bf16.vlgmr.msra.gmra.mxu1 %v11108_v60  ;;  %v10368_v27 = vld [vmem:[#allocation8 + $0x48c] sm:$0xf0]  ;;  %v9264_v23 = vld [vmem:[#allocation8 + $0x580] sm:$0xf]  ;;  %v9409_v33 = vor.u32 %v10436_v40, %v9408_v56  ;;  %v3884_v4 = vadd.f32 %v11117_v22, %v3870_v48 }
 0x37d   :  { %5759 = vmatpush.bf16.msra.mxu3 %v8945_v54  ;;  %5780 = vmatpush.bf16.msrb.mxu1 %v9313_v43  ;;  %v10400_v12 = vld [vmem:[#allocation8 + $0x58c] sm:$0xf0]  ;;  %v9137_v28 = vor.u32 %v10368_v27, %v9136_v61  ;;  %v9392_v2 = vld [vmem:[#allocation8 + $0x680] sm:$0xf]  ;;  %v3885_v43 = vpop.f32.mrf.mxu1  ;;  %v3758_v5 = vadd.f32 %v11023_v29, %v3744_v10  ;;  %v3872_v63 = vadd.f32 %v3871_v39, %v3858_v51  ;;  %v8674_v39 = vld [vmem:[#allocation8 + $0xf0] sm:$0xf0] }
 0x37e   :  { %5746 = vmatmul.bf16.vlgmr.msra.gmra.mxu2 %v11110_v31  ;;  %v10432_v54 = vld [vmem:[#allocation8 + $0x68c] sm:$0xf0]  ;;  %v9265_v0 = vor.u32 %v10400_v12, %v9264_v23  ;;  %v9120_v53 = vld [vmem:[#allocation8 + $0x460] sm:$0xf]  ;;  %v3774_v29 = vadd.f32 %v11046_v55, %v3760_v26  ;;  %v3898_v27 = vadd.f32 %v11128_v58, %v3884_v4  ;;  %v674_v23 = vperm.slane %v11019_v13, 6 }
 0x37f   :  { %5794 = vmatpush.bf16.msrb.mxu2 %v9441_v35  ;;  %5767 = vmatpush.bf16.msrb.mxu0 %v9169_v46  ;;  %v10364_v62 = vld [vmem:[#allocation8 + $0x46c] sm:$0xf0]  ;;  %v9248_v49 = vld [vmem:[#allocation8 + $0x560] sm:$0xf]  ;;  %v9393_v59 = vor.u32 %v10432_v54, %v9392_v2  ;;  %v3899_v37 = vpop.f32.mrf.mxu2  ;;  %v3886_v8 = vadd.f32 %v3885_v43, %v3872_v63  ;;  %v8802_v13 = vld [vmem:[#allocation8 + $0x1f0] sm:$0xf0] }
 0x380   :  { %5760 = vmatmul.bf16.vlgmr.msra.gmra.mxu3 %v11119_v14  ;;  %v10396_v57 = vld [vmem:[#allocation8 + $0x56c] sm:$0xf0]  ;;  %v9121_v19 = vor.u32 %v10364_v62, %v9120_v53  ;;  %v9376_v6 = vld [vmem:[#allocation8 + $0x660] sm:$0xf]  ;;  %v3788_v42 = vadd.f32 %v11058_v11, %v3774_v29  ;;  %v10282_v53 = vld [vmem:[#allocation8 + $0x1e4] sm:$0xf]  ;;  %v3912_v62 = vadd.f32 %v11132_v50, %v3898_v27 }
 0x381   :  { %5781 = vmatpush.bf16.msrb.mxu1 %v9297_v24  ;;  %v10428_v16 = vld [vmem:[#allocation8 + $0x66c] sm:$0xf0]  ;;  %v9249_v30 = vor.u32 %v10396_v57, %v9248_v49  ;;  %v9104_v35 = vld [vmem:[#allocation8 + $0x440] sm:$0xf]  ;;  %v3900_v56 = vadd.f32 %v3899_v37, %v3886_v8 }
 0x382   :  { %v10360_v9 = vld [vmem:[#allocation8 + $0x44c] sm:$0xf0]  ;;  %v9232_v36 = vld [vmem:[#allocation8 + $0x540] sm:$0xf]  ;;  %v9377_v24 = vor.u32 %v10428_v16, %v9376_v6  ;;  %v3802_v41 = vadd.f32 %v11064_v18, %v3788_v42  ;;  %v8930_v6 = vld [vmem:[#allocation8 + $0x2f0] sm:$0xf0]  ;;  %v8805_v16 = vor.u32 %v10282_v53, %v8802_v13 }
 0x383   :  { %5795 = vmatpush.bf16.msrb.mxu2 %v9425_v21  ;;  %5768 = vmatpush.bf16.msrb.mxu0 %v9153_v32  ;;  %v10392_v46 = vld [vmem:[#allocation8 + $0x54c] sm:$0xf0]  ;;  %v9105_v7 = vor.u32 %v10360_v9, %v9104_v35  ;;  %v9360_v17 = vld [vmem:[#allocation8 + $0x640] sm:$0xf]  ;;  %v3913_v1 = vpop.f32.mrf.mxu3  ;;  %v3925_v25 = vpop.f32.mrf.mxu0  ;;  %v8658_v35 = vld [vmem:[#allocation8 + $0xd0] sm:$0xf0] }
 0x384   :  { %v11250_v15 = vld [vmem:[#allocation39_spill] sm:$0xff]  ;;  %v9233_v21 = vor.u32 %v10392_v46, %v9232_v36  ;;  %v9088_v38 = vld [vmem:[#allocation8 + $0x420] sm:$0xf]  ;;  %v3914_v2 = vadd.f32 %v3913_v1, %v3900_v56  ;;  %v3926_v26 = vadd.f32 %v3925_v25, %v674_v23  ;;  %v10278_v46 = vld [vmem:[#allocation8 + $0x1c4] sm:$0xf] }
 0x385   :  { %5782 = vmatpush.bf16.msrb.mxu1 %v9281_v52  ;;  %v3772_v47 = vadd.f32 %v11250_v15, %v3758_v5  ;;  %v10424_v44 = vld [vmem:[#allocation8 + $0x64c] sm:$0xf0]  ;;  %v9216_v55 = vld [vmem:[#allocation8 + $0x520] sm:$0xf]  ;;  %v3939_v52 = vpop.f32.mrf.mxu1  ;;  %v4152_v5 = vmax.f32 %v3802_v41, 0.0 }
 0x386   :  { %v10356_v32 = vld [vmem:[#allocation8 + $0x42c] sm:$0xf0]  ;;  %v9361_v22 = vor.u32 %v10424_v44, %v9360_v17  ;;  %v9344_v12 = vld [vmem:[#allocation8 + $0x620] sm:$0xf]  ;;  %v8786_v15 = vld [vmem:[#allocation8 + $0x1d0] sm:$0xf0]  ;;  %v3940_v4 = vadd.f32 %v3939_v52, %v3926_v26 }
 0x387   :  { %5796 = vmatpush.bf16.msrb.mxu2 %v9409_v33  ;;  %5769 = vmatpush.bf16.msrb.mxu0 %v9137_v28  ;;  %v10388_v40 = vld [vmem:[#allocation8 + $0x52c] sm:$0xf0]  ;;  %v3786_v61 = vadd.f32 %v11035_v34, %v3772_v47  ;;  %v9089_v11 = vor.u32 %v10356_v32, %v9088_v38  ;;  %v9072_v45 = vld [vmem:[#allocation8 + $0x400] sm:$0xf]  ;;  %v10250_v34 = vld [vmem:[#allocation8 + $0xe4] sm:$0xf]  ;;  %v3953_v18 = vpop.f32.mrf.mxu2  ;;  %v8789_v1 = vor.u32 %v10278_v46, %v8786_v15 }
 0x388   :  { %v10420_v10 = vld [vmem:[#allocation8 + $0x62c] sm:$0xf0]  ;;  %v9217_v33 = vor.u32 %v10388_v40, %v9216_v55  ;;  %v9200_v28 = vld [vmem:[#allocation8 + $0x500] sm:$0xf]  ;;  %v8677_v48 = vor.u32 %v10250_v34, %v8674_v39  ;;  %v4145_v47 = vmax.f32 %v3912_v62, 0.0 }
 0x389   :  { %5783 = vmatpush.bf16.msrb.mxu1 %v9265_v0  ;;  %v10352_v51 = vld [vmem:[#allocation8 + $0x40c] sm:$0xf0]  ;;  %v3800_v0 = vadd.f32 %v11039_v20, %v3786_v61  ;;  %v9345_v58 = vor.u32 %v10420_v10, %v9344_v12  ;;  %v9328_v49 = vld [vmem:[#allocation8 + $0x600] sm:$0xf]  ;;  %v4153_v20 = vmax.f32 %v3914_v2, 0.0 }
 0x38a   :  { %v10384_v54 = vld [vmem:[#allocation8 + $0x50c] sm:$0xf0]  ;;  %v9073_v43 = vor.u32 %v10352_v51, %v9072_v45  ;;  %v10310_v17 = vld [vmem:[#allocation8 + $0x2c4] sm:$0xf]  ;;  %v8914_v44 = vld [vmem:[#allocation8 + $0x2d0] sm:$0xf0] }
 0x38b   :  { %5797 = vmatpush.bf16.msrb.mxu2 %v9393_v59  ;;  %5770 = vmatpush.bf16.msrb.mxu0 %v9121_v19  ;;  %v10416_v57 = vld [vmem:[#allocation8 + $0x60c] sm:$0xf0]  ;;  %v9201_v59 = vor.u32 %v10384_v54, %v9200_v28  ;;  %v3967_v63 = vpop.f32.mrf.mxu3  ;;  %v10314_v19 = vld [vmem:[#allocation8 + $0x2e4] sm:$0xf]  ;;  %v4144_v9 = vmax.f32 %v3800_v0, 0.0  ;;  %v3927_v50 = vpop.f32.mrf.mxu0  ;;  %v11150_v42 = vpack.c.bf16 %v4153_v20, %v4145_v47  ;;  %v8917_v52 = vor.u32 %v10310_v17, %v8914_v44 }
 0x38c   :  { %v9329_v36 = vor.u32 %v10416_v57, %v9328_v49  ;;  %v8933_v37 = vor.u32 %v10314_v19, %v8930_v6  ;;  %v9568_v25 = vld [vmem:[#allocation8 + $0x7e0] sm:$0xf]  ;;  %v10476_v38 = vld [vmem:[#allocation8 + $0x7ec] sm:$0xf0]  ;;  %v3928_v32 = vadd.f32 %v3927_v50, %v674_v23  ;;  %v10274_v56 = vld [vmem:[#allocation8 + $0x1a4] sm:$0xf] }
 0x38d   :  { %5784 = vmatpush.bf16.msrb.mxu1 %v9249_v30  ;;  %v10246_v30 = vld [vmem:[#allocation8 + $0xc4] sm:$0xf]  ;;  %v3941_v29 = vpop.f32.mrf.mxu1  ;;  %v8770_v55 = vld [vmem:[#allocation8 + $0x1b0] sm:$0xf0]  ;;  %v9569_v40 = vor.u32 %v10476_v38, %v9568_v25  ;;  %v9552_v12 = vld [vmem:[#allocation8 + $0x7c0] sm:$0xf] }
 0x38e   :  { %v8661_v8 = vor.u32 %v10246_v30, %v8658_v35  ;;  %v10306_v61 = vld [vmem:[#allocation8 + $0x2a4] sm:$0xf]  ;;  %v10472_v10 = vld [vmem:[#allocation8 + $0x7cc] sm:$0xf0]  ;;  %v8773_v41 = vor.u32 %v10274_v56, %v8770_v55  ;;  %v8626_v45 = vld [vmem:[#allocation8 + $0x90] sm:$0xf0]  ;;  %v3942_v28 = vadd.f32 %v3941_v29, %v3928_v32 }
 0x38f   :  { %5798 = vmatpush.bf16.msrb.mxu2 %v9377_v24  ;;  %5771 = vmatpush.bf16.msrb.mxu0 %v9105_v7  ;;  %v11148_v24 = vpack.c.bf16 %v4152_v5, %v4144_v9  ;;  %v10242_v7 = vld [vmem:[#allocation8 + $0xa4] sm:$0xf]  ;;  %v9553_v51 = vor.u32 %v10472_v10, %v9552_v12  ;;  %v8754_v34 = vld [vmem:[#allocation8 + $0x190] sm:$0xf0]  ;;  %v9520_v9 = vld [vmem:[#allocation8 + $0x780] sm:$0xf] }
 0x390   :  { %5808 = vmatpush.bf16.msrb.mxu3 %v9569_v40  ;;  %v10238_v23 = vld [vmem:[#allocation8 + $0x84] sm:$0xf]  ;;  %v8882_v62 = vld [vmem:[#allocation8 + $0x290] sm:$0xf0]  ;;  %v10464_v50 = vld [vmem:[#allocation8 + $0x78c] sm:$0xf0] }
 0x391   :  { %5785 = vmatpush.bf16.msrb.mxu1 %v9233_v21  ;;  %v8642_v21 = vld [vmem:[#allocation8 + $0xb0] sm:$0xf0]  ;;  %v10270_v54 = vld [vmem:[#allocation8 + $0x184] sm:$0xf]  ;;  %v8629_v13 = vor.u32 %v10238_v23, %v8626_v45  ;;  %v9521_v47 = vor.u32 %v10464_v50, %v9520_v9  ;;  %v9504_v32 = vld [vmem:[#allocation8 + $0x760] sm:$0xf] }
 0x392   :  { %v8645_v27 = vor.u32 %v10242_v7, %v8642_v21  ;;  %v10302_v0 = vld [vmem:[#allocation8 + $0x284] sm:$0xf]  ;;  %v8757_v49 = vor.u32 %v10270_v54, %v8754_v34  ;;  %v8610_v26 = vld [vmem:[#allocation8 + $0x70] sm:$0xf0]  ;;  %v10460_v56 = vld [vmem:[#allocation8 + $0x76c] sm:$0xf0] }
 0x393   :  { %5799 = vmatpush.bf16.msrb.mxu2 %v9361_v22  ;;  %5772 = vmatpush.bf16.msrb.mxu0 %v9089_v11  ;;  %v3954_v22 = vadd.f32 %v3953_v18, %v3940_v4  ;;  %v8898_v11 = vld [vmem:[#allocation8 + $0x2b0] sm:$0xf0]  ;;  %v3969_v2 = vpop.f32.mrf.mxu3  ;;  %v3981_v53 = vpop.f32.mrf.mxu0  ;;  %v10468_v18 = vld [vmem:[#allocation8 + $0x7ac] sm:$0xf0]  ;;  %v10234_v5 = vld [vmem:[#allocation8 + $0x64] sm:$0xf]  ;;  %v8885_v20 = vor.u32 %v10302_v0, %v8882_v62 }
 0x394   :  { %v8901_v39 = vor.u32 %v10306_v61, %v8898_v11  ;;  %5809 = vmatpush.bf16.msrb.mxu3 %v9553_v51  ;;  %v10266_v19 = vld [vmem:[#allocation8 + $0x164] sm:$0xf]  ;;  %v8738_v6 = vld [vmem:[#allocation8 + $0x170] sm:$0xf0]  ;;  %v8613_v30 = vor.u32 %v10234_v5, %v8610_v26  ;;  %v9505_v61 = vor.u32 %v10460_v56, %v9504_v32  ;;  %v9488_v51 = vld [vmem:[#allocation8 + $0x740] sm:$0xf] }
 0x395   :  { %5786 = vmatpush.bf16.msrb.mxu1 %v9217_v33  ;;  %v3955_v33 = vpop.f32.mrf.mxu2  ;;  %v3995_v57 = vpop.f32.mrf.mxu1  ;;  %v8866_v35 = vld [vmem:[#allocation8 + $0x270] sm:$0xf0]  ;;  %v10230_v46 = vld [vmem:[#allocation8 + $0x44] sm:$0xf] }
 0x396   :  { %v8594_v15 = vld [vmem:[#allocation8 + $0x50] sm:$0xf0]  ;;  %v10294_v17 = vld [vmem:[#allocation8 + $0x244] sm:$0xf] }
 0x397   :  { %5800 = vmatpush.bf16.msrb.mxu2 %v9345_v58  ;;  %5773 = vmatpush.bf16.msrb.mxu0 %v9073_v43  ;;  %v3968_v58 = vadd.f32 %v3967_v63, %v3954_v22  ;;  %v9536_v43 = vld [vmem:[#allocation8 + $0x7a0] sm:$0xf]  ;;  %v8722_v4 = vld [vmem:[#allocation8 + $0x150] sm:$0xf0]  ;;  %v8597_v25 = vor.u32 %v10230_v46, %v8594_v15  ;;  %v10226_v40 = vld [vmem:[#allocation8 + $0x24] sm:$0xf] }
 0x398   :  { %v8850_v38 = vld [vmem:[#allocation8 + $0x250] sm:$0xf0]  ;;  %v10222_v54 = vld [vmem:[#allocation8 + $0x4] sm:$0xf] }
 0x399   :  { %5787 = vmatpush.bf16.msrb.mxu1 %v9201_v59  ;;  %v9537_v59 = vor.u32 %v10468_v18, %v9536_v43  ;;  %v3982_v63 = vadd.f32 %v3981_v53, %v3968_v58  ;;  %v8706_v11 = vld [vmem:[#allocation8 + $0x130] sm:$0xf0]  ;;  %v8853_v10 = vor.u32 %v10294_v17, %v8850_v38  ;;  %v10286_v5 = vld [vmem:[#allocation8 + $0x204] sm:$0xf]  ;;  %v9456_v17 = vld [vmem:[#allocation8 + $0x700] sm:$0xf] }
 0x39a   :  { %5774 = vmatmul.bf16.vlgmr.msrb.gmra.mxu0 %v11148_v24  ;;  %v8834_v45 = vld [vmem:[#allocation8 + $0x230] sm:$0xf0]  ;;  %v10442_v15 = vld [vmem:[#allocation8 + $0x6e4] sm:$0xf] }
 0x39b   :  { %5822 = vmatpush.bf16.msra.mxu0 %v8677_v48  ;;  %5801 = vmatpush.bf16.msrb.mxu2 %v9329_v36  ;;  %v3956_v48 = vadd.f32 %v3955_v33, %v3942_v28  ;;  %v8741_v36 = vor.u32 %v10266_v19, %v8738_v6  ;;  %v3996_v44 = vadd.f32 %v3995_v57, %v3982_v63  ;;  %v4023_v21 = vpop.f32.mrf.mxu3  ;;  %v10456_v28 = vld [vmem:[#allocation8 + $0x74c] sm:$0xf0]  ;;  %v8562_v34 = vld [vmem:[#allocation8 + $0x10] sm:$0xf0] }
 0x39c   :  { %5788 = vmatmul.bf16.vlgmr.msrb.gmra.mxu1 %v11150_v42  ;;  %5810 = vmatpush.bf16.msrb.mxu3 %v9537_v59  ;;  %v9489_v0 = vor.u32 %v10456_v28, %v9488_v51  ;;  %v8690_v53 = vld [vmem:[#allocation8 + $0x110] sm:$0xf0]  ;;  %v8565_v19 = vor.u32 %v10222_v54, %v8562_v34  ;;  %v10434_v28 = vld [vmem:[#allocation8 + $0x6a4] sm:$0xf] }
 0x39d   :  { %5836 = vmatpush.bf16.msra.mxu1 %v8805_v16  ;;  %v10298_v16 = vld [vmem:[#allocation8 + $0x264] sm:$0xf]  ;;  %v3970_v29 = vadd.f32 %v3969_v2, %v3956_v48  ;;  %v3997_v12 = vpop.f32.mrf.mxu1  ;;  %v9186_v62 = vld [vmem:[#allocation8 + $0x4f0] sm:$0xf0] }
 0x39e   :  { %v8869_v7 = vor.u32 %v10298_v16, %v8866_v35  ;;  %v9314_v57 = vld [vmem:[#allocation8 + $0x5f0] sm:$0xf0]  ;;  %v10452_v16 = vld [vmem:[#allocation8 + $0x72c] sm:$0xf0]  ;;  %v10374_v35 = vld [vmem:[#allocation8 + $0x4c4] sm:$0xf] }
 0x39f   :  { %5850 = vmatpush.bf16.msra.mxu2 %v8933_v37  ;;  %5823 = vmatpush.bf16.msra.mxu0 %v8661_v8  ;;  %v10262_v37 = vld [vmem:[#allocation8 + $0x144] sm:$0xf]  ;;  %v4009_v8 = vpop.f32.mrf.mxu2  ;;  %v8818_v6 = vld [vmem:[#allocation8 + $0x210] sm:$0xf0] }
 0x3a0   :  { %5811 = vmatpush.bf16.msrb.mxu3 %v9521_v47  ;;  %v8725_v55 = vor.u32 %v10262_v37, %v8722_v4  ;;  %v4010_v33 = vadd.f32 %v4009_v8, %v3996_v44  ;;  %v9170_v46 = vld [vmem:[#allocation8 + $0x4d0] sm:$0xf0]  ;;  %v10406_v37 = vld [vmem:[#allocation8 + $0x5c4] sm:$0xf]  ;;  %v10448_v44 = vld [vmem:[#allocation8 + $0x70c] sm:$0xf0] }
 0x3a1   :  { %5837 = vmatpush.bf16.msra.mxu1 %v8789_v1  ;;  %v3983_v1 = vpop.f32.mrf.mxu0  ;;  %v9442_v47 = vld [vmem:[#allocation8 + $0x6f0] sm:$0xf0]  ;;  %v10398_v34 = vld [vmem:[#allocation8 + $0x584] sm:$0xf] }
 0x3a2   :  { %v3984_v22 = vadd.f32 %v3983_v1, %v3970_v29  ;;  %v4024_v26 = vadd.f32 %v4023_v21, %v4010_v33  ;;  %v8821_v29 = vor.u32 %v10286_v5, %v8818_v6  ;;  %v9298_v4 = vld [vmem:[#allocation8 + $0x5d0] sm:$0xf0]  ;;  %v9173_v1 = vor.u32 %v10374_v35, %v9170_v46  ;;  %v10366_v33 = vld [vmem:[#allocation8 + $0x484] sm:$0xf] }
 0x3a3   :  { %5851 = vmatpush.bf16.msra.mxu2 %v8917_v52  ;;  %5824 = vmatpush.bf16.msra.mxu0 %v8645_v27  ;;  %v8578_v52 = vld [vmem:[#allocation8 + $0x30] sm:$0xf0]  ;;  %v10258_v27 = vld [vmem:[#allocation8 + $0x124] sm:$0xf]  ;;  %v4025_v48 = vpop.f32.mrf.mxu3  ;;  %v9445_v21 = vor.u32 %v10442_v15, %v9442_v47  ;;  %v9301_v56 = vor.u32 %v10406_v37, %v9298_v4 }
 0x3a4   :  { %v8581_v23 = vor.u32 %v10226_v40, %v8578_v52  ;;  %5812 = vmatpush.bf16.msrb.mxu3 %v9505_v61  ;;  %v8709_v2 = vor.u32 %v10258_v27, %v8706_v11  ;;  %v3998_v58 = vadd.f32 %v3997_v12, %v3984_v22  ;;  %v4146_v8 = vmax.f32 %v4024_v26, 0.0  ;;  %v9154_v38 = vld [vmem:[#allocation8 + $0x4b0] sm:$0xf0]  ;;  %v10438_v40 = vld [vmem:[#allocation8 + $0x6c4] sm:$0xf] }
 0x3a5   :  { %5838 = vmatpush.bf16.msra.mxu1 %v8773_v41  ;;  %v10290_v41 = vld [vmem:[#allocation8 + $0x224] sm:$0xf]  ;;  %v9426_v52 = vld [vmem:[#allocation8 + $0x6d0] sm:$0xf0]  ;;  %v9457_v61 = vor.u32 %v10448_v44, %v9456_v17 }
 0x3a6   :  { %v8837_v18 = vor.u32 %v10290_v41, %v8834_v45  ;;  %v9282_v22 = vld [vmem:[#allocation8 + $0x5b0] sm:$0xf0]  ;;  %v10346_v27 = vld [vmem:[#allocation8 + $0x3e4] sm:$0xf]  ;;  %v9429_v41 = vor.u32 %v10438_v40, %v9426_v52 }
 0x3a7   :  { %5852 = vmatpush.bf16.msra.mxu2 %v8901_v39  ;;  %5825 = vmatpush.bf16.msra.mxu0 %v8629_v13  ;;  %v10254_v39 = vld [vmem:[#allocation8 + $0x104] sm:$0xf]  ;;  %v4011_v43 = vpop.f32.mrf.mxu2  ;;  %v9058_v11 = vld [vmem:[#allocation8 + $0x3f0] sm:$0xf0] }
 0x3a8   :  { %v10378_v13 = vld [vmem:[#allocation8 + $0x4e4] sm:$0xf]  ;;  %v4012_v59 = vadd.f32 %v4011_v43, %v3998_v58  ;;  %5813 = vmatpush.bf16.msrb.mxu3 %v9489_v0  ;;  %v8693_v63 = vor.u32 %v10254_v39, %v8690_v53  ;;  %v9061_v12 = vor.u32 %v10346_v27, %v9058_v11  ;;  %v9042_v54 = vld [vmem:[#allocation8 + $0x3d0] sm:$0xf0] }
 0x3a9   :  { %5839 = vmatpush.bf16.msra.mxu1 %v8757_v49  ;;  %v10410_v49 = vld [vmem:[#allocation8 + $0x5e4] sm:$0xf]  ;;  %v9266_v39 = vld [vmem:[#allocation8 + $0x590] sm:$0xf0]  ;;  %v4037_v27 = vpop.f32.mrf.mxu0 }
 0x3aa   :  { %v4026_v50 = vadd.f32 %v4025_v48, %v4012_v59  ;;  %v10342_v45 = vld [vmem:[#allocation8 + $0x3c4] sm:$0xf]  ;;  %v9026_v43 = vld [vmem:[#allocation8 + $0x3b0] sm:$0xf0] }
 0x3ab   :  { %5853 = vmatpush.bf16.msra.mxu2 %v8885_v20  ;;  %5826 = vmatpush.bf16.msra.mxu0 %v8613_v30  ;;  %v9472_v20 = vld [vmem:[#allocation8 + $0x720] sm:$0xf]  ;;  %v9189_v30 = vor.u32 %v10378_v13, %v9186_v62  ;;  %v9045_v0 = vor.u32 %v10342_v45, %v9042_v54  ;;  %v10362_v13 = vld [vmem:[#allocation8 + $0x464] sm:$0xf]  ;;  %v9394_v5 = vld [vmem:[#allocation8 + $0x690] sm:$0xf0]  ;;  %v4051_v54 = vpop.f32.mrf.mxu1 }
 0x3ac   :  { %v9473_v9 = vor.u32 %v10452_v16, %v9472_v20  ;;  %v10338_v62 = vld [vmem:[#allocation8 + $0x3a4] sm:$0xf]  ;;  %v9250_v59 = vld [vmem:[#allocation8 + $0x570] sm:$0xf0]  ;;  %v10253_v45 = vld [vmem:[#allocation8 + $0xf4] sm:$0xf0] }
 0x3ad   :  { %5840 = vmatpush.bf16.msra.mxu1 %v8741_v36  ;;  %v9317_v36 = vor.u32 %v10410_v49, %v9314_v57  ;;  %v9122_v49 = vld [vmem:[#allocation8 + $0x470] sm:$0xf0]  ;;  %v10430_v57 = vld [vmem:[#allocation8 + $0x684] sm:$0xf]  ;;  %v9029_v48 = vor.u32 %v10338_v62, %v9026_v43 }
 0x3ae   :  { %5814 = vmatpush.bf16.msrb.mxu3 %v9473_v9  ;;  %v10394_v26 = vld [vmem:[#allocation8 + $0x564] sm:$0xf]  ;;  %v9397_v6 = vor.u32 %v10430_v57, %v9394_v5  ;;  %v9106_v35 = vld [vmem:[#allocation8 + $0x450] sm:$0xf0]  ;;  %v10249_v57 = vld [vmem:[#allocation8 + $0xd4] sm:$0xf0] }
 0x3af   :  { %5854 = vmatpush.bf16.msra.mxu2 %v8869_v7  ;;  %5827 = vmatpush.bf16.msra.mxu0 %v8597_v25  ;;  %v4154_v7 = vmax.f32 %v4026_v50, 0.0  ;;  %v10370_v25 = vld [vmem:[#allocation8 + $0x4a4] sm:$0xf]  ;;  %v9378_v50 = vld [vmem:[#allocation8 + $0x670] sm:$0xf0] }
 0x3b0   :  { %v10358_v20 = vld [vmem:[#allocation8 + $0x444] sm:$0xf]  ;;  %v9234_v46 = vld [vmem:[#allocation8 + $0x550] sm:$0xf0]  ;;  %v8936_v5 = vld [vmem:[#allocation8 + $0x2e8] sm:$0xf] }
 0x3b1   :  { %5841 = vmatpush.bf16.msra.mxu1 %v8725_v55  ;;  %v11154_v32 = vpack.c.bf16 %v4154_v7, %v4146_v8  ;;  %v10402_v55 = vld [vmem:[#allocation8 + $0x5a4] sm:$0xf]  ;;  %v9109_v47 = vor.u32 %v10358_v20, %v9106_v35  ;;  %v8994_v8 = vld [vmem:[#allocation8 + $0x370] sm:$0xf0]  ;;  %v10281_v20 = vld [vmem:[#allocation8 + $0x1d4] sm:$0xf0] }
 0x3b2   :  { %v9285_v51 = vor.u32 %v10402_v55, %v9282_v22  ;;  %5815 = vmatpush.bf16.msrb.mxu3 %v9457_v61  ;;  %v10334_v16 = vld [vmem:[#allocation8 + $0x384] sm:$0xf]  ;;  %v9090_v17 = vld [vmem:[#allocation8 + $0x430] sm:$0xf0] }
 0x3b3   :  { %5855 = vmatpush.bf16.msra.mxu2 %v8853_v10  ;;  %5828 = vmatpush.bf16.msra.mxu0 %v8581_v23  ;;  %v9157_v10 = vor.u32 %v10370_v25, %v9154_v38  ;;  %v9138_v23 = vld [vmem:[#allocation8 + $0x490] sm:$0xf0]  ;;  %v10426_v9 = vld [vmem:[#allocation8 + $0x664] sm:$0xf] }
 0x3b4   :  { %5802 = vmatmul.bf16.vlgmr.msrb.gmra.mxu2 %v11154_v32  ;;  %v9141_v58 = vor.u32 %v10366_v33, %v9138_v23  ;;  %v10354_v37 = vld [vmem:[#allocation8 + $0x424] sm:$0xf]  ;;  %v9218_v25 = vld [vmem:[#allocation8 + $0x530] sm:$0xf0]  ;;  %v8680_v23 = vld [vmem:[#allocation8 + $0xe8] sm:$0xf] }
 0x3b5   :  { %5842 = vmatpush.bf16.msra.mxu1 %v8709_v2  ;;  %v9410_v2 = vld [vmem:[#allocation8 + $0x6b0] sm:$0xf0]  ;;  %v10330_v4 = vld [vmem:[#allocation8 + $0x364] sm:$0xf]  ;;  %v9093_v55 = vor.u32 %v10354_v37, %v9090_v17  ;;  %v10313_v37 = vld [vmem:[#allocation8 + $0x2d4] sm:$0xf0] }
 0x3b6   :  { %5864 = vmatpush.bf16.msra.mxu3 %v9061_v12  ;;  %v9413_v53 = vor.u32 %v10434_v28, %v9410_v2  ;;  %v10422_v44 = vld [vmem:[#allocation8 + $0x644] sm:$0xf]  ;;  %v8997_v38 = vor.u32 %v10330_v4, %v8994_v8  ;;  %v9074_v52 = vld [vmem:[#allocation8 + $0x410] sm:$0xf0]  ;;  %v8808_v28 = vld [vmem:[#allocation8 + $0x1e8] sm:$0xf] }
 0x3b7   :  { %5856 = vmatpush.bf16.msra.mxu2 %v8837_v18  ;;  %5829 = vmatpush.bf16.msra.mxu0 %v8565_v19  ;;  %v9269_v18 = vor.u32 %v10398_v34, %v9266_v39  ;;  %v9125_v19 = vor.u32 %v10362_v13, %v9122_v49  ;;  %v10326_v61 = vld [vmem:[#allocation8 + $0x344] sm:$0xf]  ;;  %v8978_v22 = vld [vmem:[#allocation8 + $0x350] sm:$0xf0]  ;;  %v10285_v2 = vld [vmem:[#allocation8 + $0x1f4] sm:$0xf0]  ;;  %v8681_v13 = vor.u32 %v10253_v45, %v8680_v23 }
 0x3b8   :  { %v10382_v12 = vld [vmem:[#allocation8 + $0x504] sm:$0xf]  ;;  %v9202_v33 = vld [vmem:[#allocation8 + $0x510] sm:$0xf0]  ;;  %v8809_v49 = vor.u32 %v10285_v2, %v8808_v28  ;;  %v8776_v17 = vld [vmem:[#allocation8 + $0x1a8] sm:$0xf] }
 0x3b9   :  { %5843 = vmatpush.bf16.msra.mxu1 %v8693_v63  ;;  %v9010_v63 = vld [vmem:[#allocation8 + $0x390] sm:$0xf0]  ;;  %v10414_v62 = vld [vmem:[#allocation8 + $0x604] sm:$0xf]  ;;  %v10237_v45 = vld [vmem:[#allocation8 + $0x74] sm:$0xf0] }
 0x3ba   :  { %5830 = vmatmul.bf16.vlgmr.msra.gmra.mxu0 %v11106_v3  ;;  %5865 = vmatpush.bf16.msra.mxu3 %v9045_v0  ;;  %v9013_v15 = vor.u32 %v10334_v16, %v9010_v63  ;;  %v10322_v0 = vld [vmem:[#allocation8 + $0x324] sm:$0xf]  ;;  %v9330_v43 = vld [vmem:[#allocation8 + $0x610] sm:$0xf0]  ;;  %v4065_v16 = vpop.f32.mrf.mxu2  ;;  %v10305_v28 = vld [vmem:[#allocation8 + $0x294] sm:$0xf0] }
 0x3bb   :  { %5878 = vmatpush.bf16.msrb.mxu0 %v9189_v30  ;;  %5857 = vmatpush.bf16.msra.mxu2 %v8821_v29  ;;  %v9253_v30 = vor.u32 %v10394_v26, %v9250_v59  ;;  %v9381_v29 = vor.u32 %v10426_v9, %v9378_v50  ;;  %v10317_v26 = vld [vmem:[#allocation8 + $0x2f4] sm:$0xf0]  ;;  %v9333_v63 = vor.u32 %v10414_v62, %v9330_v43  ;;  %v8946_v35 = vld [vmem:[#allocation8 + $0x310] sm:$0xf0]  ;;  %v11160_v9 = vpop.f32.mrf.mxu3  ;;  %v8600_v62 = vld [vmem:[#allocation8 + $0x48] sm:$0xf] }
 0x3bc   :  { %5844 = vmatmul.bf16.vlgmr.msra.gmra.mxu1 %v11108_v60 }
 0x3bd   :  { %5892 = vmatpush.bf16.msrb.mxu1 %v9317_v36  ;;  %v10390_v36 = vld [vmem:[#allocation8 + $0x544] sm:$0xf] }
 0x3be   :  { %5866 = vmatpush.bf16.msra.mxu3 %v9029_v48  ;;  %v9237_v7 = vor.u32 %v10390_v36, %v9234_v46  ;;  %v10530_v48 = vld [vmem:[#allocation7] sm:$0xff]  ;;  %v8937_v36 = vor.u32 %v10317_v26, %v8936_v5  ;;  %v8648_v46 = vld [vmem:[#allocation8 + $0xa8] sm:$0xf] }
 0x3bf   :  { %5879 = vmatpush.bf16.msrb.mxu0 %v9173_v1  ;;  %5906 = vmatpush.bf16.msrb.mxu2 %v9445_v21  ;;  %v9362_v1 = vld [vmem:[#allocation8 + $0x650] sm:$0xf0]  ;;  %v10386_v21 = vld [vmem:[#allocation8 + $0x524] sm:$0xf]  ;;  %v10301_v5 = vld [vmem:[#allocation8 + $0x274] sm:$0xf0] }
 0x3c0   :  { %v9365_v40 = vor.u32 %v10422_v44, %v9362_v1  ;;  %v9221_v11 = vor.u32 %v10386_v21, %v9218_v25  ;;  %v10277_v44 = vld [vmem:[#allocation8 + $0x1b4] sm:$0xf0]  ;;  %v8632_v25 = vld [vmem:[#allocation8 + $0x88] sm:$0xf] }
 0x3c1   :  { %5893 = vmatpush.bf16.msrb.mxu1 %v9301_v56  ;;  %v10350_v56 = vld [vmem:[#allocation8 + $0x404] sm:$0xf] }
 0x3c2   :  { %5867 = vmatpush.bf16.msra.mxu3 %v9013_v15  ;;  %v9077_v34 = vor.u32 %v10350_v56, %v9074_v52  ;;  %v8777_v56 = vor.u32 %v10277_v44, %v8776_v17  ;;  %v10309_v52 = vld [vmem:[#allocation8 + $0x2b4] sm:$0xf0]  ;;  %v8568_v44 = vld [vmem:[#allocation8 + $0x8] sm:$0xf] }
 0x3c3   :  { %5880 = vmatpush.bf16.msrb.mxu0 %v9157_v10  ;;  %5907 = vmatpush.bf16.msrb.mxu2 %v9429_v41  ;;  %v10418_v10 = vld [vmem:[#allocation8 + $0x624] sm:$0xf]  ;;  %v9346_v41 = vld [vmem:[#allocation8 + $0x630] sm:$0xf0] }
 0x3c4   :  { %5858 = vmatmul.bf16.vlgmr.msra.gmra.mxu2 %v11110_v31  ;;  %v9349_v39 = vor.u32 %v10418_v10, %v9346_v41  ;;  %v8616_v41 = vld [vmem:[#allocation8 + $0x68] sm:$0xf] }
 0x3c5   :  { %5894 = vmatpush.bf16.msrb.mxu1 %v9285_v51  ;;  %v8981_v51 = vor.u32 %v10326_v61, %v8978_v22 }
 0x3c6   :  { %5868 = vmatpush.bf16.msra.mxu3 %v8997_v38  ;;  %v4053_v38 = vpop.f32.mrf.mxu1 }
 0x3c7   :  { %5881 = vmatpush.bf16.msrb.mxu0 %v9141_v58  ;;  %5908 = vmatpush.bf16.msrb.mxu2 %v9413_v53  ;;  %v8962_v58 = vld [vmem:[#allocation8 + $0x330] sm:$0xf0]  ;;  %v9205_v53 = vor.u32 %v10382_v12, %v9202_v33  ;;  %v4067_v33 = vpop.f32.mrf.mxu2 }
 0x3c8   :  { %v8965_v59 = vor.u32 %v10322_v0, %v8962_v58  ;;  %v8744_v0 = vld [vmem:[#allocation8 + $0x168] sm:$0xf]  ;;  %v10269_v58 = vld [vmem:[#allocation8 + $0x174] sm:$0xf0] }
 0x3c9   :  { %5895 = vmatpush.bf16.msrb.mxu1 %v9269_v18  ;;  %v8664_v18 = vld [vmem:[#allocation8 + $0xc8] sm:$0xf] }
 0x3ca   :  { %5869 = vmatpush.bf16.msra.mxu3 %v8981_v51  ;;  %v8665_v50 = vor.u32 %v10249_v57, %v8664_v18  ;;  %v8888_v51 = vld [vmem:[#allocation8 + $0x288] sm:$0xf]  ;;  %v8745_v18 = vor.u32 %v10269_v58, %v8744_v0  ;;  %v10377_v0 = vld [vmem:[#allocation8 + $0x4d4] sm:$0xf0] }
 0x3cb   :  { %5882 = vmatpush.bf16.msrb.mxu0 %v9125_v19  ;;  %5909 = vmatpush.bf16.msrb.mxu2 %v9397_v6  ;;  %v675_v19 = vperm.slane %v10530_v48, 7  ;;  %v8792_v6 = vld [vmem:[#allocation8 + $0x1c8] sm:$0xf] }
 0x3cc   :  { %v8793_v15 = vor.u32 %v10281_v20, %v8792_v6  ;;  %v8872_v57 = vld [vmem:[#allocation8 + $0x268] sm:$0xf] }
 0x3cd   :  { %5896 = vmatpush.bf16.msrb.mxu1 %v9253_v30  ;;  %v10318_v30 = vld [vmem:[#allocation8 + $0x304] sm:$0xf]  ;;  %v4038_v8 = vadd.f32 %v4037_v27, %v675_v19  ;;  %v8760_v27 = vld [vmem:[#allocation8 + $0x188] sm:$0xf] }
 0x3ce   :  { %5870 = vmatpush.bf16.msra.mxu3 %v8965_v59  ;;  %v8949_v4 = vor.u32 %v10318_v30, %v8946_v35  ;;  %v8728_v48 = vld [vmem:[#allocation8 + $0x148] sm:$0xf]  ;;  %v10229_v30 = vld [vmem:[#allocation8 + $0x34] sm:$0xf0] }
 0x3cf   :  { %5883 = vmatpush.bf16.msrb.mxu0 %v9109_v47  ;;  %5910 = vmatpush.bf16.msrb.mxu2 %v9381_v29  ;;  %v10245_v47 = vld [vmem:[#allocation8 + $0xb4] sm:$0xf0]  ;;  %v8920_v29 = vld [vmem:[#allocation8 + $0x2c8] sm:$0xf]  ;;  %v4052_v61 = vadd.f32 %v4051_v54, %v4038_v8 }
 0x3d0   :  { %v8649_v1 = vor.u32 %v10245_v47, %v8648_v46  ;;  %v8921_v21 = vor.u32 %v10313_v37, %v8920_v29  ;;  %v10297_v46 = vld [vmem:[#allocation8 + $0x254] sm:$0xf0]  ;;  %v8712_v37 = vld [vmem:[#allocation8 + $0x128] sm:$0xf] }
 0x3d1   :  { %5897 = vmatpush.bf16.msrb.mxu1 %v9237_v7  ;;  %v4039_v7 = vpop.f32.mrf.mxu0  ;;  %v4066_v2 = vadd.f32 %v4065_v16, %v4052_v61  ;;  %v8873_v16 = vor.u32 %v10301_v5, %v8872_v57  ;;  %v10381_v61 = vld [vmem:[#allocation8 + $0x4f4] sm:$0xf0]  ;;  %v9448_v58 = vld [vmem:[#allocation8 + $0x6e8] sm:$0xf]  ;;  %v10474_v57 = vld [vmem:[#allocation8 + $0x7e4] sm:$0xf] }
 0x3d2   :  { %5871 = vmatpush.bf16.msra.mxu3 %v8949_v4  ;;  %v4040_v22 = vadd.f32 %v4039_v7, %v675_v19  ;;  %v10265_v19 = vld [vmem:[#allocation8 + $0x154] sm:$0xf0]  ;;  %v9570_v5 = vld [vmem:[#allocation8 + $0x7f0] sm:$0xf0] }
 0x3d3   :  { %5884 = vmatpush.bf16.msrb.mxu0 %v9093_v55  ;;  %5911 = vmatpush.bf16.msrb.mxu2 %v9365_v40  ;;  %v10241_v55 = vld [vmem:[#allocation8 + $0x94] sm:$0xf0]  ;;  %v8904_v40 = vld [vmem:[#allocation8 + $0x2a8] sm:$0xf]  ;;  %v4080_v26 = vadd.f32 %v11160_v9, %v4066_v2 }
 0x3d4   :  { %v8633_v12 = vor.u32 %v10241_v55, %v8632_v25  ;;  %v8905_v10 = vor.u32 %v10309_v52, %v8904_v40  ;;  %v10261_v9 = vld [vmem:[#allocation8 + $0x134] sm:$0xf0]  ;;  %v8696_v25 = vld [vmem:[#allocation8 + $0x108] sm:$0xf] }
 0x3d5   :  { %5898 = vmatpush.bf16.msrb.mxu1 %v9221_v11  ;;  %v10273_v11 = vld [vmem:[#allocation8 + $0x194] sm:$0xf0]  ;;  %v9192_v52 = vld [vmem:[#allocation8 + $0x4e8] sm:$0xf] }
 0x3d6   :  { %v8761_v23 = vor.u32 %v10273_v11, %v8760_v27  ;;  %v10257_v40 = vld [vmem:[#allocation8 + $0x114] sm:$0xf0]  ;;  %v9320_v27 = vld [vmem:[#allocation8 + $0x5e8] sm:$0xf] }
 0x3d7   :  { %5885 = vmatpush.bf16.msrb.mxu0 %v9077_v34  ;;  %5912 = vmatpush.bf16.msrb.mxu2 %v9349_v39  ;;  %v4054_v34 = vadd.f32 %v4053_v38, %v4040_v22  ;;  %v4081_v39 = vpop.f32.mrf.mxu3  ;;  %v8840_v38 = vld [vmem:[#allocation8 + $0x228] sm:$0xf]  ;;  %v10413_v11 = vld [vmem:[#allocation8 + $0x5f4] sm:$0xf0] }
 0x3d8   :  { %v9176_v2 = vld [vmem:[#allocation8 + $0x4c8] sm:$0xf] }
 0x3d9   :  { %5899 = vmatpush.bf16.msrb.mxu1 %v9205_v53  ;;  %v4093_v54 = vpop.f32.mrf.mxu0  ;;  %v8617_v53 = vor.u32 %v10237_v45, %v8616_v41  ;;  %v4107_v43 = vpop.f32.mrf.mxu1  ;;  %v4068_v59 = vadd.f32 %v4067_v33, %v4054_v34  ;;  %v9193_v45 = vor.u32 %v10381_v61, %v9192_v52  ;;  %v10365_v61 = vld [vmem:[#allocation8 + $0x474] sm:$0xf0] }
 0x3da   :  { %5886 = vmatmul.bf16.vlgmr.msrb.gmra.mxu0 %v11148_v24  ;;  %v4094_v6 = vadd.f32 %v4093_v54, %v4080_v26  ;;  %v9321_v54 = vor.u32 %v10413_v11, %v9320_v27  ;;  %v9177_v26 = vor.u32 %v10377_v0, %v9176_v2  ;;  %v10433_v27 = vld [vmem:[#allocation8 + $0x694] sm:$0xf0]  ;;  %v9240_v0 = vld [vmem:[#allocation8 + $0x548] sm:$0xf] }
 0x3db   :  { %5934 = vmatpush.bf16.msra.mxu0 %v8681_v13  ;;  %5913 = vmatpush.bf16.msrb.mxu2 %v9333_v63  ;;  %v8889_v13 = vor.u32 %v10305_v28, %v8888_v51  ;;  %v8584_v63 = vld [vmem:[#allocation8 + $0x28] sm:$0xf]  ;;  %v10289_v28 = vld [vmem:[#allocation8 + $0x214] sm:$0xf0] }
 0x3dc   :  { %5900 = vmatmul.bf16.vlgmr.msrb.gmra.mxu1 %v11150_v42  ;;  %v8585_v4 = vor.u32 %v10229_v30, %v8584_v63  ;;  %v4108_v8 = vadd.f32 %v4107_v43, %v4094_v6  ;;  %v8824_v51 = vld [vmem:[#allocation8 + $0x208] sm:$0xf]  ;;  %v10409_v43 = vld [vmem:[#allocation8 + $0x5d4] sm:$0xf0] }
 0x3dd   :  { %5948 = vmatpush.bf16.msra.mxu1 %v8809_v49  ;;  %v10233_v49 = vld [vmem:[#allocation8 + $0x54] sm:$0xf0]  ;;  %v9432_v63 = vld [vmem:[#allocation8 + $0x6c8] sm:$0xf] }
 0x3de   :  { %5914 = vmatmul.bf16.vlgmr.msrb.gmra.mxu2 %v11154_v32  ;;  %v8601_v20 = vor.u32 %v10233_v49, %v8600_v62  ;;  %v9304_v62 = vld [vmem:[#allocation8 + $0x5c8] sm:$0xf]  ;;  %v8825_v49 = vor.u32 %v10289_v28, %v8824_v51  ;;  %v10441_v30 = vld [vmem:[#allocation8 + $0x6d4] sm:$0xf0] }
 0x3df   :  { %5935 = vmatpush.bf16.msra.mxu0 %v8665_v50  ;;  %5962 = vmatpush.bf16.msra.mxu2 %v8937_v36  ;;  %v8729_v50 = vor.u32 %v10265_v19, %v8728_v48  ;;  %v8856_v36 = vld [vmem:[#allocation8 + $0x248] sm:$0xf]  ;;  %v10373_v19 = vld [vmem:[#allocation8 + $0x4b4] sm:$0xf0] }
 0x3e0   :  { %v8857_v17 = vor.u32 %v10297_v46, %v8856_v36  ;;  %v9160_v48 = vld [vmem:[#allocation8 + $0x4a8] sm:$0xf]  ;;  %v10405_v36 = vld [vmem:[#allocation8 + $0x5b4] sm:$0xf0] }
 0x3e1   :  { %5949 = vmatpush.bf16.msra.mxu1 %v8793_v15  ;;  %v4121_v35 = vpop.f32.mrf.mxu2  ;;  %v4082_v15 = vadd.f32 %v4081_v39, %v4068_v59  ;;  %v4095_v29 = vpop.f32.mrf.mxu0  ;;  %v9112_v51 = vld [vmem:[#allocation8 + $0x448] sm:$0xf]  ;;  %v10361_v2 = vld [vmem:[#allocation8 + $0x454] sm:$0xf0] }
 0x3e2   :  { %v4122_v55 = vadd.f32 %v4121_v35, %v4108_v8  ;;  %v4109_v22 = vpop.f32.mrf.mxu1  ;;  %v9573_v35 = vor.u32 %v10474_v57, %v9570_v5  ;;  %v10369_v8 = vld [vmem:[#allocation8 + $0x494] sm:$0xf0]  ;;  %v9368_v5 = vld [vmem:[#allocation8 + $0x648] sm:$0xf] }
 0x3e3   :  { %5936 = vmatpush.bf16.msra.mxu0 %v8649_v1  ;;  %5963 = vmatpush.bf16.msra.mxu2 %v8921_v21  ;;  %v4135_v47 = vpop.f32.mrf.mxu3  ;;  %v4096_v7 = vadd.f32 %v4095_v29, %v4082_v15  ;;  %v10225_v1 = vld [vmem:[#allocation8 + $0x14] sm:$0xf0]  ;;  %v8713_v21 = vor.u32 %v10261_v9, %v8712_v37  ;;  %v10470_v15 = vld [vmem:[#allocation8 + $0x7c4] sm:$0xf]  ;;  %v9161_v29 = vor.u32 %v10373_v19, %v9160_v48  ;;  %v9144_v9 = vld [vmem:[#allocation8 + $0x488] sm:$0xf] }
 0x3e4   :  { %v4136_v34 = vadd.f32 %v4135_v47, %v4122_v55  ;;  %v9554_v47 = vld [vmem:[#allocation8 + $0x7d0] sm:$0xf0]  ;;  %v9433_v37 = vor.u32 %v10441_v30, %v9432_v63  ;;  %v10357_v57 = vld [vmem:[#allocation8 + $0x434] sm:$0xf0]  ;;  %v9224_v48 = vld [vmem:[#allocation8 + $0x528] sm:$0xf] }
 0x3e5   :  { %5950 = vmatpush.bf16.msra.mxu1 %v8777_v56  ;;  %v10293_v56 = vld [vmem:[#allocation8 + $0x234] sm:$0xf0]  ;;  %v9080_v30 = vld [vmem:[#allocation8 + $0x408] sm:$0xf] }
 0x3e6   :  { %v8841_v41 = vor.u32 %v10293_v56, %v8840_v38  ;;  %v4147_v6 = vmax.f32 %v4136_v34, 0.0  ;;  %v9538_v38 = vld [vmem:[#allocation8 + $0x7b0] sm:$0xf0]  ;;  %v9145_v56 = vor.u32 %v10369_v8, %v9144_v9  ;;  %v9384_v34 = vld [vmem:[#allocation8 + $0x668] sm:$0xf] }
 0x3e7   :  { %5937 = vmatpush.bf16.msra.mxu0 %v8633_v12  ;;  %5964 = vmatpush.bf16.msra.mxu2 %v8905_v10  ;;  %v4110_v12 = vadd.f32 %v4109_v22, %v4096_v7  ;;  %v8569_v10 = vor.u32 %v10225_v1, %v8568_v44  ;;  %v9416_v7 = vld [vmem:[#allocation8 + $0x6a8] sm:$0xf]  ;;  %v9557_v44 = vor.u32 %v10470_v15, %v9554_v47  ;;  %v10389_v19 = vld [vmem:[#allocation8 + $0x534] sm:$0xf0]  ;;  %v10450_v9 = vld [vmem:[#allocation8 + $0x724] sm:$0xf] }
 0x3e8   :  { %v9272_v1 = vld [vmem:[#allocation8 + $0x588] sm:$0xf]  ;;  %v10385_v15 = vld [vmem:[#allocation8 + $0x514] sm:$0xf0]  ;;  %v8682_v8 = vld [vmem:[#allocation8 + $0xf8] sm:$0xf0] }
 0x3e9   :  { %5951 = vmatpush.bf16.msra.mxu1 %v8761_v23  ;;  %v4123_v33 = vpop.f32.mrf.mxu2  ;;  %v8697_v23 = vor.u32 %v10257_v40, %v8696_v25  ;;  %v10466_v25 = vld [vmem:[#allocation8 + $0x7a4] sm:$0xf]  ;;  %v9128_v40 = vld [vmem:[#allocation8 + $0x468] sm:$0xf] }
 0x3ea   :  { %v4124_v39 = vadd.f32 %v4123_v33, %v4110_v12  ;;  %v9400_v22 = vld [vmem:[#allocation8 + $0x688] sm:$0xf]  ;;  %v9541_v11 = vor.u32 %v10466_v25, %v9538_v38  ;;  %v9522_v33 = vld [vmem:[#allocation8 + $0x790] sm:$0xf0] }
 0x3eb   :  { %5938 = vmatpush.bf16.msra.mxu0 %v8617_v53  ;;  %5965 = vmatpush.bf16.msra.mxu2 %v8889_v13  ;;  %v10445_v53 = vld [vmem:[#allocation8 + $0x6f4] sm:$0xf0]  ;;  %v4137_v13 = vpop.f32.mrf.mxu3  ;;  %v9256_v12 = vld [vmem:[#allocation8 + $0x568] sm:$0xf] }
 0x3ec   :  { %v9449_v59 = vor.u32 %v10445_v53, %v9448_v58  ;;  %v10393_v58 = vld [vmem:[#allocation8 + $0x554] sm:$0xf0]  ;;  %v10458_v53 = vld [vmem:[#allocation8 + $0x764] sm:$0xf]  ;;  %v9352_v47 = vld [vmem:[#allocation8 + $0x628] sm:$0xf] }
 0x3ed   :  { %5952 = vmatpush.bf16.msra.mxu1 %v8745_v18  ;;  %v4138_v18 = vadd.f32 %v4137_v13, %v4124_v39  ;;  %v10429_v39 = vld [vmem:[#allocation8 + $0x674] sm:$0xf0]  ;;  %v9506_v13 = vld [vmem:[#allocation8 + $0x770] sm:$0xf0] }
 0x3ef   :  { %5939 = vmatpush.bf16.msra.mxu0 %v8601_v20  ;;  %5966 = vmatpush.bf16.msra.mxu2 %v8873_v16  ;;  %v4155_v20 = vmax.f32 %v4138_v18, 0.0  ;;  %v9305_v16 = vor.u32 %v10409_v43, %v9304_v62  ;;  %v9113_v62 = vor.u32 %v10361_v2, %v9112_v51  ;;  %v9385_v43 = vor.u32 %v10429_v39, %v9384_v34  ;;  %v9096_v18 = vld [vmem:[#allocation8 + $0x428] sm:$0xf]  ;;  %v10349_v51 = vld [vmem:[#allocation8 + $0x3f4] sm:$0xf0] }
 0x3f1   :  { %5953 = vmatpush.bf16.msra.mxu1 %v8729_v50  ;;  %v9288_v50 = vld [vmem:[#allocation8 + $0x5a8] sm:$0xf]  ;;  %v11167_v46 = vpack.c.bf16 %v4155_v20, %v4147_v6  ;;  %v10454_v6 = vld [vmem:[#allocation8 + $0x744] sm:$0xf]  ;;  %v9490_v20 = vld [vmem:[#allocation8 + $0x750] sm:$0xf0] }
 0x3f3   :  { %5940 = vmatpush.bf16.msra.mxu0 %v8585_v4  ;;  %5967 = vmatpush.bf16.msra.mxu2 %v8857_v17  ;;  %v9289_v4 = vor.u32 %v10405_v36, %v9288_v50  ;;  %v10437_v17 = vld [vmem:[#allocation8 + $0x6b4] sm:$0xf0]  ;;  %v9208_v50 = vld [vmem:[#allocation8 + $0x508] sm:$0xf]  ;;  %v9225_v36 = vor.u32 %v10389_v19, %v9224_v48  ;;  %v8634_v48 = vld [vmem:[#allocation8 + $0x98] sm:$0xf0] }
 0x3f4   :  { %5816 = vmatmul.bf16.vlgmr.msrb.gmra.mxu3 %v11167_v46  ;;  %v9417_v55 = vor.u32 %v10437_v17, %v9416_v7  ;;  %v9474_v7 = vld [vmem:[#allocation8 + $0x730] sm:$0xf0]  ;;  %v10283_v17 = vld [vmem:[#allocation8 + $0x1ec] sm:$0xf]  ;;  %v9209_v25 = vor.u32 %v10385_v15, %v9208_v50 }
 0x3f5   :  { %5954 = vmatpush.bf16.msra.mxu1 %v8713_v21  ;;  %5920 = vmatpush.bf16.msrb.mxu3 %v9573_v35  ;;  %v10401_v21 = vld [vmem:[#allocation8 + $0x594] sm:$0xf0]  ;;  %v10271_v19 = vld [vmem:[#allocation8 + $0x18c] sm:$0xf] }
 0x3f6   :  { %v9273_v52 = vor.u32 %v10401_v21, %v9272_v1  ;;  %v10353_v35 = vld [vmem:[#allocation8 + $0x414] sm:$0xf0] }
 0x3f7   :  { %5941 = vmatpush.bf16.msra.mxu0 %v8569_v10  ;;  %5968 = vmatpush.bf16.msra.mxu2 %v8841_v41  ;;  %v10397_v10 = vld [vmem:[#allocation8 + $0x574] sm:$0xf0]  ;;  %v10462_v41 = vld [vmem:[#allocation8 + $0x784] sm:$0xf]  ;;  %v9081_v1 = vor.u32 %v10353_v35, %v9080_v30  ;;  %v9032_v30 = vld [vmem:[#allocation8 + $0x3a8] sm:$0xf] }
 0x3f8   :  { %v9257_v28 = vor.u32 %v10397_v10, %v9256_v12  ;;  %v8938_v12 = vld [vmem:[#allocation8 + $0x2f8] sm:$0xf0]  ;;  %v9458_v10 = vld [vmem:[#allocation8 + $0x710] sm:$0xf0]  ;;  %v10341_v35 = vld [vmem:[#allocation8 + $0x3b4] sm:$0xf0] }
 0x3f9   :  { %5955 = vmatpush.bf16.msra.mxu1 %v8697_v23  ;;  %5921 = vmatpush.bf16.msrb.mxu3 %v9557_v44  ;;  %v9129_v23 = vor.u32 %v10365_v61, %v9128_v40  ;;  %v8810_v44 = vld [vmem:[#allocation8 + $0x1f8] sm:$0xf0]  ;;  %v10417_v40 = vld [vmem:[#allocation8 + $0x614] sm:$0xf0]  ;;  %v9477_v61 = vor.u32 %v10450_v9, %v9474_v7  ;;  %v9033_v9 = vor.u32 %v10341_v35, %v9032_v30  ;;  %v8952_v35 = vld [vmem:[#allocation8 + $0x308] sm:$0xf] }
 0x3fa   :  { %5942 = vmatmul.bf16.vlgmr.msra.gmra.mxu0 %v11106_v3  ;;  %v8890_v7 = vld [vmem:[#allocation8 + $0x298] sm:$0xf0] }
 0x3fb   :  { %5990 = vmatpush.bf16.msrb.mxu0 %v9193_v45  ;;  %5969 = vmatpush.bf16.msra.mxu2 %v8825_v49  ;;  %v9401_v45 = vor.u32 %v10433_v27, %v9400_v22  ;;  %v9241_v49 = vor.u32 %v10393_v58, %v9240_v0  ;;  %v8813_v22 = vor.u32 %v10283_v17, %v8810_v44  ;;  %v8666_v27 = vld [vmem:[#allocation8 + $0xd8] sm:$0xf0]  ;;  %v10275_v58 = vld [vmem:[#allocation8 + $0x1ac] sm:$0xf]  ;;  %v9016_v17 = vld [vmem:[#allocation8 + $0x388] sm:$0xf] }
 0x3fc   :  { %5956 = vmatmul.bf16.vlgmr.msra.gmra.mxu1 %v11108_v60  ;;  %v8650_v0 = vld [vmem:[#allocation8 + $0xb8] sm:$0xf0]  ;;  %v10337_v44 = vld [vmem:[#allocation8 + $0x394] sm:$0xf0] }
 0x3fd   :  { %6004 = vmatpush.bf16.msrb.mxu1 %v9321_v54  ;;  %5922 = vmatpush.bf16.msrb.mxu3 %v9541_v11  ;;  %v9525_v54 = vor.u32 %v10462_v41, %v9522_v33  ;;  %v10315_v11 = vld [vmem:[#allocation8 + $0x2ec] sm:$0xf]  ;;  %v8794_v33 = vld [vmem:[#allocation8 + $0x1d8] sm:$0xf0] }
 0x3fe   :  { %5970 = vmatmul.bf16.vlgmr.msra.gmra.mxu2 %v11110_v31  ;;  %v10279_v41 = vld [vmem:[#allocation8 + $0x1cc] sm:$0xf]  ;;  %v8941_v2 = vor.u32 %v10315_v11, %v8938_v12  ;;  %v10333_v11 = vld [vmem:[#allocation8 + $0x374] sm:$0xf0] }
 0x3ff   :  { %5991 = vmatpush.bf16.msrb.mxu0 %v9177_v26  ;;  %6018 = vmatpush.bf16.msrb.mxu2 %v9449_v59  ;;  %v10425_v26 = vld [vmem:[#allocation8 + $0x654] sm:$0xf0]  ;;  %v9509_v59 = vor.u32 %v10458_v53, %v9506_v13  ;;  %v8797_v39 = vor.u32 %v10279_v41, %v8794_v33  ;;  %v8778_v13 = vld [vmem:[#allocation8 + $0x1b8] sm:$0xf0]  ;;  %v10227_v33 = vld [vmem:[#allocation8 + $0x2c] sm:$0xf] }
 0x400   :  { %v9369_v63 = vor.u32 %v10425_v26, %v9368_v5  ;;  %v8781_v5 = vor.u32 %v10275_v58, %v8778_v13  ;;  %v10223_v58 = vld [vmem:[#allocation8 + $0xc] sm:$0xf] }
 0x401   :  { %6005 = vmatpush.bf16.msrb.mxu1 %v9305_v16  ;;  %5923 = vmatpush.bf16.msrb.mxu3 %v9525_v54  ;;  %v9097_v16 = vor.u32 %v10357_v57, %v9096_v18  ;;  %v10243_v54 = vld [vmem:[#allocation8 + $0xac] sm:$0xf]  ;;  %v9048_v18 = vld [vmem:[#allocation8 + $0x3c8] sm:$0xf] }
 0x402   :  { %v8653_v57 = vor.u32 %v10243_v54, %v8650_v0  ;;  %v10329_v54 = vld [vmem:[#allocation8 + $0x354] sm:$0xf0] }
 0x403   :  { %5992 = vmatpush.bf16.msrb.mxu0 %v9161_v29  ;;  %6019 = vmatpush.bf16.msrb.mxu2 %v9433_v37  ;;  %v10421_v29 = vld [vmem:[#allocation8 + $0x634] sm:$0xf0]  ;;  %v9493_v37 = vor.u32 %v10454_v6, %v9490_v20  ;;  %v8762_v20 = vld [vmem:[#allocation8 + $0x198] sm:$0xf0] }
 0x404   :  { %5872 = vmatmul.bf16.vlgmr.msra.gmra.mxu3 %v11119_v14  ;;  %v9353_v21 = vor.u32 %v10421_v29, %v9352_v47  ;;  %v10235_v47 = vld [vmem:[#allocation8 + $0x6c] sm:$0xf]  ;;  %v8618_v29 = vld [vmem:[#allocation8 + $0x78] sm:$0xf0] }
 0x405   :  { %6006 = vmatpush.bf16.msrb.mxu1 %v9289_v4  ;;  %5924 = vmatpush.bf16.msrb.mxu3 %v9509_v59  ;;  %v10251_v4 = vld [vmem:[#allocation8 + $0xec] sm:$0xf] }
 0x406   :  { %v8685_v38 = vor.u32 %v10251_v4, %v8682_v8  ;;  %v10239_v59 = vld [vmem:[#allocation8 + $0x8c] sm:$0xf]  ;;  %v8746_v4 = vld [vmem:[#allocation8 + $0x178] sm:$0xf0] }
 0x407   :  { %5993 = vmatpush.bf16.msrb.mxu0 %v9145_v56  ;;  %6020 = vmatpush.bf16.msrb.mxu2 %v9417_v55  ;;  %v10446_v56 = vld [vmem:[#allocation8 + $0x704] sm:$0xf]  ;;  %v9336_v55 = vld [vmem:[#allocation8 + $0x608] sm:$0xf]  ;;  %v8637_v50 = vor.u32 %v10239_v59, %v8634_v48  ;;  %v10303_v8 = vld [vmem:[#allocation8 + $0x28c] sm:$0xf] }
 0x408   :  { %v9461_v34 = vor.u32 %v10446_v56, %v9458_v10  ;;  %v8602_v56 = vld [vmem:[#allocation8 + $0x58] sm:$0xf0]  ;;  %v10325_v59 = vld [vmem:[#allocation8 + $0x334] sm:$0xf0]  ;;  %v10379_v48 = vld [vmem:[#allocation8 + $0x4ec] sm:$0xf] }
 0x409   :  { %6007 = vmatpush.bf16.msrb.mxu1 %v9273_v52  ;;  %v10247_v52 = vld [vmem:[#allocation8 + $0xcc] sm:$0xf]  ;;  %5925 = vmatpush.bf16.msrb.mxu3 %v9493_v37 }
 0x40a   :  { %v10267_v37 = vld [vmem:[#allocation8 + $0x16c] sm:$0xf] }
 0x40b   :  { %5994 = vmatpush.bf16.msrb.mxu0 %v9129_v23  ;;  %6021 = vmatpush.bf16.msrb.mxu2 %v9401_v45  ;;  %v9337_v23 = vor.u32 %v10417_v40, %v9336_v55  ;;  %v9064_v45 = vld [vmem:[#allocation8 + $0x3e8] sm:$0xf]  ;;  %v10263_v55 = vld [vmem:[#allocation8 + $0x14c] sm:$0xf]  ;;  %v9017_v40 = vor.u32 %v10337_v44, %v9016_v17  ;;  %v10477_v44 = vld [vmem:[#allocation8 + $0x7f4] sm:$0xf0] }
 0x40c   :  { %v9065_v53 = vor.u32 %v10349_v51, %v9064_v45  ;;  %v10259_v45 = vld [vmem:[#allocation8 + $0x12c] sm:$0xf]  ;;  %v9576_v17 = vld [vmem:[#allocation8 + $0x7e8] sm:$0xf] }
 0x40d   :  { %6008 = vmatpush.bf16.msrb.mxu1 %v9257_v28  ;;  %v8669_v28 = vor.u32 %v10247_v52, %v8666_v27  ;;  %5926 = vmatpush.bf16.msrb.mxu3 %v9477_v61  ;;  %v8730_v52 = vld [vmem:[#allocation8 + $0x158] sm:$0xf0]  ;;  %v10299_v61 = vld [vmem:[#allocation8 + $0x26c] sm:$0xf]  ;;  %v9000_v27 = vld [vmem:[#allocation8 + $0x368] sm:$0xf] }
 0x40e   :  { %v8733_v10 = vor.u32 %v10263_v55, %v8730_v52  ;;  %v9001_v51 = vor.u32 %v10333_v11, %v9000_v27  ;;  %v10371_v52 = vld [vmem:[#allocation8 + $0x4ac] sm:$0xf]  ;;  %v9290_v11 = vld [vmem:[#allocation8 + $0x5b8] sm:$0xf0] }
 0x40f   :  { %5995 = vmatpush.bf16.msrb.mxu0 %v9113_v62  ;;  %6022 = vmatpush.bf16.msrb.mxu2 %v9385_v43  ;;  %v10311_v62 = vld [vmem:[#allocation8 + $0x2cc] sm:$0xf]  ;;  %v8922_v43 = vld [vmem:[#allocation8 + $0x2d8] sm:$0xf0] }
 0x410   :  { %v8925_v26 = vor.u32 %v10311_v62, %v8922_v43  ;;  %v8570_v62 = vld [vmem:[#allocation8 + $0x18] sm:$0xf0]  ;;  %v10255_v43 = vld [vmem:[#allocation8 + $0x10c] sm:$0xf] }
 0x411   :  { %6009 = vmatpush.bf16.msrb.mxu1 %v9241_v49  ;;  %v10345_v49 = vld [vmem:[#allocation8 + $0x3d4] sm:$0xf0]  ;;  %5927 = vmatpush.bf16.msrb.mxu3 %v9461_v34  ;;  %v8858_v34 = vld [vmem:[#allocation8 + $0x258] sm:$0xf0] }
 0x412   :  { %v9049_v6 = vor.u32 %v10345_v49, %v9048_v18  ;;  %v8698_v18 = vld [vmem:[#allocation8 + $0x118] sm:$0xf0] }
 0x413   :  { %5996 = vmatpush.bf16.msrb.mxu0 %v9097_v16  ;;  %6023 = vmatpush.bf16.msrb.mxu2 %v9369_v63  ;;  %v10307_v16 = vld [vmem:[#allocation8 + $0x2ac] sm:$0xf]  ;;  %v8906_v63 = vld [vmem:[#allocation8 + $0x2b8] sm:$0xf0] }
 0x414   :  { %5928 = vmatmul.bf16.vlgmr.msrb.gmra.mxu3 %v11167_v46  ;;  %v8909_v15 = vor.u32 %v10307_v16, %v8906_v63  ;;  %v9322_v16 = vld [vmem:[#allocation8 + $0x5f8] sm:$0xf0]  ;;  %v8701_v63 = vor.u32 %v10255_v43, %v8698_v18  ;;  %v10363_v43 = vld [vmem:[#allocation8 + $0x46c] sm:$0xf] }
 0x415   :  { %6010 = vmatpush.bf16.msrb.mxu1 %v9225_v36  ;;  %5976 = vmatpush.bf16.msra.mxu3 %v9065_v53  ;;  %v8765_v36 = vor.u32 %v10271_v19, %v8762_v20  ;;  %v9194_v19 = vld [vmem:[#allocation8 + $0x4f8] sm:$0xf0]  ;;  %v10411_v20 = vld [vmem:[#allocation8 + $0x5ec] sm:$0xf] }
 0x416   :  { %v9130_v18 = vld [vmem:[#allocation8 + $0x478] sm:$0xf0] }
 0x417   :  { %5997 = vmatpush.bf16.msrb.mxu0 %v9081_v1  ;;  %6024 = vmatpush.bf16.msrb.mxu2 %v9353_v21  ;;  %v8621_v1 = vor.u32 %v10235_v47, %v8618_v29  ;;  %v8749_v21 = vor.u32 %v10267_v37, %v8746_v4  ;;  %v10287_v47 = vld [vmem:[#allocation8 + $0x20c] sm:$0xf]  ;;  %v8826_v29 = vld [vmem:[#allocation8 + $0x218] sm:$0xf0]  ;;  %v9325_v37 = vor.u32 %v10411_v20, %v9322_v16 }
 0x418   :  { %v9178_v4 = vld [vmem:[#allocation8 + $0x4d8] sm:$0xf0]  ;;  %v10359_v16 = vld [vmem:[#allocation8 + $0x44c] sm:$0xf] }
 0x419   :  { %6011 = vmatpush.bf16.msrb.mxu1 %v9209_v25  ;;  %5977 = vmatpush.bf16.msra.mxu3 %v9049_v6  ;;  %v8893_v25 = vor.u32 %v10303_v8, %v8890_v7  ;;  %v8573_v6 = vor.u32 %v10223_v58, %v8570_v62  ;;  %v10407_v8 = vld [vmem:[#allocation8 + $0x5cc] sm:$0xf]  ;;  %v9306_v7 = vld [vmem:[#allocation8 + $0x5d8] sm:$0xf0] }
 0x41a   :  { %5998 = vmatmul.bf16.vlgmr.msrb.gmra.mxu0 %v11148_v24  ;;  %v9309_v55 = vor.u32 %v10407_v8, %v9306_v7  ;;  %v9418_v58 = vld [vmem:[#allocation8 + $0x6b8] sm:$0xf0]  ;;  %v10355_v8 = vld [vmem:[#allocation8 + $0x42c] sm:$0xf] }
 0x41b   :  { %6046 = vmatpush.bf16.msra.mxu0 %v8685_v38  ;;  %6025 = vmatpush.bf16.msrb.mxu2 %v9337_v23  ;;  %v10231_v38 = vld [vmem:[#allocation8 + $0x4c] sm:$0xf]  ;;  %v8586_v23 = vld [vmem:[#allocation8 + $0x38] sm:$0xf0] }
 0x41c   :  { %6012 = vmatmul.bf16.vlgmr.msrb.gmra.mxu1 %v11150_v42  ;;  %v8605_v12 = vor.u32 %v10231_v38, %v8602_v56  ;;  %v8589_v0 = vor.u32 %v10227_v33, %v8586_v23  ;;  %v9434_v33 = vld [vmem:[#allocation8 + $0x6d8] sm:$0xf0] }
 0x41d   :  { %6060 = vmatpush.bf16.msra.mxu1 %v8813_v22  ;;  %5978 = vmatpush.bf16.msra.mxu3 %v9033_v9  ;;  %v8874_v22 = vld [vmem:[#allocation8 + $0x278] sm:$0xf0]  ;;  %v10375_v9 = vld [vmem:[#allocation8 + $0x4cc] sm:$0xf] }
 0x41e   :  { %6026 = vmatmul.bf16.vlgmr.msrb.gmra.mxu2 %v11154_v32  ;;  %v8877_v41 = vor.u32 %v10299_v61, %v8874_v22  ;;  %v9181_v56 = vor.u32 %v10375_v9, %v9178_v4  ;;  %v9162_v61 = vld [vmem:[#allocation8 + $0x4b8] sm:$0xf0]  ;;  %v10403_v22 = vld [vmem:[#allocation8 + $0x5ac] sm:$0xf] }
 0x41f   :  { %6047 = vmatpush.bf16.msra.mxu0 %v8669_v28  ;;  %6074 = vmatpush.bf16.msra.mxu2 %v8941_v2  ;;  %v8714_v28 = vld [vmem:[#allocation8 + $0x138] sm:$0xf0]  ;;  %v10295_v2 = vld [vmem:[#allocation8 + $0x24c] sm:$0xf]  ;;  %v9165_v23 = vor.u32 %v10371_v52, %v9162_v61 }
 0x420   :  { %v8717_v53 = vor.u32 %v10259_v45, %v8714_v28  ;;  %v8861_v13 = vor.u32 %v10295_v2, %v8858_v34  ;;  %v9146_v28 = vld [vmem:[#allocation8 + $0x498] sm:$0xf0]  ;;  %v10399_v2 = vld [vmem:[#allocation8 + $0x58c] sm:$0xf] }
 0x421   :  { %6061 = vmatpush.bf16.msra.mxu1 %v8797_v39  ;;  %5979 = vmatpush.bf16.msra.mxu3 %v9017_v40  ;;  %v8984_v39 = vld [vmem:[#allocation8 + $0x348] sm:$0xf]  ;;  %v9577_v40 = vor.u32 %v10477_v44, %v9576_v17  ;;  %v9098_v7 = vld [vmem:[#allocation8 + $0x438] sm:$0xf0]  ;;  %v10387_v17 = vld [vmem:[#allocation8 + $0x52c] sm:$0xf] }
 0x422   :  { %v8985_v49 = vor.u32 %v10329_v54, %v8984_v39  ;;  %v9544_v39 = vld [vmem:[#allocation8 + $0x7a8] sm:$0xf]  ;;  %v10469_v54 = vld [vmem:[#allocation8 + $0x7b4] sm:$0xf0]  ;;  %v10351_v61 = vld [vmem:[#allocation8 + $0x40c] sm:$0xf] }
 0x423   :  { %6048 = vmatpush.bf16.msra.mxu0 %v8653_v57  ;;  %6075 = vmatpush.bf16.msra.mxu2 %v8925_v26  ;;  %v8968_v57 = vld [vmem:[#allocation8 + $0x328] sm:$0xf]  ;;  %v8842_v26 = vld [vmem:[#allocation8 + $0x238] sm:$0xf0]  ;;  %v9545_v62 = vor.u32 %v10469_v54, %v9544_v39  ;;  %v10347_v54 = vld [vmem:[#allocation8 + $0x3ec] sm:$0xf] }
 0x424   :  { %v9338_v39 = vld [vmem:[#allocation8 + $0x618] sm:$0xf0] }
 0x425   :  { %6062 = vmatpush.bf16.msra.mxu1 %v8781_v5  ;;  %5980 = vmatpush.bf16.msra.mxu3 %v9001_v51  ;;  %v10291_v5 = vld [vmem:[#allocation8 + $0x22c] sm:$0xf] }
 0x426   :  { %v8845_v30 = vor.u32 %v10291_v5, %v8842_v26  ;;  %v10367_v51 = vld [vmem:[#allocation8 + $0x48c] sm:$0xf]  ;;  %v9258_v5 = vld [vmem:[#allocation8 + $0x578] sm:$0xf0]  ;;  %v9528_v26 = vld [vmem:[#allocation8 + $0x788] sm:$0xf] }
 0x427   :  { %6049 = vmatpush.bf16.msra.mxu0 %v8637_v50  ;;  %6076 = vmatpush.bf16.msra.mxu2 %v8909_v15  ;;  %v8969_v50 = vor.u32 %v10325_v59, %v8968_v57  ;;  %v10321_v15 = vld [vmem:[#allocation8 + $0x314] sm:$0xf0] }
 0x428   :  { %v8953_v38 = vor.u32 %v10321_v15, %v8952_v35  ;;  %v10465_v59 = vld [vmem:[#allocation8 + $0x794] sm:$0xf0] }
 0x429   :  { %6063 = vmatpush.bf16.msra.mxu1 %v8765_v36  ;;  %5981 = vmatpush.bf16.msra.mxu3 %v8985_v49  ;;  %v9197_v36 = vor.u32 %v10379_v48, %v9194_v19  ;;  %v10395_v49 = vld [vmem:[#allocation8 + $0x56c] sm:$0xf]  ;;  %v9402_v19 = vld [vmem:[#allocation8 + $0x698] sm:$0xf0]  ;;  %v9529_v20 = vor.u32 %v10465_v59, %v9528_v26  ;;  %v10461_v15 = vld [vmem:[#allocation8 + $0x774] sm:$0xf0] }
 0x42a   :  { %v10431_v48 = vld [vmem:[#allocation8 + $0x68c] sm:$0xf]  ;;  %v9034_v26 = vld [vmem:[#allocation8 + $0x3b8] sm:$0xf0] }
 0x42b   :  { %6050 = vmatpush.bf16.msra.mxu0 %v8621_v1  ;;  %6077 = vmatpush.bf16.msra.mxu2 %v8893_v25  ;;  %v8829_v1 = vor.u32 %v10287_v47, %v8826_v29  ;;  %v9450_v25 = vld [vmem:[#allocation8 + $0x6f8] sm:$0xf0]  ;;  %v9405_v35 = vor.u32 %v10431_v48, %v9402_v19  ;;  %v10427_v47 = vld [vmem:[#allocation8 + $0x66c] sm:$0xf] }
 0x42c   :  { %v9386_v29 = vld [vmem:[#allocation8 + $0x678] sm:$0xf0]  ;;  %v10483_v59 = vld [vmem:[#allocation11 + $0x28] sm:$0xff] }
 0x42d   :  { %6064 = vmatpush.bf16.msra.mxu1 %v8749_v21  ;;  %v10443_v21 = vld [vmem:[#allocation8 + $0x6ec] sm:$0xf]  ;;  %5982 = vmatpush.bf16.msra.mxu3 %v8969_v50  ;;  %v9242_v50 = vld [vmem:[#allocation8 + $0x558] sm:$0xf0]  ;;  %v9389_v44 = vor.u32 %v10427_v47, %v9386_v29 }
 0x42e   :  { %v9453_v27 = vor.u32 %v10443_v21, %v9450_v25  ;;  %v9496_v21 = vld [vmem:[#allocation8 + $0x748] sm:$0xf]  ;;  %v10457_v25 = vld [vmem:[#allocation8 + $0x754] sm:$0xf0]  ;;  %v10335_v48 = vld [vmem:[#allocation8 + $0x38c] sm:$0xf] }
 0x42f   :  { %6051 = vmatpush.bf16.msra.mxu0 %v8605_v12  ;;  %6078 = vmatpush.bf16.msra.mxu2 %v8877_v41  ;;  %v9560_v12 = vld [vmem:[#allocation8 + $0x7c8] sm:$0xf]  ;;  %v10439_v41 = vld [vmem:[#allocation8 + $0x6cc] sm:$0xf]  ;;  %v9497_v52 = vor.u32 %v10457_v25, %v9496_v21  ;;  %v9018_v19 = vld [vmem:[#allocation8 + $0x398] sm:$0xf0] }
 0x430   :  { %v9437_v34 = vor.u32 %v10439_v41, %v9434_v33  ;;  %v10453_v41 = vld [vmem:[#allocation8 + $0x734] sm:$0xf0]  ;;  %v10419_v33 = vld [vmem:[#allocation8 + $0x62c] sm:$0xf]  ;;  %v11185_v21 = vld [vmem:[#allocation10] sm:$0xf] }
 0x431   :  { %6065 = vmatpush.bf16.msra.mxu1 %v8733_v10  ;;  %v10473_v10 = vld [vmem:[#allocation8 + $0x7d4] sm:$0xf0]  ;;  %5983 = vmatpush.bf16.msra.mxu3 %v8953_v38  ;;  %v10423_v38 = vld [vmem:[#allocation8 + $0x64c] sm:$0xf] }
 0x432   :  { %v9561_v45 = vor.u32 %v10473_v10, %v9560_v12  ;;  %v9210_v12 = vld [vmem:[#allocation8 + $0x518] sm:$0xf0]  ;;  %v9480_v10 = vld [vmem:[#allocation8 + $0x728] sm:$0xf]  ;;  %v10323_v29 = vld [vmem:[#allocation8 + $0x32c] sm:$0xf] }
 0x433   :  { %6052 = vmatpush.bf16.msra.mxu0 %v8589_v0  ;;  %6079 = vmatpush.bf16.msra.mxu2 %v8861_v13  ;;  %v10435_v0 = vld [vmem:[#allocation8 + $0x6ac] sm:$0xf] }
 0x434   :  { %5984 = vmatmul.bf16.vlgmr.msra.gmra.mxu3 %v11119_v14  ;;  %v9421_v57 = vor.u32 %v10435_v0, %v9418_v58  ;;  %v9066_v0 = vld [vmem:[#allocation8 + $0x3f8] sm:$0xf0] }
 0x435   :  { %6066 = vmatpush.bf16.msra.mxu1 %v8717_v53  ;;  %6032 = vmatpush.bf16.msrb.mxu3 %v9577_v40  ;;  %v9149_v53 = vor.u32 %v10367_v51, %v9146_v28  ;;  %v9481_v51 = vor.u32 %v10453_v41, %v9480_v10 }
 0x437   :  { %6053 = vmatpush.bf16.msra.mxu0 %v8573_v6  ;;  %6080 = vmatpush.bf16.msra.mxu2 %v8845_v30  ;;  %v9261_v6 = vor.u32 %v10395_v49, %v9258_v5  ;;  %v10391_v30 = vld [vmem:[#allocation8 + $0x54c] sm:$0xf]  ;;  %v10484_v49 = vld [vmem:[#allocation11 + $0x30] sm:$0xff] }
 0x438   :  { %v9245_v9 = vor.u32 %v10391_v30, %v9242_v50  ;;  %v10339_v5 = vld [vmem:[#allocation8 + $0x3ac] sm:$0xf]  ;;  %v5747_v50 = vpop.f32.mrf.mxu2 }
 0x439   :  { %6067 = vmatpush.bf16.msra.mxu1 %v8701_v63  ;;  %6033 = vmatpush.bf16.msrb.mxu3 %v9561_v45  ;;  %v9114_v63 = vld [vmem:[#allocation8 + $0x458] sm:$0xf0] }
 0x43a   :  { %6054 = vmatmul.bf16.vlgmr.msra.gmra.mxu0 %v11106_v3  ;;  %v9293_v3 = vor.u32 %v10403_v22, %v9290_v11  ;;  %v9082_v22 = vld [vmem:[#allocation8 + $0x418] sm:$0xf0] }
 0x43b   :  { %6102 = vmatpush.bf16.msrb.mxu0 %v9197_v36  ;;  %6081 = vmatpush.bf16.msra.mxu2 %v8829_v1  ;;  %v9512_v36 = vld [vmem:[#allocation8 + $0x768] sm:$0xf]  ;;  %v9226_v1 = vld [vmem:[#allocation8 + $0x538] sm:$0xf0] }
 0x43c   :  { %6068 = vmatmul.bf16.vlgmr.msra.gmra.mxu1 %v11108_v60  ;;  %v9274_v60 = vld [vmem:[#allocation8 + $0x598] sm:$0xf0]  ;;  %v9513_v4 = vor.u32 %v10461_v15, %v9512_v36  ;;  %v9229_v40 = vor.u32 %v10387_v17, %v9226_v1  ;;  %v10327_v36 = vld [vmem:[#allocation8 + $0x34c] sm:$0xf]  ;;  %v10480_v15 = vld [vmem:[#allocation11 + $0x10] sm:$0xff] }
 0x43d   :  { %6116 = vmatpush.bf16.msrb.mxu1 %v9325_v37  ;;  %v9277_v13 = vor.u32 %v10399_v2, %v9274_v60  ;;  %6034 = vmatpush.bf16.msrb.mxu3 %v9545_v62  ;;  %v9117_v37 = vor.u32 %v10359_v16, %v9114_v63  ;;  %v9464_v2 = vld [vmem:[#allocation8 + $0x708] sm:$0xf]  ;;  %v10415_v60 = vld [vmem:[#allocation8 + $0x60c] sm:$0xf]  ;;  %v9069_v62 = vor.u32 %v10347_v54, %v9066_v0  ;;  %v9002_v16 = vld [vmem:[#allocation8 + $0x378] sm:$0xf0] }
 0x43e   :  { %6082 = vmatmul.bf16.vlgmr.msra.gmra.mxu2 %v11110_v31  ;;  %v9133_v31 = vor.u32 %v10363_v43, %v9130_v18  ;;  %v10343_v43 = vld [vmem:[#allocation8 + $0x3cc] sm:$0xf]  ;;  %v9050_v18 = vld [vmem:[#allocation8 + $0x3d8] sm:$0xf0] }
 0x43f   :  { %6103 = vmatpush.bf16.msrb.mxu0 %v9181_v56  ;;  %6130 = vmatpush.bf16.msrb.mxu2 %v9453_v27  ;;  %v9370_v56 = vld [vmem:[#allocation8 + $0x658] sm:$0xf0]  ;;  %v10383_v27 = vld [vmem:[#allocation8 + $0x50c] sm:$0xf] }
 0x440   :  { %v9373_v11 = vor.u32 %v10423_v38, %v9370_v56  ;;  %v9213_v45 = vor.u32 %v10383_v27, %v9210_v12  ;;  %v10481_v63 = vld [vmem:[#allocation11 + $0x18] sm:$0xff]  ;;  %v5749_v38 = vpop.f32.mrf.mxu2  ;;  %v10478_v56 = vld [vmem:[#allocation11] sm:$0xff]  ;;  %v10491_v0 = vld [vmem:[#allocation11 + $0x68] sm:$0xff] }
 0x441   :  { %6117 = vmatpush.bf16.msrb.mxu1 %v9309_v55  ;;  %6035 = vmatpush.bf16.msrb.mxu3 %v9529_v20  ;;  %v9101_v55 = vor.u32 %v10355_v8, %v9098_v7  ;;  %v10331_v20 = vld [vmem:[#allocation8 + $0x36c] sm:$0xf]  ;;  %v8954_v17 = vld [vmem:[#allocation8 + $0x318] sm:$0xf0] }
 0x442   :  { %v9005_v30 = vor.u32 %v10331_v20, %v9002_v16  ;;  %v10319_v7 = vld [vmem:[#allocation8 + $0x30c] sm:$0xf]  ;;  %v9578_v1 = vld [vmem:[#allocation8 + $0x7f8] sm:$0xf0] }
 0x443   :  { %6104 = vmatpush.bf16.msrb.mxu0 %v9165_v23  ;;  %6131 = vmatpush.bf16.msrb.mxu2 %v9437_v34  ;;  %v9354_v23 = vld [vmem:[#allocation8 + $0x638] sm:$0xf0]  ;;  %v10449_v34 = vld [vmem:[#allocation8 + $0x714] sm:$0xf0] }
 0x444   :  { %v9357_v28 = vor.u32 %v10419_v33, %v9354_v23  ;;  %v9465_v58 = vor.u32 %v10449_v34, %v9464_v2  ;;  %v9562_v27 = vld [vmem:[#allocation8 + $0x7d8] sm:$0xf0]  ;;  %v10467_v33 = vld [vmem:[#allocation8 + $0x7ac] sm:$0xf] }
 0x445   :  { %6118 = vmatpush.bf16.msrb.mxu1 %v9293_v3  ;;  %6036 = vmatpush.bf16.msrb.mxu3 %v9513_v4  ;;  %v9085_v3 = vor.u32 %v10351_v61, %v9082_v22  ;;  %v10479_v4 = vld [vmem:[#allocation11 + $0x8] sm:$0xff]  ;;  %v4422_v61 = vperm.slane %v11185_v21, 0  ;;  %v10493_v12 = vld [vmem:[#allocation11 + $0x78] sm:$0xff] }
 0x446   :  { %v10471_v22 = vld [vmem:[#allocation8 + $0x7cc] sm:$0xf]  ;;  %v9546_v23 = vld [vmem:[#allocation8 + $0x7b8] sm:$0xf0] }
 0x447   :  { %6105 = vmatpush.bf16.msrb.mxu0 %v9149_v53  ;;  %6132 = vmatpush.bf16.msrb.mxu2 %v9421_v57  ;;  %v10485_v53 = vld [vmem:[#allocation11 + $0x38] sm:$0xff]  ;;  %v9053_v57 = vor.u32 %v10343_v43, %v9050_v18  ;;  %v9565_v10 = vor.u32 %v10471_v22, %v9562_v27  ;;  %v9549_v2 = vor.u32 %v10467_v33, %v9546_v23  ;;  %v10459_v18 = vld [vmem:[#allocation8 + $0x76c] sm:$0xf] }
 0x449   :  { %6119 = vmatpush.bf16.msrb.mxu1 %v9277_v13  ;;  %6037 = vmatpush.bf16.msrb.mxu3 %v9497_v52  ;;  %v9341_v13 = vor.u32 %v10415_v60, %v9338_v39  ;;  %v10463_v60 = vld [vmem:[#allocation8 + $0x78c] sm:$0xf]  ;;  %v9530_v39 = vld [vmem:[#allocation8 + $0x798] sm:$0xf0] }
 0x44b   :  { %6106 = vmatpush.bf16.msrb.mxu0 %v9133_v31  ;;  %6133 = vmatpush.bf16.msrb.mxu2 %v9405_v35  ;;  %v9021_v31 = vor.u32 %v10335_v48, %v9018_v19  ;;  %v5733_v35 = vpop.f32.mrf.mxu1  ;;  %v10455_v19 = vld [vmem:[#allocation8 + $0x74c] sm:$0xf] }
 0x44d   :  { %6120 = vmatpush.bf16.msrb.mxu1 %v9261_v6  ;;  %6038 = vmatpush.bf16.msrb.mxu3 %v9481_v51  ;;  %v5719_v6 = vpop.f32.mrf.mxu0  ;;  %v10492_v51 = vld [vmem:[#allocation11 + $0x70] sm:$0xff] }
 0x44e   :  { %v5720_v41 = vadd.f32 %v5719_v6, %v4422_v61  ;;  %v10489_v6 = vld [vmem:[#allocation11 + $0x58] sm:$0xff] }
 0x44f   :  { %6107 = vmatpush.bf16.msrb.mxu0 %v9117_v37  ;;  %6134 = vmatpush.bf16.msrb.mxu2 %v9389_v44  ;;  %v8970_v37 = vld [vmem:[#allocation8 + $0x338] sm:$0xf0]  ;;  %v10475_v44 = vld [vmem:[#allocation8 + $0x7ec] sm:$0xf] }
 0x450   :  { %v8973_v8 = vor.u32 %v10323_v29, %v8970_v37  ;;  %v9581_v52 = vor.u32 %v10475_v44, %v9578_v1  ;;  %v5734_v34 = vadd.f32 %v5733_v35, %v5720_v41  ;;  %v10451_v35 = vld [vmem:[#allocation8 + $0x72c] sm:$0xf] }
 0x451   :  { %6121 = vmatpush.bf16.msrb.mxu1 %v9245_v9  ;;  %6039 = vmatpush.bf16.msrb.mxu3 %v9465_v58  ;;  %v10487_v44 = vld [vmem:[#allocation11 + $0x48] sm:$0xff] }
 0x452   :  { %v5748_v58 = vadd.f32 %v5747_v50, %v5734_v34  ;;  %v9482_v50 = vld [vmem:[#allocation8 + $0x738] sm:$0xf0] }
 0x453   :  { %6108 = vmatpush.bf16.msrb.mxu0 %v9101_v55  ;;  %6135 = vmatpush.bf16.msrb.mxu2 %v9373_v11  ;;  %v5735_v25 = vpop.f32.mrf.mxu1  ;;  %v8957_v55 = vor.u32 %v10319_v7, %v8954_v17  ;;  %v9485_v29 = vor.u32 %v10451_v35, %v9482_v50  ;;  %v10494_v35 = vld [vmem:[#allocation11 + $0x80] sm:$0xff] }
 0x454   :  { %6040 = vmatmul.bf16.vlgmr.msrb.gmra.mxu3 %v11167_v46 }
 0x455   :  { %6122 = vmatpush.bf16.msrb.mxu1 %v9229_v40  ;;  %6088 = vmatpush.bf16.msra.mxu3 %v9069_v62  ;;  %v5721_v9 = vpop.f32.mrf.mxu0  ;;  %v5761_v40 = vpop.f32.mrf.mxu3  ;;  %v9533_v62 = vor.u32 %v10463_v60, %v9530_v39 }
 0x457   :  { %6109 = vmatpush.bf16.msrb.mxu0 %v9085_v3  ;;  %6136 = vmatpush.bf16.msrb.mxu2 %v9357_v28  ;;  %v5722_v28 = vadd.f32 %v5721_v9, %v4422_v61 }
 0x459   :  { %6123 = vmatpush.bf16.msrb.mxu1 %v9213_v45  ;;  %6089 = vmatpush.bf16.msra.mxu3 %v9053_v57  ;;  %v5803_v45 = vpop.f32.mrf.mxu2  ;;  %v5762_v57 = vadd.f32 %v5761_v40, %v5748_v58  ;;  %v10486_v40 = vld [vmem:[#allocation11 + $0x40] sm:$0xff] }
 0x45a   :  { %6110 = vmatmul.bf16.vlgmr.msrb.gmra.mxu0 %v11148_v24  ;;  %v9037_v24 = vor.u32 %v10339_v5, %v9034_v26 }
 0x45b   :  { %6430 = vmatpush.bf16.msra.mxu0 %v10485_v53  ;;  %6137 = vmatpush.bf16.msrb.mxu2 %v9341_v13  ;;  %v5789_v3 = vpop.f32.mrf.mxu1  ;;  %v5736_v53 = vadd.f32 %v5735_v25, %v5722_v28 }
 0x45c   :  { %6124 = vmatmul.bf16.vlgmr.msrb.gmra.mxu1 %v11150_v42  ;;  %v10482_v42 = vld [vmem:[#allocation11 + $0x20] sm:$0xff] }
 0x45d   :  { %6090 = vmatpush.bf16.msra.mxu3 %v9037_v24  ;;  %v5775_v11 = vpop.f32.mrf.mxu0  ;;  %6444 = vmatpush.bf16.msra.mxu1 %v10493_v12  ;;  %v5763_v54 = vpop.f32.mrf.mxu3  ;;  %v5750_v43 = vadd.f32 %v5749_v38, %v5736_v53 }
 0x45e   :  { %6138 = vmatmul.bf16.vlgmr.msrb.gmra.mxu2 %v11154_v32  ;;  %v8986_v32 = vld [vmem:[#allocation8 + $0x358] sm:$0xf0]  ;;  %v5776_v48 = vadd.f32 %v5775_v11, %v5762_v57 }
 0x45f   :  { %6431 = vmatpush.bf16.msra.mxu0 %v10484_v49  ;;  %v8989_v47 = vor.u32 %v10327_v36, %v8986_v32  ;;  %v9514_v49 = vld [vmem:[#allocation8 + $0x778] sm:$0xf0]  ;;  %v5764_v24 = vadd.f32 %v5763_v54, %v5750_v43  ;;  %v10488_v36 = vld [vmem:[#allocation11 + $0x50] sm:$0xff] }
 0x460   :  { %v10501_v57 = vld [vmem:[#allocation11 + $0xb8] sm:$0xff] }
 0x461   :  { %6091 = vmatpush.bf16.msra.mxu3 %v9021_v31  ;;  %6445 = vmatpush.bf16.msra.mxu1 %v10492_v51  ;;  %v5805_v26 = vpop.f32.mrf.mxu2 }
 0x462   :  { %6458 = vmatpush.bf16.msra.mxu2 %v10501_v57 }
 0x463   :  { %6432 = vmatpush.bf16.msra.mxu0 %v10483_v59  ;;  %v5791_v5 = vpop.f32.mrf.mxu1  ;;  %v9517_v59 = vor.u32 %v10459_v18, %v9514_v49 }
 0x465   :  { %6092 = vmatpush.bf16.msra.mxu3 %v9005_v30  ;;  %v5777_v13 = vpop.f32.mrf.mxu0  ;;  %6446 = vmatpush.bf16.msra.mxu1 %v10491_v0  ;;  %v5790_v30 = vadd.f32 %v5789_v3, %v5776_v48 }
 0x466   :  { %v5778_v20 = vadd.f32 %v5777_v13, %v5764_v24 }
 0x467   :  { %6433 = vmatpush.bf16.msra.mxu0 %v10482_v42  ;;  %v9498_v42 = vld [vmem:[#allocation8 + $0x758] sm:$0xf0] }
 0x468   :  { %v5792_v32 = vadd.f32 %v5791_v5, %v5778_v20  ;;  %v10496_v20 = vld [vmem:[#allocation11 + $0x90] sm:$0xff] }
 0x469   :  { %6093 = vmatpush.bf16.msra.mxu3 %v8989_v47  ;;  %v5859_v7 = vpop.f32.mrf.mxu2 }
 0x46a   :  { %v5806_v37 = vadd.f32 %v5805_v26, %v5792_v32  ;;  %v10500_v26 = vld [vmem:[#allocation11 + $0xb0] sm:$0xff] }
 0x46b   :  { %6434 = vmatpush.bf16.msra.mxu0 %v10481_v63  ;;  %v9501_v63 = vor.u32 %v10455_v19, %v9498_v42  ;;  %v5845_v47 = vpop.f32.mrf.mxu1  ;;  %6459 = vmatpush.bf16.msra.mxu2 %v10500_v26  ;;  %v10499_v19 = vld [vmem:[#allocation11 + $0xa8] sm:$0xff]  ;;  %v10498_v42 = vld [vmem:[#allocation11 + $0xa0] sm:$0xff] }
 0x46d   :  { %6094 = vmatpush.bf16.msra.mxu3 %v8973_v8  ;;  %v5831_v16 = vpop.f32.mrf.mxu0  ;;  %v9466_v8 = vld [vmem:[#allocation8 + $0x718] sm:$0xf0] }
 0x46f   :  { %6435 = vmatpush.bf16.msra.mxu0 %v10480_v15  ;;  %v5804_v15 = vadd.f32 %v5803_v45, %v5790_v30  ;;  %6460 = vmatpush.bf16.msra.mxu2 %v10499_v19 }
 0x471   :  { %6095 = vmatpush.bf16.msra.mxu3 %v8957_v55  ;;  %v5861_v12 = vpop.f32.mrf.mxu2 }
 0x473   :  { %6436 = vmatpush.bf16.msra.mxu0 %v10479_v4  ;;  %v10447_v4 = vld [vmem:[#allocation8 + $0x70c] sm:$0xf]  ;;  %v5847_v22 = vpop.f32.mrf.mxu1  ;;  %6461 = vmatpush.bf16.msra.mxu2 %v10498_v42 }
 0x474   :  { %6096 = vmatmul.bf16.vlgmr.msra.gmra.mxu3 %v11119_v14  ;;  %v10490_v14 = vld [vmem:[#allocation11 + $0x60] sm:$0xff]  ;;  %v9469_v25 = vor.u32 %v10447_v4, %v9466_v8 }
 0x475   :  { %6144 = vmatpush.bf16.msrb.mxu3 %v9581_v52  ;;  %6447 = vmatpush.bf16.msra.mxu1 %v10490_v14  ;;  %v5833_v55 = vpop.f32.mrf.mxu0  ;;  %v4423_v52 = vperm.slane %v11185_v21, 1 }
 0x477   :  { %6437 = vmatpush.bf16.msra.mxu0 %v10478_v56  ;;  %v5817_v31 = vpop.f32.mrf.mxu3  ;;  %v5832_v11 = vadd.f32 %v5831_v16, %v4423_v52 }
 0x478   :  { %v5818_v9 = vadd.f32 %v5817_v31, %v5804_v15  ;;  %v10497_v31 = vld [vmem:[#allocation11 + $0x98] sm:$0xff] }
 0x479   :  { %6145 = vmatpush.bf16.msrb.mxu3 %v9565_v10  ;;  %6448 = vmatpush.bf16.msra.mxu1 %v10489_v6  ;;  %v5834_v10 = vadd.f32 %v5833_v55, %v4423_v52  ;;  %v5846_v33 = vadd.f32 %v5845_v47, %v5832_v11  ;;  %v5915_v60 = vpop.f32.mrf.mxu2 }
 0x47a   :  { %v6158_v38 = vmax.f32 %v5818_v9, 0.0  ;;  %6462 = vmatpush.bf16.msra.mxu2 %v10497_v31 }
 0x47b   :  { %v5848_v23 = vadd.f32 %v5847_v22, %v5834_v10  ;;  %v5860_v3 = vadd.f32 %v5859_v7, %v5846_v33  ;;  %v5901_v45 = vpop.f32.mrf.mxu1 }
 0x47d   :  { %6146 = vmatpush.bf16.msrb.mxu3 %v9549_v2  ;;  %6449 = vmatpush.bf16.msra.mxu1 %v10488_v36  ;;  %v5887_v41 = vpop.f32.mrf.mxu0  ;;  %v5862_v28 = vadd.f32 %v5861_v12, %v5848_v23  ;;  %v4424_v36 = vperm.slane %v11185_v21, 2 }
 0x47e   :  { %6463 = vmatpush.bf16.msra.mxu2 %v10496_v20 }
 0x47f   :  { %v5819_v17 = vpop.f32.mrf.mxu3 }
 0x480   :  { %v5820_v1 = vadd.f32 %v5819_v17, %v5806_v37 }
 0x481   :  { %6147 = vmatpush.bf16.msrb.mxu3 %v9533_v62  ;;  %6450 = vmatpush.bf16.msra.mxu1 %v10487_v44  ;;  %v5917_v43 = vpop.f32.mrf.mxu2 }
 0x482   :  { %v6162_v56 = vmax.f32 %v5820_v1, 0.0 }
 0x483   :  { %v5903_v13 = vpop.f32.mrf.mxu1 }
 0x484   :  { %v6166_v61 = vpack.c.bf16 %v6162_v56, %v6158_v38 }
 0x485   :  { %6148 = vmatpush.bf16.msrb.mxu3 %v9517_v59  ;;  %6451 = vmatpush.bf16.msra.mxu1 %v10486_v40  ;;  %v5889_v54 = vpop.f32.mrf.mxu0 }
 0x486   :  { %6438 = vmatmul.bf16.vlgmr.msra.gmra.mxu0 %v6166_v61 }
 0x487   :  { %v5873_v27 = vpop.f32.mrf.mxu3 }
 0x488   :  { %v5874_v2 = vadd.f32 %v5873_v27, %v5860_v3  ;;  %v10509_v3 = vld [vmem:[#allocation11 + $0xf8] sm:$0xff] }
 0x489   :  { %6149 = vmatpush.bf16.msrb.mxu3 %v9501_v63  ;;  %v10495_v63 = vld [vmem:[#allocation11 + $0x88] sm:$0xff]  ;;  %v5971_v30 = vpop.f32.mrf.mxu2 }
 0x48a   :  { %v5888_v39 = vadd.f32 %v5887_v41, %v5874_v2  ;;  %6464 = vmatpush.bf16.msra.mxu2 %v10495_v63 }
 0x48b   :  { %v5957_v16 = vpop.f32.mrf.mxu1 }
 0x48c   :  { %v5902_v53 = vadd.f32 %v5901_v45, %v5888_v39  ;;  %v10506_v39 = vld [vmem:[#allocation11 + $0xe0] sm:$0xff] }
 0x48d   :  { %6150 = vmatpush.bf16.msrb.mxu3 %v9485_v29  ;;  %v5943_v6 = vpop.f32.mrf.mxu0 }
 0x48e   :  { %6465 = vmatpush.bf16.msra.mxu2 %v10494_v35  ;;  %v5944_v47 = vadd.f32 %v5943_v6, %v4424_v36 }
 0x48f   :  { %v5875_v51 = vpop.f32.mrf.mxu3 }
 0x490   :  { %v5876_v34 = vadd.f32 %v5875_v51, %v5862_v28  ;;  %v5958_v4 = vadd.f32 %v5957_v16, %v5944_v47  ;;  %v10508_v51 = vld [vmem:[#allocation11 + $0xf0] sm:$0xff] }
 0x491   :  { %6151 = vmatpush.bf16.msrb.mxu3 %v9469_v25  ;;  %v5973_v37 = vpop.f32.mrf.mxu2 }
 0x492   :  { %v5890_v0 = vadd.f32 %v5889_v54, %v5876_v34  ;;  %v5972_v7 = vadd.f32 %v5971_v30, %v5958_v4  ;;  %v10505_v54 = vld [vmem:[#allocation11 + $0xd8] sm:$0xff] }
 0x493   :  { %v5959_v15 = vpop.f32.mrf.mxu1 }
 0x494   :  { %6152 = vmatmul.bf16.vlgmr.msrb.gmra.mxu3 %v11167_v46  ;;  %v5904_v62 = vadd.f32 %v5903_v13, %v5890_v0  ;;  %v5916_v46 = vadd.f32 %v5915_v60, %v5902_v53  ;;  %v10507_v60 = vld [vmem:[#allocation11 + $0xe8] sm:$0xff] }
 0x495   :  { %v5945_v50 = vpop.f32.mrf.mxu0  ;;  %6472 = vmatpush.bf16.msra.mxu3 %v10509_v3  ;;  %v10503_v13 = vld [vmem:[#allocation11 + $0xc8] sm:$0xff] }
 0x496   :  { %v5918_v49 = vadd.f32 %v5917_v43, %v5904_v62  ;;  %v5946_v29 = vadd.f32 %v5945_v50, %v4424_v36 }
 0x497   :  { %v5929_v58 = vpop.f32.mrf.mxu3 }
 0x498   :  { %v5930_v18 = vadd.f32 %v5929_v58, %v5916_v46  ;;  %v5960_v8 = vadd.f32 %v5959_v15, %v5946_v29  ;;  %v10504_v58 = vld [vmem:[#allocation11 + $0xd0] sm:$0xff]  ;;  %v10502_v46 = vld [vmem:[#allocation11 + $0xc0] sm:$0xff] }
 0x499   :  { %6473 = vmatpush.bf16.msra.mxu3 %v10508_v51 }
 0x49a   :  { %v6159_v59 = vmax.f32 %v5930_v18, 0.0  ;;  %v5974_v1 = vadd.f32 %v5973_v37, %v5960_v8  ;;  %v4425_v18 = vperm.slane %v11185_v21, 3 }
 0x49b   :  { %v6013_v17 = vpop.f32.mrf.mxu1 }
 0x49d   :  { %v5999_v9 = vpop.f32.mrf.mxu0  ;;  %6474 = vmatpush.bf16.msra.mxu3 %v10507_v60 }
 0x49f   :  { %v5931_v14 = vpop.f32.mrf.mxu3 }
 0x4a0   :  { %v5932_v5 = vadd.f32 %v5931_v14, %v5918_v49 }
 0x4a1   :  { %v6027_v56 = vpop.f32.mrf.mxu2  ;;  %6475 = vmatpush.bf16.msra.mxu3 %v10506_v39 }
 0x4a2   :  { %v6163_v24 = vmax.f32 %v5932_v5, 0.0 }
 0x4a3   :  { %v6015_v27 = vpop.f32.mrf.mxu1 }
 0x4a4   :  { %v6167_v48 = vpack.c.bf16 %v6163_v24, %v6159_v59 }
 0x4a5   :  { %v6001_v40 = vpop.f32.mrf.mxu0  ;;  %6476 = vmatpush.bf16.msra.mxu3 %v10505_v54 }
 0x4a6   :  { %6452 = vmatmul.bf16.vlgmr.msra.gmra.mxu1 %v6167_v48 }
 0x4a9   :  { %v6029_v10 = vpop.f32.mrf.mxu2  ;;  %6477 = vmatpush.bf16.msra.mxu3 %v10504_v58 }
 0x4ad   :  { %6478 = vmatpush.bf16.msra.mxu3 %v10503_v13 }
 0x4b1   :  { %6479 = vmatpush.bf16.msra.mxu3 %v10502_v46 }
 0x4b7   :  { %v5985_v32 = vpop.f32.mrf.mxu3  ;;  %v6055_v0 = vpop.f32.mrf.mxu0 }
 0x4b8   :  { %v5986_v25 = vadd.f32 %v5985_v32, %v5972_v7  ;;  %v6056_v57 = vadd.f32 %v6055_v0, %v4425_v18 }
 0x4b9   :  { %v6069_v53 = vpop.f32.mrf.mxu1 }
 0x4ba   :  { %v6000_v55 = vadd.f32 %v5999_v9, %v5986_v25  ;;  %v6070_v24 = vadd.f32 %v6069_v53, %v6056_v57  ;;  %v10527_v25 = vld [vmem:[#allocation13] ss:$0 sm:$0xff] }
 0x4bc   :  { %v6014_v22 = vadd.f32 %v6013_v17, %v6000_v55 }
 0x4be   :  { %v6028_v12 = vadd.f32 %v6027_v56, %v6014_v22 }
 0x4bf   :  { %v5987_v44 = vpop.f32.mrf.mxu3  ;;  %v6057_v43 = vpop.f32.mrf.mxu0 }
 0x4c0   :  { %v5988_v38 = vadd.f32 %v5987_v44, %v5974_v1  ;;  %v6058_v5 = vadd.f32 %v6057_v43, %v4425_v18 }
 0x4c1   :  { %v6083_v62 = vpop.f32.mrf.mxu2  ;;  %v6071_v14 = vpop.f32.mrf.mxu1 }
 0x4c2   :  { %v6002_v52 = vadd.f32 %v6001_v40, %v5988_v38  ;;  %v6072_v48 = vadd.f32 %v6071_v14, %v6058_v5  ;;  %v6084_v19 = vadd.f32 %v6083_v62, %v6070_v24 }
 0x4c4   :  { %v6016_v11 = vadd.f32 %v6015_v27, %v6002_v52 }
 0x4c6   :  { %v6030_v33 = vadd.f32 %v6029_v10, %v6016_v11 }
 0x4c9   :  { %v6085_v26 = vpop.f32.mrf.mxu2 }
 0x4ca   :  { %v6086_v6 = vadd.f32 %v6085_v26, %v6072_v48 }
 0x4d7   :  { %v6041_v61 = vpop.f32.mrf.mxu3  ;;  %v6111_v59 = vpop.f32.mrf.mxu0 }
 0x4d8   :  { %v6042_v41 = vadd.f32 %v6041_v61, %v6028_v12 }
 0x4d9   :  { %v6125_v42 = vpop.f32.mrf.mxu1 }
 0x4da   :  { %v6160_v28 = vmax.f32 %v6042_v41, 0.0 }
 0x4df   :  { %v6043_v23 = vpop.f32.mrf.mxu3  ;;  %v6113_v35 = vpop.f32.mrf.mxu0 }
 0x4e0   :  { %v6044_v45 = vadd.f32 %v6043_v23, %v6030_v33 }
 0x4e1   :  { %v6139_v63 = vpop.f32.mrf.mxu2  ;;  %v6127_v32 = vpop.f32.mrf.mxu1 }
 0x4e2   :  { %v6164_v2 = vmax.f32 %v6044_v45, 0.0 }
 0x4e4   :  { %v6168_v34 = vpack.c.bf16 %v6164_v2, %v6160_v28 }
 0x4e6   :  { %6466 = vmatmul.bf16.vlgmr.msra.gmra.mxu2 %v6168_v34 }
 0x4e9   :  { %v6141_v29 = vpop.f32.mrf.mxu2 }
 0x4f7   :  { %v6097_v49 = vpop.f32.mrf.mxu3 }
 0x4f8   :  { %v6098_v20 = vadd.f32 %v6097_v49, %v6084_v19 }
 0x4fa   :  { %v6112_v30 = vadd.f32 %v6111_v59, %v6098_v20 }
 0x4fc   :  { %v6126_v36 = vadd.f32 %v6125_v42, %v6112_v30 }
 0x4fe   :  { %v6140_v47 = vadd.f32 %v6139_v63, %v6126_v36 }
 0x4ff   :  { %v6099_v31 = vpop.f32.mrf.mxu3 }
 0x500   :  { %v6100_v16 = vadd.f32 %v6099_v31, %v6086_v6 }
 0x502   :  { %v6114_v50 = vadd.f32 %v6113_v35, %v6100_v16 }
 0x503   :  { %v6439_v1 = vpop.f32.mrf.mxu0 }
 0x504   :  { %v6128_v15 = vadd.f32 %v6127_v32, %v6114_v50  ;;  %v6440_v55 = vadd.f32 %v10527_v25, %v6439_v1 }
 0x506   :  { %v6142_v9 = vadd.f32 %v6141_v29, %v6128_v15 }
 0x50b   :  { %v6441_v61 = vpop.f32.mrf.mxu0 }
 0x50c   :  { %v6442_v12 = vadd.f32 %v10527_v25, %v6441_v61 }
 0x517   :  { %v6153_v21 = vpop.f32.mrf.mxu3 }
 0x518   :  { %v6154_v37 = vadd.f32 %v6153_v21, %v6140_v47 }
 0x51a   :  { %v6161_v7 = vmax.f32 %v6154_v37, 0.0 }
 0x51f   :  { %v6155_v4 = vpop.f32.mrf.mxu3 }
 0x520   :  { %v6156_v8 = vadd.f32 %v6155_v4, %v6142_v9 }
 0x522   :  { %v6165_v17 = vmax.f32 %v6156_v8, 0.0 }
 0x523   :  { %v6453_v38 = vpop.f32.mrf.mxu1 }
 0x524   :  { %v6169_v44 = vpack.c.bf16 %v6165_v17, %v6161_v7  ;;  %v6454_v40 = vadd.f32 %v6453_v38, %v6440_v55 }
 0x526   :  { %6480 = vmatmul.bf16.vlgmr.msra.gmra.mxu3 %v6169_v44 }
 0x52b   :  { %v6455_v11 = vpop.f32.mrf.mxu1 }
 0x52c   :  { %v6456_v41 = vadd.f32 %v6455_v11, %v6442_v12 }
 0x569   :  { %v6467_v56 = vpop.f32.mrf.mxu2 }
 0x56a   :  { %v6468_v52 = vadd.f32 %v6467_v56, %v6454_v40 }
 0x571   :  { %v6469_v10 = vpop.f32.mrf.mxu2 }
 0x572   :  { %v6470_v33 = vadd.f32 %v6469_v10, %v6456_v41 }
 0x5a9   :  { %v6481_v22 = vpop.f32.mrf.mxu3 }
 0x5aa   :  { %v6482_v27 = vadd.f32 %v6481_v22, %v6468_v52 }
 0x5ac   :  { %6486 = vst [vmem:[#allocation14] sm:$0xff] %v6482_v27 }
 0x5b1   :  { %v6483_v23 = vpop.f32.mrf.mxu3 }
 0x5b2   :  { %v6484_v3 = vadd.f32 %v6483_v23, %v6470_v33 }
 0x5b4   :  { %6487 = vst [vmem:[#allocation14 + $0x8] sm:$0xff] %v6484_v3 }
 0x5b5   :  { %6500 = dma.vmem_to_hbm [thread:$0]  %s6493_s6, 256, %s6495_s16, [#allocation4], %s10748_s17, %s10748_s17, %s10749_s18  }
 0x5b6   :  { %10731 = dma.done.wait [#allocation4], 256  }
 0x5b7   :  { %10732 = vsyncadd [#allocation4], 4294967040 }
 0x5b8   :  { %6505 = vsyncpa [#allocation3], 1 }
 0x5b9   :  { %6506 = vsyncpa [#allocation6], 1 }
 0x5ba   :  { %6507 = vsyncpa [#allocation9], 1 }
 0x5bb   :  { %6508 = vsyncpa [#allocation12], 1 }
 0x5bc   :  { %6509 = vsyncpa [#allocation4], 1 }

</bundles_post_ra>
